<compile_context>
chip_gen: v5e
topology: v5e:2x2
jax: 0.10.0
libtpu: 0.0.40
codegen_flags: <defaults>
</compile_context>

<pallas_src>
import functools

import jax
import jax.numpy as jnp
from jax import lax
from jax.experimental import pallas as pl
from jax.experimental.pallas import tpu as pltpu


def _round_up(x, m):
    return ((x + m - 1) // m) * m


# ---------------------------------------------------------------------------
# Kernel: per-node-tile MLP1 -> gating -> partial segment-sum into a resident
# VMEM accumulator; MLP2 applied at the last node tile of each split.
# ---------------------------------------------------------------------------
def graph_aggregator_kernel(
    gidx_ref,   # [1, tile]               i32  (lane-dense graph ids)
    x_ref,      # [tile, in_dim]          f32/bf16
    w1_ref,     # [in_dim, h1]            bf16
    b1_ref,     # [1, h1]                 f32
    w2_ref,     # [h1, 2*D]               bf16 (fused gate|value)
    b2_ref,     # [1, 2*D]                f32
    w3_ref,     # [D, out_dim]            f32
    b3_ref,     # [1, out_dim]            f32
    o_ref,      # [1, n_graphs, out_dim]  f32  (one block per split)
    acc_ref,    # [n_graphs, D]           f32  VMEM scratch accumulator
    *,
    n_nodes: int,
    tile_n: int,
    n_graphs: int,
    graph_state_dim: int,
):
    s = pl.program_id(0)          # split (outer, "parallel")
    t = pl.program_id(1)          # node tile within split ("arbitrary")
    tiles_per_split = pl.num_programs(1)

    @pl.when(t == 0)
    def _():
        acc_ref[...] = jnp.zeros_like(acc_ref)

    # Logical (unclamped) node-block index for this grid step.  The wrapper's
    # index_maps clamp the DMA block index into bounds; correctness comes
    # from masking against this logical position.
    blk = s * tiles_per_split + t
    base = blk * tile_n

    # ---- cheap tail masking ----
    # Zero padded rows of x (small [T, in_dim] select) so stale NaNs cannot
    # reach the MXU; invalidate padded gidx lanes so their one-hot column is 0.
    row_ids = base + lax.broadcasted_iota(jnp.int32, (tile_n, 1), 0)
    x = jnp.where(row_ids < n_nodes, x_ref[...], 0)
    x = x.astype(jnp.bfloat16)

    col_ids = base + lax.broadcasted_iota(jnp.int32, (1, tile_n), 1)
    gidx = jnp.where(col_ids < n_nodes, gidx_ref[...], n_graphs)

    # ---- MLP1: bf16 MXU inputs, f32 accumulation ----
    h = jnp.dot(x, w1_ref[...], preferred_element_type=jnp.float32)
    h = jnp.maximum(h + b1_ref[...], 0.0)                           # [T, h1] f32

    g = jnp.dot(h.astype(jnp.bfloat16), w2_ref[...],
                preferred_element_type=jnp.float32) + b2_ref[...]   # [T, 2D] f32
    D = graph_state_dim
    ng = jax.nn.sigmoid(g[:, :D]) * g[:, D:]                        # [T, D]  f32

    # ---- partial unsorted_segment_sum via one-hot matmul (f32, no .T) ----
    graph_iota = lax.broadcasted_iota(jnp.int32, (n_graphs, tile_n), 0)
    one_hot = (gidx == graph_iota).astype(jnp.float32)              # [G, T]
    acc_ref[...] += jnp.dot(one_hot, ng,
                            preferred_element_type=jnp.float32)     # [G, D]

    # ---- finalize this split: MLP2 (bias only on split 0; splits summed
    #      in the wrapper, MLP2 is linear so this is exact) ----
    @pl.when(t == tiles_per_split - 1)
    def _():
        out = jnp.dot(acc_ref[...], w3_ref[...],
                      preferred_element_type=jnp.float32)
        out = out + jnp.where(s == 0, b3_ref[...], 0.0)
        o_ref[0] = out


def graph_aggregator(node_states, graph_idx, n_graphs, params,
                     graph_state_dim, *, tile_n=2048, num_splits=1):
    """Tiled pallas_call for the GraphAggregator forward.

    num_splits: set to 2 on v7x to use both TensorCores (outer grid axis is
    "parallel"); keep 1 on v5e/v6e.  node_states may be f32 or bf16; passing
    bf16 halves the O(n_nodes) HBM stream.
    """
    assert num_splits >= 1
    w1, b1, w2, b2, w3, b3 = params
    D = graph_state_dim
    n_nodes, in_dim = node_states.shape
    h1 = w1.shape[1]
    out_dim = w3.shape[1]
    assert w2.shape[1] == 2 * D, "gated=True expects W2 with 2*D outputs"

    # bf16 weights for the MXU (kernel accumulates in f32); biases / W3 / the
    # segment-sum accumulator stay f32.
    w1 = w1.astype(jnp.bfloat16)
    w2 = w2.astype(jnp.bfloat16)

    # Lane-dense graph ids: [1, n_nodes] int32.
    gidx_row = graph_idx.reshape(1, -1).astype(jnp.int32)

    # Node tile: multiple of 128 (lane constraint of the [1, tile] gidx
    # block), capped at the per-split share of nodes so small inputs don't
    # over-allocate.
    tile = max(128, min(_round_up(tile_n, 128),
                        _round_up(pl.cdiv(n_nodes, num_splits), 128)))
    total_blocks = pl.cdiv(n_nodes, tile)
    tiles_per_split = pl.cdiv(total_blocks, num_splits)
    last_blk = total_blocks - 1

    def node_blk(s, t):
        # Clamp so DMAs never start fully out of bounds; the kernel masks by
        # the logical (unclamped) row index, so clamped steps contribute 0.
        return jnp.minimum(s * tiles_per_split + t, last_blk)

    kernel = functools.partial(
        graph_aggregator_kernel,
        n_nodes=n_nodes,
        tile_n=tile,
        n_graphs=n_graphs,
        graph_state_dim=D,
    )

    grid_spec = pltpu.PrefetchScalarGridSpec(
        num_scalar_prefetch=0,
        grid=(num_splits, tiles_per_split),
        in_specs=[
            pl.BlockSpec((1, tile), lambda s, t: (0, node_blk(s, t))),     # gidx
            pl.BlockSpec((tile, in_dim), lambda s, t: (node_blk(s, t), 0)),  # x
            pl.BlockSpec((in_dim, h1), lambda s, t: (0, 0)),               # W1
            pl.BlockSpec((1, h1), lambda s, t: (0, 0)),                    # b1
            pl.BlockSpec((h1, 2 * D), lambda s, t: (0, 0)),                # W2
            pl.BlockSpec((1, 2 * D), lambda s, t: (0, 0)),                 # b2
            pl.BlockSpec((D, out_dim), lambda s, t: (0, 0)),               # W3
            pl.BlockSpec((1, out_dim), lambda s, t: (0, 0)),               # b3
        ],
        out_specs=pl.BlockSpec((1, n_graphs, out_dim), lambda s, t: (s, 0, 0)),
        scratch_shapes=[pltpu.VMEM((n_graphs, D), jnp.float32)],
    )

    partials = pl.pallas_call(
        kernel,
        out_shape=jax.ShapeDtypeStruct((num_splits, n_graphs, out_dim),
                                       jnp.float32),
        grid_spec=grid_spec,
        compiler_params=pltpu.CompilerParams(
            dimension_semantics=("parallel", "arbitrary"),
            vmem_limit_bytes=48 * 1024 * 1024,   # fits v7x's 64 MiB physical
        ),
    )(gidx_row, node_states, w1, b1, w2, b2, w3, b3)

    # Sum per-split partial outputs (MLP2 is linear; bias was added once).
    return partials.sum(axis=0)


# ---------------------------------------------------------------------------
# Pure-JAX references.
# ---------------------------------------------------------------------------
def graph_aggregator_ref(node_states, graph_idx, n_graphs, params,
                         graph_state_dim):
    """Exact f32 reference (matches the PyTorch forward)."""
    w1, b1, w2, b2, w3, b3 = params
    h = jnp.maximum(node_states @ w1 + b1, 0.0)
    g = h @ w2 + b2
    D = graph_state_dim
    ng = jax.nn.sigmoid(g[:, :D]) * g[:, D:]
    gs = jax.ops.segment_sum(ng, graph_idx, num_segments=n_graphs)
    return gs @ w3 + b3


def graph_aggregator_ref_bf16(node_states, graph_idx, n_graphs, params,
                              graph_state_dim):
    """Reference with the same bf16-input / f32-accumulate matmuls as the kernel."""
    w1, b1, w2, b2, w3, b3 = params
    xb = node_states.astype(jnp.bfloat16)
    h = jnp.dot(xb, w1.astype(jnp.bfloat16),
                preferred_element_type=jnp.float32) + b1
    h = jnp.maximum(h, 0.0)
    g = jnp.dot(h.astype(jnp.bfloat16), w2.astype(jnp.bfloat16),
                preferred_element_type=jnp.float32) + b2
    D = graph_state_dim
    ng = jax.nn.sigmoid(g[:, :D]) * g[:, D:]
    gs = jax.ops.segment_sum(ng, graph_idx, num_segments=n_graphs)
    return gs @ w3 + b3


if __name__ == "__main__":
    # Module-consistent small shapes; n_nodes not a multiple of the large
    # default tile so the padded-tail / clamped-block paths are exercised.
    n_nodes = 640
    n_graphs = 8
    input_size = 32                    # input_size[0] in the module
    node_hidden_sizes = [64, 128]      # last elem -> graph_state_dim
    graph_state_dim = node_hidden_sizes[-1]          # 128
    gated_out = 2 * graph_state_dim                  # 256 (gated=True)
    graph_transform_sizes = [128]                    # MLP2: 128 -> 128

    key = jax.random.PRNGKey(0)
    ks = jax.random.split(key, 8)

    # Parameters stored as [in, out], i.e. y = x @ W + b.
    w1 = jax.random.normal(ks[0], (input_size, node_hidden_sizes[0]),
                           jnp.float32) * 0.1
    b1 = jax.random.normal(ks[1], (1, node_hidden_sizes[0]), jnp.float32) * 0.1
    w2 = jax.random.normal(ks[2], (node_hidden_sizes[0], gated_out),
                           jnp.float32) * 0.1
    b2 = jax.random.normal(ks[3], (1, gated_out), jnp.float32) * 0.1
    w3 = jax.random.normal(ks[4], (graph_state_dim, graph_transform_sizes[0]),
                           jnp.float32) * 0.1
    b3 = jax.random.normal(ks[5], (1, graph_transform_sizes[0]),
                           jnp.float32) * 0.1
    params = (w1, b1, w2, b2, w3, b3)

    node_states = jax.random.normal(ks[6], (n_nodes, input_size), jnp.float32)
    graph_idx = jax.random.randint(ks[7], (n_nodes,), 0, n_graphs, jnp.int32)

    ref32 = graph_aggregator_ref(node_states, graph_idx, n_graphs, params,
                                 graph_state_dim)
    refbf = graph_aggregator_ref_bf16(node_states, graph_idx, n_graphs, params,
                                      graph_state_dim)

    # Single-core path (v5e / v6e).
    out1 = graph_aggregator(node_states, graph_idx, n_graphs, params,
                            graph_state_dim, tile_n=2048, num_splits=1)
    out1 = jax.block_until_ready(out1)
    assert out1.shape == (n_graphs, graph_transform_sizes[0])
    assert jnp.allclose(out1, refbf, atol=5e-3, rtol=5e-3), \
        "mismatch vs bf16-matched reference (num_splits=1)"
    assert jnp.allclose(out1, ref32, atol=0.2, rtol=0.1), \
        "mismatch vs f32 reference (num_splits=1)"

    # Two-way node split (v7x dual-TensorCore path; serial elsewhere).
    out2 = graph_aggregator(node_states, graph_idx, n_graphs, params,
                            graph_state_dim, tile_n=2048, num_splits=2)
    out2 = jax.block_until_ready(out2)
    assert out2.shape == (n_graphs, graph_transform_sizes[0])
    assert jnp.allclose(out2, refbf, atol=5e-3, rtol=5e-3), \
        "mismatch vs bf16-matched reference (num_splits=2)"
    assert jnp.allclose(out2, ref32, atol=0.2, rtol=0.1), \
        "mismatch vs f32 reference (num_splits=2)"

    print("KERNEL_OK")
</pallas_src>

<mosaic_0001>
module attributes {stable_mosaic.version = 11 : i64} {
  func.func @graph_aggregator_kernel(%arg0: i32, %arg1: i32, %arg2: memref<1x640xi32, #tpu.memory_space<vmem>>, %arg3: memref<640x32xf32, #tpu.memory_space<vmem>>, %arg4: memref<32x64xbf16, #tpu.memory_space<vmem>>, %arg5: memref<1x64xf32, #tpu.memory_space<vmem>>, %arg6: memref<64x256xbf16, #tpu.memory_space<vmem>>, %arg7: memref<1x256xf32, #tpu.memory_space<vmem>>, %arg8: memref<128x128xf32, #tpu.memory_space<vmem>>, %arg9: memref<1x128xf32, #tpu.memory_space<vmem>>, %arg10: memref<1x8x128xf32, #tpu.memory_space<vmem>>, %arg11: memref<8x128xf32, #tpu.memory_space<vmem>>) attributes {dimension_semantics = [#tpu.dimension_semantics<parallel>, #tpu.dimension_semantics<arbitrary>], iteration_bounds = array<i64: 1, 1>, scalar_prefetch = 0 : i64, scratch_operands = 1 : i64, tpu.core_type = #tpu.core_type<tc>, window_params = [{transform_indices = @transform_0, window_bounds = array<i64: 1, 640>}, {transform_indices = @transform_1, window_bounds = array<i64: 640, 32>}, {pipeline_mode = #tpu.pipeline_mode<synchronous>, transform_indices = @transform_2, window_bounds = array<i64: 32, 64>}, {pipeline_mode = #tpu.pipeline_mode<synchronous>, transform_indices = @transform_3, window_bounds = array<i64: 1, 64>}, {pipeline_mode = #tpu.pipeline_mode<synchronous>, transform_indices = @transform_4, window_bounds = array<i64: 64, 256>}, {pipeline_mode = #tpu.pipeline_mode<synchronous>, transform_indices = @transform_5, window_bounds = array<i64: 1, 256>}, {pipeline_mode = #tpu.pipeline_mode<synchronous>, transform_indices = @transform_6, window_bounds = array<i64: 128, 128>}, {pipeline_mode = #tpu.pipeline_mode<synchronous>, transform_indices = @transform_7, window_bounds = array<i64: 1, 128>}, {transform_indices = @transform_8, window_bounds = array<i64: 1, 8, 128>}]} {
    %c0_i32 = arith.constant 0 : i32
    %0 = arith.cmpi eq, %arg1, %c0_i32 : i32
    %1 = arith.extui %0 : i1 to i32
    %c0_i32_0 = arith.constant 0 : i32
    %2 = arith.cmpi ne, %1, %c0_i32_0 : i32
    scf.if %2 {
      %cst_25 = arith.constant 0.000000e+00 : f32
      %59 = vector.broadcast %cst_25 : f32 to vector<8x128xf32>
      %c0_26 = arith.constant 0 : index
      %c0_27 = arith.constant 0 : index
      %60 = vector.load %arg11[%c0_26, %c0_27] : memref<8x128xf32, #tpu.memory_space<vmem>>, vector<8x128xf32>
      tpu.vector_store %arg11[%c0_26, %c0_27], %59 {strides = array<i32>} : memref<8x128xf32, #tpu.memory_space<vmem>>, vector<8x128xf32>,
    } else {
    }
    %c1_i32 = arith.constant 1 : i32
    %3 = arith.muli %arg0, %c1_i32 : i32
    %4 = arith.addi %3, %arg1 : i32
    %c640_i32 = arith.constant 640 : i32
    %5 = arith.muli %4, %c640_i32 : i32
    %6 = tpu.iota {dimensions = array<i32: 0>} : vector<640x1xi32>
    %7 = vector.broadcast %5 : i32 to vector<640x1xi32>
    %8 = arith.addi %7, %6 : vector<640x1xi32>
    %c640_i32_1 = arith.constant 640 : i32
    %9 = vector.broadcast %c640_i32_1 : i32 to vector<640x1xi32>
    %10 = arith.cmpi slt, %8, %9 : vector<640x1xi32>
    %c0 = arith.constant 0 : index
    %c0_2 = arith.constant 0 : index
    %11 = vector.load %arg3[%c0, %c0_2] : memref<640x32xf32, #tpu.memory_space<vmem>>, vector<640x32xf32>
    %c0_i32_3 = arith.constant 0 : i32
    %12 = arith.sitofp %c0_i32_3 : i32 to f32
    %13 = vector.shape_cast %10 : vector<640x1xi1> to vector<640x1xi1>
    %14 = vector.broadcast %13 : vector<640x1xi1> to vector<640x32xi1>
    %15 = vector.broadcast %12 : f32 to vector<640x32xf32>
    %16 = arith.select %14, %11, %15 : vector<640x32xi1>, vector<640x32xf32>
    %17 = arith.truncf %16 : vector<640x32xf32> to vector<640x32xbf16>
    %18 = tpu.iota {dimensions = array<i32: 1>} : vector<1x640xi32>
    %19 = vector.broadcast %5 : i32 to vector<1x640xi32>
    %20 = arith.addi %19, %18 : vector<1x640xi32>
    %c640_i32_4 = arith.constant 640 : i32
    %21 = vector.broadcast %c640_i32_4 : i32 to vector<1x640xi32>
    %22 = arith.cmpi slt, %20, %21 : vector<1x640xi32>
    %c0_5 = arith.constant 0 : index
    %c0_6 = arith.constant 0 : index
    %23 = vector.load %arg2[%c0_5, %c0_6] : memref<1x640xi32, #tpu.memory_space<vmem>>, vector<1x640xi32>
    %c8_i32 = arith.constant 8 : i32
    %24 = vector.broadcast %c8_i32 : i32 to vector<1x640xi32>
    %25 = arith.select %22, %23, %24 : vector<1x640xi1>, vector<1x640xi32>
    %c0_7 = arith.constant 0 : index
    %c0_8 = arith.constant 0 : index
    %26 = vector.load %arg4[%c0_7, %c0_8] : memref<32x64xbf16, #tpu.memory_space<vmem>>, vector<32x64xbf16>
    %cst = arith.constant dense<0.000000e+00> : vector<640x64xf32>
    %27 = tpu.matmul %17, %26, %cst {dimension_numbers = #tpu.dot_dimension_numbers<[1], [0], [0], [1], [0, 0, 1, 1], [], []>} : vector<640x32xbf16>, vector<32x64xbf16>, vector<640x64xf32> -> vector<640x64xf32>
    %c0_9 = arith.constant 0 : index
    %c0_10 = arith.constant 0 : index
    %28 = vector.load %arg5[%c0_9, %c0_10] : memref<1x64xf32, #tpu.memory_space<vmem>>, vector<1x64xf32>
    %29 = vector.broadcast %28 : vector<1x64xf32> to vector<640x64xf32>
    %30 = arith.addf %27, %29 : vector<640x64xf32>
    %cst_11 = arith.constant 0.000000e+00 : f32
    %31 = vector.broadcast %cst_11 : f32 to vector<640x64xf32>
    %32 = arith.maximumf %30, %31 : vector<640x64xf32>
    %33 = arith.truncf %32 : vector<640x64xf32> to vector<640x64xbf16>
    %c0_12 = arith.constant 0 : index
    %c0_13 = arith.constant 0 : index
    %34 = vector.load %arg6[%c0_12, %c0_13] : memref<64x256xbf16, #tpu.memory_space<vmem>>, vector<64x256xbf16>
    %cst_14 = arith.constant dense<0.000000e+00> : vector<640x256xf32>
    %35 = tpu.matmul %33, %34, %cst_14 {dimension_numbers = #tpu.dot_dimension_numbers<[1], [0], [0], [1], [0, 0, 1, 1], [], []>} : vector<640x64xbf16>, vector<64x256xbf16>, vector<640x256xf32> -> vector<640x256xf32>
    %c0_15 = arith.constant 0 : index
    %c0_16 = arith.constant 0 : index
    %36 = vector.load %arg7[%c0_15, %c0_16] : memref<1x256xf32, #tpu.memory_space<vmem>>, vector<1x256xf32>
    %37 = vector.broadcast %36 : vector<1x256xf32> to vector<640x256xf32>
    %38 = arith.addf %35, %37 : vector<640x256xf32>
    %39 = vector.extract_strided_slice %38 {offsets = [0, 0], sizes = [640, 128], strides = [1, 1]} : vector<640x256xf32> to vector<640x128xf32>
    %40 = arith.negf %39 : vector<640x128xf32>
    %41 = math.exp %40 : vector<640x128xf32>
    %cst_17 = arith.constant 1.000000e+00 : f32
    %42 = vector.broadcast %cst_17 : f32 to vector<640x128xf32>
    %43 = arith.addf %42, %41 : vector<640x128xf32>
    %44 = arith.divf %42, %43 : vector<640x128xf32>
    %45 = vector.extract_strided_slice %38 {offsets = [0, 128], sizes = [640, 128], strides = [1, 1]} : vector<640x256xf32> to vector<640x128xf32>
    %46 = arith.mulf %44, %45 : vector<640x128xf32>
    %47 = tpu.iota {dimensions = array<i32: 0>} : vector<8x640xi32>
    %48 = vector.broadcast %25 : vector<1x640xi32> to vector<8x640xi32>
    %49 = arith.cmpi eq, %48, %47 : vector<8x640xi32>
    %50 = arith.extui %49 : vector<8x640xi1> to vector<8x640xi32>
    %51 = arith.sitofp %50 : vector<8x640xi32> to vector<8x640xf32>
    %c0_18 = arith.constant 0 : index
    %c0_19 = arith.constant 0 : index
    %52 = vector.load %arg11[%c0_18, %c0_19] : memref<8x128xf32, #tpu.memory_space<vmem>>, vector<8x128xf32>
    %cst_20 = arith.constant dense<0.000000e+00> : vector<8x128xf32>
    %53 = tpu.matmul %51, %46, %cst_20 {dimension_numbers = #tpu.dot_dimension_numbers<[1], [0], [0], [1], [0, 0, 1, 1], [], []>} : vector<8x640xf32>, vector<640x128xf32>, vector<8x128xf32> -> vector<8x128xf32>
    %54 = arith.addf %52, %53 : vector<8x128xf32>
    %c0_21 = arith.constant 0 : index
    %c0_22 = arith.constant 0 : index
    %55 = vector.load %arg11[%c0_21, %c0_22] : memref<8x128xf32, #tpu.memory_space<vmem>>, vector<8x128xf32>
    tpu.vector_store %arg11[%c0_21, %c0_22], %54 {strides = array<i32>} : memref<8x128xf32, #tpu.memory_space<vmem>>, vector<8x128xf32>,
    %c0_i32_23 = arith.constant 0 : i32
    %56 = arith.cmpi eq, %arg1, %c0_i32_23 : i32
    %57 = arith.extui %56 : i1 to i32
    %c0_i32_24 = arith.constant 0 : i32
    %58 = arith.cmpi ne, %57, %c0_i32_24 : i32
    scf.if %58 {
      %c0_25 = arith.constant 0 : index
      %c0_26 = arith.constant 0 : index
      %59 = vector.load %arg11[%c0_25, %c0_26] : memref<8x128xf32, #tpu.memory_space<vmem>>, vector<8x128xf32>
      %c0_27 = arith.constant 0 : index
      %c0_28 = arith.constant 0 : index
      %60 = vector.load %arg8[%c0_27, %c0_28] : memref<128x128xf32, #tpu.memory_space<vmem>>, vector<128x128xf32>
      %cst_29 = arith.constant dense<0.000000e+00> : vector<8x128xf32>
      %61 = tpu.matmul %59, %60, %cst_29 {dimension_numbers = #tpu.dot_dimension_numbers<[1], [0], [0], [1], [0, 0, 1, 1], [], []>} : vector<8x128xf32>, vector<128x128xf32>, vector<8x128xf32> -> vector<8x128xf32>
      %c0_i32_30 = arith.constant 0 : i32
      %62 = arith.cmpi eq, %arg0, %c0_i32_30 : i32
      %c0_31 = arith.constant 0 : index
      %c0_32 = arith.constant 0 : index
      %63 = vector.load %arg9[%c0_31, %c0_32] : memref<1x128xf32, #tpu.memory_space<vmem>>, vector<1x128xf32>
      %cst_33 = arith.constant 0.000000e+00 : f32
      %64 = vector.broadcast %cst_33 : f32 to vector<1x128xf32>
      %65 = arith.select %62, %63, %64 : vector<1x128xf32>
      %66 = vector.broadcast %65 : vector<1x128xf32> to vector<8x128xf32>
      %67 = arith.addf %61, %66 : vector<8x128xf32>
      %c0_34 = arith.constant 0 : index
      %c0_35 = arith.constant 0 : index
      %c0_36 = arith.constant 0 : index
      %68 = vector.load %arg10[%c0_34, %c0_35, %c0_36] : memref<1x8x128xf32, #tpu.memory_space<vmem>>, vector<1x8x128xf32>
      %69 = vector.shape_cast %68 : vector<1x8x128xf32> to vector<8x128xf32>
      %70 = vector.shape_cast %67 : vector<8x128xf32> to vector<1x8x128xf32>
      tpu.vector_store %arg10[%c0_34, %c0_35, %c0_36], %70 {strides = array<i32>} : memref<1x8x128xf32, #tpu.memory_space<vmem>>, vector<1x8x128xf32>,
    } else {
    }
    return
  }
  func.func @transform_0(%arg0: i32, %arg1: i32) -> (i32, i32) {
    %c1_i32 = arith.constant 1 : i32
    %0 = arith.muli %arg0, %c1_i32 : i32
    %1 = arith.addi %0, %arg1 : i32
    %c0_i32 = arith.constant 0 : i32
    %2 = arith.minsi %1, %c0_i32 : i32
    %c0_i32_0 = arith.constant 0 : i32
    %c0_i32_1 = arith.constant 0 : i32
    return %c0_i32_0, %2 : i32, i32
  }
  func.func @transform_1(%arg0: i32, %arg1: i32) -> (i32, i32) {
    %c1_i32 = arith.constant 1 : i32
    %0 = arith.muli %arg0, %c1_i32 : i32
    %1 = arith.addi %0, %arg1 : i32
    %c0_i32 = arith.constant 0 : i32
    %2 = arith.minsi %1, %c0_i32 : i32
    %c0_i32_0 = arith.constant 0 : i32
    %c0_i32_1 = arith.constant 0 : i32
    return %2, %c0_i32_0 : i32, i32
  }
  func.func @transform_2(%arg0: i32, %arg1: i32) -> (i32, i32) {
    %c0_i32 = arith.constant 0 : i32
    %c0_i32_0 = arith.constant 0 : i32
    %c0_i32_1 = arith.constant 0 : i32
    return %c0_i32, %c0_i32_0 : i32, i32
  }
  func.func @transform_3(%arg0: i32, %arg1: i32) -> (i32, i32) {
    %c0_i32 = arith.constant 0 : i32
    %c0_i32_0 = arith.constant 0 : i32
    %c0_i32_1 = arith.constant 0 : i32
    return %c0_i32, %c0_i32_0 : i32, i32
  }
  func.func @transform_4(%arg0: i32, %arg1: i32) -> (i32, i32) {
    %c0_i32 = arith.constant 0 : i32
    %c0_i32_0 = arith.constant 0 : i32
    %c0_i32_1 = arith.constant 0 : i32
    return %c0_i32, %c0_i32_0 : i32, i32
  }
  func.func @transform_5(%arg0: i32, %arg1: i32) -> (i32, i32) {
    %c0_i32 = arith.constant 0 : i32
    %c0_i32_0 = arith.constant 0 : i32
    %c0_i32_1 = arith.constant 0 : i32
    return %c0_i32, %c0_i32_0 : i32, i32
  }
  func.func @transform_6(%arg0: i32, %arg1: i32) -> (i32, i32) {
    %c0_i32 = arith.constant 0 : i32
    %c0_i32_0 = arith.constant 0 : i32
    %c0_i32_1 = arith.constant 0 : i32
    return %c0_i32, %c0_i32_0 : i32, i32
  }
  func.func @transform_7(%arg0: i32, %arg1: i32) -> (i32, i32) {
    %c0_i32 = arith.constant 0 : i32
    %c0_i32_0 = arith.constant 0 : i32
    %c0_i32_1 = arith.constant 0 : i32
    return %c0_i32, %c0_i32_0 : i32, i32
  }
  func.func @transform_8(%arg0: i32, %arg1: i32) -> (i32, i32, i32) {
    %c0_i32 = arith.constant 0 : i32
    %c0_i32_0 = arith.constant 0 : i32
    %c0_i32_1 = arith.constant 0 : i32
    return %arg0, %c0_i32, %c0_i32_0 : i32, i32, i32
  }
}

</mosaic_0001>

<bundles_post_ra>
// kernel: tpu_custom_call.1
= control target key start
LH: loop header
LB: loop body
LE: loop exit
PB: predicated region body
PF: predicated region fallthrough
CT: control target
= control target key end

     0   :  { %s6967_s0 = inlined_call_operand.vmem [shape: s32[1,640], index: 0, kind: input, shape index: {}]   ;;  %s6968_s1 = inlined_call_operand.vmem [shape: f32[640,32], index: 1, kind: input, shape index: {}]   ;;  %s6969_s2 = inlined_call_operand.vmem [shape: bf16[32,64], index: 2, kind: input, shape index: {}]   ;;  %s6970_s3 = inlined_call_operand.vmem [shape: f32[1,64], index: 3, kind: input, shape index: {}]   ;;  %s6971_s4 = inlined_call_operand.vmem [shape: bf16[64,256], index: 4, kind: input, shape index: {}]   ;;  %s6972_s5 = inlined_call_operand.vmem [shape: f32[1,256], index: 5, kind: input, shape index: {}]   ;;  %s6973_s6 = inlined_call_operand.vmem [shape: f32[128,128], index: 6, kind: input, shape index: {}]   ;;  %s6974_s7 = inlined_call_operand.vmem [shape: f32[1,128], index: 7, kind: input, shape index: {}]   ;;  %s6975_s8 = inlined_call_operand.hbm [shape: f32[1,8,128], index: 8, kind: output, shape index: {}]  }
   0x1   :  { %v3840_v0 = vld [vmem:[%s6969_s2 + $0x8] sm:$0xff]  ;;  %v3839_v1 = vld [vmem:[%s6969_s2] sm:$0xff] }
   0x2   :  { %875 = vmatpush.bf16.msra.mxu0 %v3840_v0  ;;  %v341_v2 = vld [vmem:[%s6968_s1] sm:$0xff]  ;;  %v342_v3 = vld [vmem:[%s6968_s1 + $0x8] sm:$0xff]  ;;  %3849 = vmatpush.bf16.msra.mxu3 %v3840_v0 }
   0x3   :  { %13 = vsyncpa [#allocation4], 0  ;;  %v661_v4 = vpack.c.bf16 %v342_v3, %v341_v2  ;;  %vm748_vm0 = vcmask 261120   ;;  %v343_v5 = vld [vmem:[%s6968_s1 + $0x10] sm:$0xff]  ;;  %v344_v6 = vld [vmem:[%s6968_s1 + $0x18] sm:$0xff]  ;;  %vm1252_vm1 = vcmask 523264  }
   0x4   :  { %v662_v7 = vpack.c.bf16 %v344_v6, %v343_v5  ;;  %v345_v8 = vld [vmem:[%s6968_s1 + $0x20] sm:$0xff]  ;;  %v346_v9 = vld [vmem:[%s6968_s1 + $0x28] sm:$0xff]  ;;  %v347_v11 = vld [vmem:[%s6968_s1 + $0x30] sm:$0xff]  ;;  %s4214_s23 = smov [#allocation3]  }
   0x5   :  { %v663_v10 = vpack.c.bf16 %v346_v9, %v345_v8  ;;  %v348_v12 = vld [vmem:[%s6968_s1 + $0x38] sm:$0xff]  ;;  %v349_v14 = vld [vmem:[%s6968_s1 + $0x40] sm:$0xff]  ;;  %v350_v15 = vld [vmem:[%s6968_s1 + $0x48] sm:$0xff]  ;;  %s3569_s24 = sshll.u32 %s4214_s23, 4  ;;  %s3570_s24 = int_to_ptr.vmem [resolvable:$true] %s3569_s24 }
   0x6   :  { %876 = vmatpush.bf16.msra.mxu0 %v3839_v1  ;;  %3850 = vmatpush.bf16.msra.mxu3 %v3839_v1  ;;  %v664_v13 = vpack.c.bf16 %v348_v12, %v347_v11  ;;  %v665_v16 = vpack.c.bf16 %v350_v15, %v349_v14  ;;  %v351_v17 = vld [vmem:[%s6968_s1 + $0x50] sm:$0xff]  ;;  %v352_v18 = vld [vmem:[%s6968_s1 + $0x58] sm:$0xff]  ;;  %v353_v20 = vld [vmem:[%s6968_s1 + $0x60] sm:$0xff] }
   0x7   :  { %v666_v19 = vpack.c.bf16 %v352_v18, %v351_v17  ;;  %v354_v21 = vld [vmem:[%s6968_s1 + $0x68] sm:$0xff]  ;;  %v3663_v22 = vld [vmem:[%s6971_s4 + $0x30] sm:$0xf]  ;;  %v3848_v23 = vld [vmem:[%s6971_s4 + $0x34] sm:$0xf0] }
   0x8   :  { %v3847_v24 = vld [vmem:[%s6971_s4 + $0x34] sm:$0xf]  ;;  %v3664_v25 = vor.u32 %v3848_v23, %v3663_v22  ;;  %v3665_v26 = vld [vmem:[%s6971_s4 + $0x38] sm:$0xf0]  ;;  %v667_v27 = vpack.c.bf16 %v354_v21, %v353_v20  ;;  %v3655_v29 = vld [vmem:[%s6971_s4 + $0x20] sm:$0xf] }
   0x9   :  { %3597 = vmatmul.msk.bf16.vlgmr.msra.gmra.mxu0 %vm748_vm0, %v661_v4  ;;  %v4326_v28 = vor.u32 %v3847_v24, %v3665_v26  ;;  %v3846_v30 = vld [vmem:[%s6971_s4 + $0x24] sm:$0xf0]  ;;  %v3845_v31 = vld [vmem:[%s6971_s4 + $0x24] sm:$0xf]  ;;  %v3657_v33 = vld [vmem:[%s6971_s4 + $0x28] sm:$0xf0] }
   0xa   :  { %1377 = vmatpush.bf16.msra.mxu1 %v3664_v25  ;;  %3851 = vmatpush.bf16.msrb.mxu3 %v3664_v25  ;;  %v3656_v32 = vor.u32 %v3846_v30, %v3655_v29  ;;  %v4342_v34 = vor.u32 %v3845_v31, %v3657_v33  ;;  %v3647_v35 = vld [vmem:[%s6971_s4 + $0x10] sm:$0xf]  ;;  %v3844_v36 = vld [vmem:[%s6971_s4 + $0x14] sm:$0xf0]  ;;  %v3843_v37 = vld [vmem:[%s6971_s4 + $0x14] sm:$0xf] }
   0xb   :  { %1586 = vmatpush.bf16.msra.mxu2 %v4326_v28  ;;  %v3648_v38 = vor.u32 %v3844_v36, %v3647_v35  ;;  %v3649_v39 = vld [vmem:[%s6971_s4 + $0x18] sm:$0xf0]  ;;  %v3639_v41 = vld [vmem:[%s6971_s4] sm:$0xf]  ;;  %v3842_v42 = vld [vmem:[%s6971_s4 + $0x4] sm:$0xf0] }
   0xc   :  { %v4357_v40 = vor.u32 %v3843_v37, %v3649_v39  ;;  %v3841_v43 = vld [vmem:[%s6971_s4 + $0x4] sm:$0xf]  ;;  %v3640_v44 = vor.u32 %v3842_v42, %v3639_v41  ;;  %v3641_v45 = vld [vmem:[%s6971_s4 + $0x8] sm:$0xf0]  ;;  %v355_v47 = vld [vmem:[%s6968_s1 + $0x70] sm:$0xff] }
   0xd   :  { %v4372_v46 = vor.u32 %v3841_v43, %v3641_v45  ;;  %v356_v48 = vld [vmem:[%s6968_s1 + $0x78] sm:$0xff]  ;;  %v357_v50 = vld [vmem:[%s6968_s1 + $0x80] sm:$0xff]  ;;  %v358_v51 = vld [vmem:[%s6968_s1 + $0x88] sm:$0xff] }
   0xe   :  { %1378 = vmatpush.bf16.msra.mxu1 %v3656_v32  ;;  %3852 = vmatpush.bf16.msrb.mxu3 %v3656_v32  ;;  %v668_v49 = vpack.c.bf16 %v356_v48, %v355_v47  ;;  %v669_v52 = vpack.c.bf16 %v358_v51, %v357_v50  ;;  %v4391_v54 = vld [vmem:[%s6970_s3] ss:$0 sm:$0xff]  ;;  %v359_v60 = vld [vmem:[%s6968_s1 + $0x90] sm:$0xff]  ;;  %v360_v61 = vld [vmem:[%s6968_s1 + $0x98] sm:$0xff] }
   0xf   :  { %1587 = vmatpush.bf16.msra.mxu2 %v4342_v34  ;;  %v670_v63 = vpack.c.bf16 %v360_v61, %v359_v60  ;;  %v361_v6 = vld [vmem:[%s6968_s1 + $0xa0] sm:$0xff]  ;;  %v364_v17 = vld [vmem:[%s6968_s1 + $0xb8] sm:$0xff]  ;;  %v407_v20 = vld [vmem:[%s6968_s1 + $0x210] sm:$0xff] }
  0x10   :  { %v408_v21 = vld [vmem:[%s6968_s1 + $0x218] sm:$0xff]  ;;  %v365_v30 = vld [vmem:[%s6968_s1 + $0xc0] sm:$0xff]  ;;  %v366_v31 = vld [vmem:[%s6968_s1 + $0xc8] sm:$0xff] }
  0x11   :  { %v694_v23 = vpack.c.bf16 %v408_v21, %v407_v20  ;;  %v673_v32 = vpack.c.bf16 %v366_v31, %v365_v30  ;;  %v409_v33 = vld [vmem:[%s6968_s1 + $0x220] sm:$0xff]  ;;  %v367_v42 = vld [vmem:[%s6968_s1 + $0xd0] sm:$0xff]  ;;  %v368_v43 = vld [vmem:[%s6968_s1 + $0xd8] sm:$0xff] }
  0x12   :  { %1379 = vmatpush.bf16.msra.mxu1 %v3648_v38  ;;  %3853 = vmatpush.bf16.msrb.mxu3 %v3648_v38  ;;  %v674_v45 = vpack.c.bf16 %v368_v43, %v367_v42  ;;  %v412_v47 = vld [vmem:[%s6968_s1 + $0x238] sm:$0xff]  ;;  %v413_v60 = vld [vmem:[%s6968_s1 + $0x240] sm:$0xff]  ;;  %v414_v61 = vld [vmem:[%s6968_s1 + $0x248] sm:$0xff] }
  0x13   :  { %1588 = vmatpush.bf16.msra.mxu2 %v4357_v40  ;;  %3630 = vmatmul.msk.bf16.vlgmr.msra.gmra.mxu3 %vm748_vm0, %v694_v23  ;;  %v418_v23 = vld [vmem:[%s6968_s1 + $0x268] sm:$0xff]  ;;  %v420_v42 = vld [vmem:[%s6968_s1 + $0x278] sm:$0xff] }
  0x16   :  { %1380 = vmatpush.bf16.msra.mxu1 %v3640_v44  ;;  %3854 = vmatpush.bf16.msrb.mxu3 %v3640_v44 }
  0x17   :  { %1589 = vmatpush.bf16.msra.mxu2 %v4372_v46 }
  0x19   :  { %3598 = vmatmul.msk.bf16.gmra.mxu0 %vm748_vm0, %v662_v7  ;;  %v362_v7 = vld [vmem:[%s6968_s1 + $0xa8] sm:$0xff] }
  0x1a   :  { %v671_v9 = vpack.c.bf16 %v362_v7, %v361_v6  ;;  %3855 = vmatpush.bf16.msra.mxu3 %v4326_v28  ;;  %v372_v6 = vld [vmem:[%s6968_s1 + $0xf8] sm:$0xff] }
  0x1e   :  { %3856 = vmatpush.bf16.msra.mxu3 %v4342_v34  ;;  %v410_v34 = vld [vmem:[%s6968_s1 + $0x228] sm:$0xff] }
  0x1f   :  { %v695_v36 = vpack.c.bf16 %v410_v34, %v409_v33  ;;  %v375_v34 = vld [vmem:[%s6968_s1 + $0x110] sm:$0xff] }
  0x22   :  { %3857 = vmatpush.bf16.msra.mxu3 %v4357_v40 }
  0x23   :  { %3631 = vmatmul.msk.bf16.gmra.mxu3 %vm748_vm0, %v695_v36 }
  0x26   :  { %3858 = vmatpush.bf16.msra.mxu3 %v4372_v46  ;;  %v411_v46 = vld [vmem:[%s6968_s1 + $0x230] sm:$0xff] }
  0x29   :  { %3599 = vmatmul.msk.bf16.gmra.mxu0 %vm748_vm0, %v663_v10 }
  0x39   :  { %3600 = vmatmul.msk.bf16.gmra.mxu0 %vm748_vm0, %v664_v13 }
  0x49   :  { %3601 = vmatmul.msk.bf16.gmra.mxu0 %vm748_vm0, %v665_v16  ;;  %v363_v16 = vld [vmem:[%s6968_s1 + $0xb0] sm:$0xff] }
  0x59   :  { %3602 = vmatmul.msk.bf16.gmra.mxu0 %vm748_vm0, %v666_v19  ;;  %v672_v19 = vpack.c.bf16 %v364_v17, %v363_v16 }
  0x69   :  { %3603 = vmatmul.msk.bf16.gmra.mxu0 %vm748_vm0, %v667_v27 }
  0x79   :  { %3604 = vmatmul.msk.bf16.gmra.mxu0 %vm748_vm0, %v668_v49  ;;  %v696_v49 = vpack.c.bf16 %v412_v47, %v411_v46 }
  0x7b   :  { %3632 = vmatmul.msk.bf16.gmra.mxu3 %vm748_vm0, %v696_v49 }
  0x86   :  { %v878_v53 = vpop.f32.mrf.mxu0 }
  0x87   :  { %v879_v55 = vadd.f32 %v4391_v54, %v878_v53 }
  0x89   :  { %3605 = vmatmul.msk.bf16.gmra.mxu0 %vm748_vm0, %v669_v52  ;;  %v1078_v58 = vmax.f32 %v879_v55, 0.0 }
  0x8e   :  { %v880_v56 = vpop.f32.mrf.mxu0 }
  0x8f   :  { %v881_v57 = vadd.f32 %v4391_v54, %v880_v56  ;;  %v369_v56 = vld [vmem:[%s6968_s1 + $0xe0] sm:$0xff] }
  0x91   :  { %v1079_v59 = vmax.f32 %v881_v57, 0.0  ;;  %v370_v57 = vld [vmem:[%s6968_s1 + $0xe8] sm:$0xff] }
  0x93   :  { %v1158_v62 = vpack.c.bf16 %v1079_v59, %v1078_v58  ;;  %v675_v59 = vpack.c.bf16 %v370_v57, %v369_v56 }
  0x95   :  { %3669 = vmatmul.msk.bf16.vlgmr.msra.gmra.mxu1 %vm1252_vm1, %v1158_v62  ;;  %3709 = vmatmul.msk.bf16.vlgmr.msra.gmra.mxu2 %vm1252_vm1, %v1158_v62 }
  0x96   :  { %v883_v0 = vpop.f32.mrf.mxu0 }
  0x97   :  { %v884_v1 = vadd.f32 %v4391_v54, %v883_v0 }
  0x99   :  { %3606 = vmatmul.msk.bf16.gmra.mxu0 %vm748_vm0, %v670_v63  ;;  %v1080_v4 = vmax.f32 %v884_v1, 0.0  ;;  %v697_v63 = vpack.c.bf16 %v414_v61, %v413_v60 }
  0x9b   :  { %3633 = vmatmul.msk.bf16.gmra.mxu3 %vm748_vm0, %v697_v63 }
  0x9e   :  { %v885_v2 = vpop.f32.mrf.mxu0 }
  0x9f   :  { %v886_v3 = vadd.f32 %v4391_v54, %v885_v2 }
  0xa1   :  { %v1081_v5 = vmax.f32 %v886_v3, 0.0 }
  0xa3   :  { %v1159_v8 = vpack.c.bf16 %v1081_v5, %v1080_v4  ;;  %v371_v5 = vld [vmem:[%s6968_s1 + $0xf0] sm:$0xff] }
  0xa5   :  { %3670 = vmatmul.msk.bf16.gmra.mxu1 %vm1252_vm1, %v1159_v8  ;;  %3710 = vmatmul.msk.bf16.gmra.mxu2 %vm1252_vm1, %v1159_v8  ;;  %v676_v8 = vpack.c.bf16 %v372_v6, %v371_v5 }
  0xa6   :  { %v888_v10 = vpop.f32.mrf.mxu0 }
  0xa7   :  { %v889_v11 = vadd.f32 %v4391_v54, %v888_v10  ;;  %v416_v10 = vld [vmem:[%s6968_s1 + $0x258] sm:$0xff] }
  0xa9   :  { %3607 = vmatmul.msk.bf16.gmra.mxu0 %vm748_vm0, %v671_v9  ;;  %v1082_v14 = vmax.f32 %v889_v11, 0.0  ;;  %v415_v9 = vld [vmem:[%s6968_s1 + $0x250] sm:$0xff] }
  0xae   :  { %v890_v12 = vpop.f32.mrf.mxu0 }
  0xaf   :  { %v891_v13 = vadd.f32 %v4391_v54, %v890_v12  ;;  %v698_v12 = vpack.c.bf16 %v416_v10, %v415_v9 }
  0xb1   :  { %v1083_v15 = vmax.f32 %v891_v13, 0.0  ;;  %3634 = vmatmul.msk.bf16.gmra.mxu3 %vm748_vm0, %v698_v12 }
  0xb3   :  { %v1160_v18 = vpack.c.bf16 %v1083_v15, %v1082_v14 }
  0xb5   :  { %3671 = vmatmul.msk.bf16.gmra.mxu1 %vm1252_vm1, %v1160_v18  ;;  %3711 = vmatmul.msk.bf16.gmra.mxu2 %vm1252_vm1, %v1160_v18  ;;  %v373_v18 = vld [vmem:[%s6968_s1 + $0x100] sm:$0xff] }
  0xb6   :  { %v893_v22 = vpop.f32.mrf.mxu0 }
  0xb7   :  { %v894_v24 = vadd.f32 %v4391_v54, %v893_v22  ;;  %v417_v22 = vld [vmem:[%s6968_s1 + $0x260] sm:$0xff] }
  0xb9   :  { %3608 = vmatmul.msk.bf16.gmra.mxu0 %vm748_vm0, %v672_v19  ;;  %v1084_v27 = vmax.f32 %v894_v24, 0.0  ;;  %v374_v19 = vld [vmem:[%s6968_s1 + $0x108] sm:$0xff] }
  0xba   :  { %v677_v21 = vpack.c.bf16 %v374_v19, %v373_v18 }
  0xbe   :  { %v895_v25 = vpop.f32.mrf.mxu0 }
  0xbf   :  { %v896_v26 = vadd.f32 %v4391_v54, %v895_v25  ;;  %v699_v25 = vpack.c.bf16 %v418_v23, %v417_v22 }
  0xc1   :  { %v1085_v29 = vmax.f32 %v896_v26, 0.0  ;;  %3635 = vmatmul.msk.bf16.gmra.mxu3 %vm748_vm0, %v699_v25  ;;  %v1206_v26 = vld [vmem:[%s6972_s5] sm:$0x3] }
  0xc2   :  { %v4533_v31 = vperm.slane %v1206_v26, 0 }
  0xc3   :  { %v1161_v28 = vpack.c.bf16 %v1085_v29, %v1084_v27 }
  0xc5   :  { %3672 = vmatmul.msk.bf16.gmra.mxu1 %vm1252_vm1, %v1161_v28  ;;  %3712 = vmatmul.msk.bf16.gmra.mxu2 %vm1252_vm1, %v1161_v28 }
  0xc6   :  { %v898_v35 = vpop.f32.mrf.mxu0 }
  0xc7   :  { %v899_v37 = vadd.f32 %v4391_v54, %v898_v35  ;;  %v376_v35 = vld [vmem:[%s6968_s1 + $0x118] sm:$0xff] }
  0xc9   :  { %3609 = vmatmul.msk.bf16.gmra.mxu0 %vm748_vm0, %v673_v32  ;;  %v1086_v40 = vmax.f32 %v899_v37, 0.0 }
  0xce   :  { %v900_v38 = vpop.f32.mrf.mxu0 }
  0xcf   :  { %v901_v39 = vadd.f32 %v4391_v54, %v900_v38 }
  0xd1   :  { %v1087_v41 = vmax.f32 %v901_v39, 0.0  ;;  %v678_v39 = vpack.c.bf16 %v376_v35, %v375_v34 }
  0xd3   :  { %v1162_v44 = vpack.c.bf16 %v1087_v41, %v1086_v40  ;;  %v419_v41 = vld [vmem:[%s6968_s1 + $0x270] sm:$0xff] }
  0xd5   :  { %3673 = vmatmul.msk.bf16.gmra.mxu1 %vm1252_vm1, %v1162_v44  ;;  %3713 = vmatmul.msk.bf16.gmra.mxu2 %vm1252_vm1, %v1162_v44  ;;  %v700_v44 = vpack.c.bf16 %v420_v42, %v419_v41 }
  0xd6   :  { %v903_v48 = vpop.f32.mrf.mxu0 }
  0xd7   :  { %v904_v50 = vadd.f32 %v4391_v54, %v903_v48  ;;  %3636 = vmatmul.msk.bf16.gmra.mxu3 %vm748_vm0, %v700_v44 }
  0xd9   :  { %3610 = vmatmul.msk.bf16.gmra.mxu0 %vm748_vm0, %v674_v45  ;;  %v1088_v53 = vmax.f32 %v904_v50, 0.0 }
  0xde   :  { %v905_v51 = vpop.f32.mrf.mxu0 }
  0xdf   :  { %v906_v52 = vadd.f32 %v4391_v54, %v905_v51 }
  0xe1   :  { %v1089_v55 = vmax.f32 %v906_v52, 0.0 }
  0xe3   :  { %v1163_v58 = vpack.c.bf16 %v1089_v55, %v1088_v53 }
  0xe5   :  { %3674 = vmatmul.msk.bf16.gmra.mxu1 %vm1252_vm1, %v1163_v58  ;;  %3714 = vmatmul.msk.bf16.gmra.mxu2 %vm1252_vm1, %v1163_v58  ;;  %v377_v58 = vld [vmem:[%s6968_s1 + $0x120] sm:$0xff] }
  0xe6   :  { %v908_v62 = vpop.f32.mrf.mxu0 }
  0xe7   :  { %v909_v0 = vadd.f32 %v4391_v54, %v908_v62 }
  0xe9   :  { %3611 = vmatmul.msk.bf16.gmra.mxu0 %vm748_vm0, %v675_v59  ;;  %v1090_v3 = vmax.f32 %v909_v0, 0.0  ;;  %v378_v59 = vld [vmem:[%s6968_s1 + $0x128] sm:$0xff] }
  0xea   :  { %v679_v0 = vpack.c.bf16 %v378_v59, %v377_v58 }
  0xee   :  { %v910_v1 = vpop.f32.mrf.mxu0 }
  0xef   :  { %v911_v2 = vadd.f32 %v4391_v54, %v910_v1 }
  0xf1   :  { %v1091_v4 = vmax.f32 %v911_v2, 0.0 }
  0xf3   :  { %v1164_v7 = vpack.c.bf16 %v1091_v4, %v1090_v3 }
  0xf5   :  { %3675 = vmatmul.msk.bf16.gmra.mxu1 %vm1252_vm1, %v1164_v7  ;;  %3715 = vmatmul.msk.bf16.gmra.mxu2 %vm1252_vm1, %v1164_v7  ;;  %v4569_v7 = vperm.slane %v1206_v26, 1 }
  0xf6   :  { %v913_v11 = vpop.f32.mrf.mxu0 }
  0xf7   :  { %v914_v13 = vadd.f32 %v4391_v54, %v913_v11 }
  0xf9   :  { %3612 = vmatmul.msk.bf16.gmra.mxu0 %vm748_vm0, %v676_v8  ;;  %v1092_v16 = vmax.f32 %v914_v13, 0.0 }
  0xfe   :  { %v915_v14 = vpop.f32.mrf.mxu0 }
  0xff   :  { %v916_v15 = vadd.f32 %v4391_v54, %v915_v14 }
 0x101   :  { %v1093_v17 = vmax.f32 %v916_v15, 0.0 }
 0x103   :  { %v1165_v20 = vpack.c.bf16 %v1093_v17, %v1092_v16 }
 0x105   :  { %3676 = vmatmul.msk.bf16.gmra.mxu1 %vm1252_vm1, %v1165_v20  ;;  %3716 = vmatmul.msk.bf16.gmra.mxu2 %vm1252_vm1, %v1165_v20 }
 0x106   :  { %v918_v24 = vpop.f32.mrf.mxu0 }
 0x107   :  { %v919_v27 = vadd.f32 %v4391_v54, %v918_v24 }
 0x109   :  { %3613 = vmatmul.msk.bf16.gmra.mxu0 %vm748_vm0, %v677_v21  ;;  %v1094_v28 = vmax.f32 %v919_v27, 0.0 }
 0x10e   :  { %v920_v29 = vpop.f32.mrf.mxu0 }
 0x10f   :  { %v921_v30 = vadd.f32 %v4391_v54, %v920_v29 }
 0x111   :  { %v1095_v32 = vmax.f32 %v921_v30, 0.0  ;;  %v379_v30 = vld [vmem:[%s6968_s1 + $0x130] sm:$0xff] }
 0x112   :  { %v1382_v33 = vpop.f32.mrf.mxu1 }
 0x113   :  { %v1383_v36 = vadd.f32 %v1382_v33, %v4533_v31  ;;  %v1166_v37 = vpack.c.bf16 %v1095_v32, %v1094_v28  ;;  %v380_v28 = vld [vmem:[%s6968_s1 + $0x138] sm:$0xff] }
 0x115   :  { %v3749_v38 = vmul.f32 -1.442695, %v1383_v36  ;;  %3677 = vmatmul.msk.bf16.gmra.mxu1 %vm1252_vm1, %v1166_v37  ;;  %3717 = vmatmul.msk.bf16.gmra.mxu2 %vm1252_vm1, %v1166_v37 }
 0x116   :  { %v923_v40 = vpop.f32.mrf.mxu0 }
 0x117   :  { %3863 = vpow2.f32 %v3749_v38  ;;  %v924_v48 = vadd.f32 %v4391_v54, %v923_v40 }
 0x118   :  { %v1591_v43 = vpop.f32.mrf.mxu2 }
 0x119   :  { %3614 = vmatmul.msk.bf16.gmra.mxu0 %vm748_vm0, %v678_v39  ;;  %v1096_v55 = vmax.f32 %v924_v48, 0.0  ;;  %v1592_v17 = vadd.f32 %v1591_v43, %v4569_v7  ;;  %v680_v39 = vpack.c.bf16 %v380_v28, %v379_v30 }
 0x11a   :  { %v1384_v45 = vpop.f32.mrf.mxu1 }
 0x11b   :  { %v1385_v46 = vadd.f32 %v1384_v45, %v4533_v31 }
 0x11d   :  { %v3864_v47 = vpop.eup %3863  ;;  %v3750_v49 = vmul.f32 -1.442695, %v1385_v46 }
 0x11e   :  { %v2031_v50 = vadd.f32 1.0, %v3864_v47  ;;  %v925_v51 = vpop.f32.mrf.mxu0 }
 0x11f   :  { %3865 = vpow2.f32 %v3750_v49  ;;  %v926_v52 = vadd.f32 %v4391_v54, %v925_v51 }
 0x120   :  { %3867 = vrcp.f32 %v2031_v50  ;;  %v4555_v53 = vpop.f32.mrf.mxu2  ;;  %v2122_v8 = vand.u32 2147483648, %v2031_v50  ;;  %v2120_v11 = vand.u32 2147483647, %v2031_v50  ;;  %vm2116_vm3 = vweird.f32 %v2031_v50 }
 0x121   :  { %v1097_v56 = vmax.f32 %v926_v52, 0.0  ;;  %v1594_v45 = vadd.f32 %v4555_v53, %v4569_v7 }
 0x122   :  { %v1387_v57 = vpop.f32.mrf.mxu1  ;;  %v2123_v18 = vor.u32 1.1754944e-38, %v2122_v8  ;;  %vm2121_vm5 = vcmp.eq.f32.partialorder %v2120_v11, 8.507059e+37 }
 0x123   :  { %v1388_v60 = vadd.f32 %v1387_v57, %v4533_v31  ;;  %v1167_v61 = vpack.c.bf16 %v1097_v56, %v1096_v55 }
 0x125   :  { %v3866_v62 = vpop.eup %3865  ;;  %v3751_v63 = vmul.f32 -1.442695, %v1388_v60  ;;  %3678 = vmatmul.msk.bf16.gmra.mxu1 %vm1252_vm1, %v1167_v61  ;;  %3718 = vmatmul.msk.bf16.gmra.mxu2 %vm1252_vm1, %v1167_v61 }
 0x126   :  { %v3868_v1 = vpop.eup %3867  ;;  %v2032_v2 = vadd.f32 1.0, %v3866_v62  ;;  %v928_v3 = vpop.f32.mrf.mxu0 }
 0x127   :  { %v2112_v4 = vmul.f32 %v3868_v1, %v2031_v50  ;;  %3869 = vpow2.f32 %v3751_v63  ;;  %vm2117_vm2 = vweird.f32 %v3868_v1  ;;  %v929_v20 = vadd.f32 %v4391_v54, %v928_v3 }
 0x128   :  { %3871 = vrcp.f32 %v2032_v2  ;;  %v4566_v5 = vpop.f32.mrf.mxu2  ;;  %vm2118_vm4 = vmor %vm2116_vm3, %vm2117_vm2  ;;  %v2135_v32 = vand.u32 2147483647, %v2032_v2  ;;  %v2137_v33 = vand.u32 2147483648, %v2032_v2  ;;  %vm2131_vm7 = vweird.f32 %v2032_v2 }
 0x129   :  { %v2113_v6 = vsub.f32 1.0, %v2112_v4  ;;  %3615 = vmatmul.msk.bf16.gmra.mxu0 %vm748_vm0, %v679_v0  ;;  %v1098_v34 = vmax.f32 %v929_v20, 0.0  ;;  %v1043_v0 = vpop.f32.mrf.mxu3 }
 0x12a   :  { %v1389_v9 = vpop.f32.mrf.mxu1  ;;  %v2138_v46 = vor.u32 1.1754944e-38, %v2137_v33  ;;  %vm2136_vm9 = vcmp.eq.f32.partialorder %v2135_v32, 8.507059e+37 }
 0x12b   :  { %v2114_v10 = vmul.f32 %v3868_v1, %v2113_v6  ;;  %v1390_v12 = vadd.f32 %v1389_v9, %v4533_v31 }
 0x12d   :  { %v3870_v13 = vpop.eup %3869  ;;  %v2115_v14 = vadd.f32 %v3868_v1, %v2114_v10  ;;  %v3752_v15 = vmul.f32 -1.442695, %v1390_v12 }
 0x12e   :  { %v3872_v16 = vpop.eup %3871  ;;  %v4573_v19 = vadd.f32 1.0, %v3870_v13  ;;  %v930_v21 = vpop.f32.mrf.mxu0 }
 0x12f   :  { %v2119_v22 = vsel %vm2118_vm4, %v3868_v1, %v2115_v14  ;;  %v2127_v23 = vmul.f32 %v3872_v16, %v2032_v2  ;;  %3873 = vpow2.f32 %v3752_v15  ;;  %v931_v29 = vadd.f32 %v4391_v54, %v930_v21  ;;  %v381_v15 = vld [vmem:[%s6968_s1 + $0x140] sm:$0xff] }
 0x130   :  { %v2124_v24 = vsel %vm2121_vm5, %v2123_v18, %v2119_v22  ;;  %3875 = vrcp.f32 %v4573_v19  ;;  %v4577_v25 = vpop.f32.mrf.mxu2  ;;  %vm2132_vm6 = vweird.f32 %v3872_v16  ;;  %v2152_v56 = vand.u32 2147483648, %v4573_v19 }
 0x131   :  { %v4579_v26 = vmul.f32 %v2124_v24, %v1592_v17  ;;  %v2128_v27 = vsub.f32 1.0, %v2127_v23  ;;  %v1099_v37 = vmax.f32 %v931_v29, 0.0  ;;  %vm2133_vm8 = vmor %vm2131_vm7, %vm2132_vm6  ;;  %v2150_v59 = vand.u32 2147483647, %v4573_v19  ;;  %v1045_v33 = vpop.f32.mrf.mxu3 }
 0x132   :  { %v1392_v35 = vpop.f32.mrf.mxu1  ;;  %vm2146_vm11 = vweird.f32 %v4573_v19  ;;  %v1597_v2 = vadd.f32 %v4566_v5, %v4569_v7  ;;  %v2153_v3 = vor.u32 1.1754944e-38, %v2152_v56  ;;  %v1599_v24 = vadd.f32 %v4577_v25, %v4569_v7 }
 0x133   :  { %v2129_v36 = vmul.f32 %v3872_v16, %v2128_v27  ;;  %v1393_v38 = vadd.f32 %v1392_v35, %v4533_v31  ;;  %v1168_v43 = vpack.c.bf16 %v1099_v37, %v1098_v34  ;;  %vm2151_vm13 = vcmp.eq.f32.partialorder %v2150_v59, 8.507059e+37 }
 0x135   :  { %v3874_v40 = vpop.eup %3873  ;;  %v2130_v41 = vadd.f32 %v3872_v16, %v2129_v36  ;;  %v3753_v42 = vmul.f32 -1.442695, %v1393_v38  ;;  %3679 = vmatmul.msk.bf16.gmra.mxu1 %vm1252_vm1, %v1168_v43  ;;  %3719 = vmatmul.msk.bf16.gmra.mxu2 %vm1252_vm1, %v1168_v43  ;;  %v1044_v38 = vadd.f32 %v4391_v54, %v1043_v0 }
 0x136   :  { %v3876_v44 = vpop.eup %3875  ;;  %v4591_v47 = vadd.f32 1.0, %v3874_v40  ;;  %v933_v48 = vpop.f32.mrf.mxu0 }
 0x137   :  { %v2134_v49 = vsel %vm2133_vm8, %v3872_v16, %v2130_v41  ;;  %v2142_v50 = vmul.f32 %v3876_v44, %v4573_v19  ;;  %3877 = vpow2.f32 %v3753_v42  ;;  %vm2147_vm10 = vweird.f32 %v3876_v44  ;;  %v382_v16 = vld [vmem:[%s6968_s1 + $0x148] sm:$0xff] }
 0x138   :  { %v2139_v51 = vsel %vm2136_vm9, %v2138_v46, %v2134_v49  ;;  %3879 = vrcp.f32 %v4591_v47  ;;  %v4597_v52 = vpop.f32.mrf.mxu2  ;;  %vm2148_vm12 = vmor %vm2146_vm11, %vm2147_vm10  ;;  %v934_v6 = vadd.f32 %v4391_v54, %v933_v48  ;;  %v2165_v17 = vand.u32 2147483647, %v4591_v47 }
 0x139   :  { %v4599_v53 = vmul.f32 %v2139_v51, %v1594_v45  ;;  %v2143_v55 = vsub.f32 1.0, %v2142_v50  ;;  %3616 = vmatmul.msk.bf16.gmra.mxu0 %vm748_vm0, %v680_v39  ;;  %v2167_v18 = vand.u32 2147483648, %v4591_v47  ;;  %v681_v27 = vpack.c.bf16 %v382_v16, %v381_v15  ;;  %v1048_v59 = vpop.f32.mrf.mxu3 }
 0x13a   :  { %v1394_v57 = vpop.f32.mrf.mxu1  ;;  %v1100_v19 = vmax.f32 %v934_v6, 0.0  ;;  %vm2161_vm15 = vweird.f32 %v4591_v47  ;;  %v1046_v39 = vadd.f32 %v4391_v54, %v1045_v33  ;;  %vm2166_vm3 = vcmp.eq.f32.partialorder %v2165_v17, 8.507059e+37 }
 0x13b   :  { %v2144_v58 = vmul.f32 %v3876_v44, %v2143_v55  ;;  %v1395_v60 = vadd.f32 %v1394_v57, %v4533_v31  ;;  %v2168_v35 = vor.u32 1.1754944e-38, %v2167_v18 }
 0x13c   :  { %v1145_v48 = vmax.f32 %v1046_v39, 0.0 }
 0x13d   :  { %v3878_v61 = vpop.eup %3877  ;;  %v2145_v62 = vadd.f32 %v3876_v44, %v2144_v58  ;;  %v3754_v63 = vmul.f32 -1.442695, %v1395_v60 }
 0x13e   :  { %v3880_v1 = vpop.eup %3879  ;;  %v4608_v4 = vadd.f32 1.0, %v3878_v61  ;;  %v935_v8 = vpop.f32.mrf.mxu0  ;;  %v1602_v61 = vadd.f32 %v4597_v52, %v4569_v7 }
 0x13f   :  { %v2149_v9 = vsel %vm2148_vm12, %v3876_v44, %v2145_v62  ;;  %v2157_v10 = vmul.f32 %v3880_v1, %v4591_v47  ;;  %3881 = vpow2.f32 %v3754_v63  ;;  %v936_v14 = vadd.f32 %v4391_v54, %v935_v8 }
 0x140   :  { %v2154_v11 = vsel %vm2151_vm13, %v2153_v3, %v2149_v9  ;;  %3883 = vrcp.f32 %v4608_v4  ;;  %v4613_v12 = vpop.f32.mrf.mxu2  ;;  %vm2162_vm14 = vweird.f32 %v3880_v1  ;;  %v2182_v45 = vand.u32 2147483648, %v4608_v4 }
 0x141   :  { %v4615_v13 = vmul.f32 %v2154_v11, %v1597_v2  ;;  %v2158_v5 = vsub.f32 1.0, %v2157_v10  ;;  %v1101_v22 = vmax.f32 %v936_v14, 0.0  ;;  %vm2163_vm2 = vmor %vm2161_vm15, %vm2162_vm14  ;;  %v1144_v47 = vmax.f32 %v1044_v38, 0.0  ;;  %v383_v10 = vld [vmem:[%s6968_s1 + $0x150] sm:$0xff]  ;;  %v384_v11 = vld [vmem:[%s6968_s1 + $0x158] sm:$0xff] }
 0x142   :  { %v1397_v20 = vpop.f32.mrf.mxu1  ;;  %v2180_v50 = vand.u32 2147483647, %v4608_v4  ;;  %vm2176_vm5 = vweird.f32 %v4608_v4  ;;  %v2183_v62 = vor.u32 1.1754944e-38, %v2182_v45 }
 0x143   :  { %v2159_v21 = vmul.f32 %v3880_v1, %v2158_v5  ;;  %v1398_v23 = vadd.f32 %v1397_v20, %v4533_v31  ;;  %v1169_v32 = vpack.c.bf16 %v1101_v22, %v1100_v19  ;;  %v4646_v55 = vpack.c.bf16 %v1145_v48, %v1144_v47 }
 0x144   :  { %vm2181_vm7 = vcmp.eq.f32.partialorder %v2180_v50, 8.507059e+37  ;;  %v1604_v20 = vadd.f32 %v4613_v12, %v4569_v7 }
 0x145   :  { %v3882_v29 = vpop.eup %3881  ;;  %v2160_v30 = vadd.f32 %v3880_v1, %v2159_v21  ;;  %v3755_v28 = vmul.f32 -1.442695, %v1398_v23  ;;  %3680 = vmatmul.msk.bf16.gmra.mxu1 %vm1252_vm1, %v1169_v32  ;;  %3720 = vmatmul.msk.bf16.gmra.mxu2 %vm1252_vm1, %v1169_v32  ;;  %v682_v21 = vpack.c.bf16 %v384_v11, %v383_v10  ;;  %v385_v10 = vld [vmem:[%s6968_s1 + $0x160] sm:$0xff]  ;;  %v386_v11 = vld [vmem:[%s6968_s1 + $0x168] sm:$0xff] }
 0x146   :  { %v3884_v34 = vpop.eup %3883  ;;  %v4630_v36 = vadd.f32 1.0, %v3882_v29  ;;  %v938_v37 = vpop.f32.mrf.mxu0  ;;  %3702 = vmatmul.msk.bf16.vlgmr.msrb.gmra.mxu3 %vm1252_vm1, %v4646_v55 }
 0x147   :  { %v2164_v40 = vsel %vm2163_vm2, %v3880_v1, %v2160_v30  ;;  %v2172_v25 = vmul.f32 %v3884_v34, %v4608_v4  ;;  %3885 = vpow2.f32 %v3755_v28  ;;  %vm2177_vm4 = vweird.f32 %v3884_v34  ;;  %v1050_v29 = vpop.f32.mrf.mxu3 }
 0x148   :  { %v2169_v41 = vsel %vm2166_vm3, %v2168_v35, %v2164_v40  ;;  %3887 = vrcp.f32 %v4630_v36  ;;  %v4638_v42 = vpop.f32.mrf.mxu2  ;;  %vm2178_vm6 = vmor %vm2176_vm5, %vm2177_vm4  ;;  %v939_v0 = vadd.f32 %v4391_v54, %v938_v37  ;;  %v2195_v5 = vand.u32 2147483647, %v4630_v36 }
 0x149   :  { %v4640_v43 = vmul.f32 %v2169_v41, %v1599_v24  ;;  %v2173_v44 = vsub.f32 1.0, %v2172_v25  ;;  %3617 = vmatmul.msk.bf16.gmra.mxu0 %vm748_vm0, %v681_v27  ;;  %v2197_v14 = vand.u32 2147483648, %v4630_v36  ;;  %vm2191_vm9 = vweird.f32 %v4630_v36 }
 0x14a   :  { %v1399_v46 = vpop.f32.mrf.mxu1  ;;  %v1102_v15 = vmax.f32 %v939_v0, 0.0  ;;  %v1051_v35 = vadd.f32 %v4391_v54, %v1050_v29  ;;  %vm2196_vm11 = vcmp.eq.f32.partialorder %v2195_v5, 8.507059e+37 }
 0x14b   :  { %v2174_v49 = vmul.f32 %v3884_v34, %v2173_v44  ;;  %v1400_v51 = vadd.f32 %v1399_v46, %v4533_v31  ;;  %v2198_v28 = vor.u32 1.1754944e-38, %v2197_v14 }
 0x14c   :  { %v1147_v45 = vmax.f32 %v1051_v35, 0.0 }
 0x14d   :  { %v3886_v56 = vpop.eup %3885  ;;  %v2175_v57 = vadd.f32 %v3884_v34, %v2174_v49  ;;  %v3756_v58 = vmul.f32 -1.442695, %v1400_v51 }
 0x14e   :  { %v3888_v60 = vpop.eup %3887  ;;  %v4651_v63 = vadd.f32 1.0, %v3886_v56  ;;  %v940_v1 = vpop.f32.mrf.mxu0 }
 0x14f   :  { %v2179_v2 = vsel %vm2178_vm6, %v3884_v34, %v2175_v57  ;;  %v2187_v3 = vmul.f32 %v3888_v60, %v4630_v36  ;;  %3889 = vpow2.f32 %v3756_v58  ;;  %v941_v9 = vadd.f32 %v4391_v54, %v940_v1  ;;  %v1053_v51 = vpop.f32.mrf.mxu3 }
 0x150   :  { %v2184_v4 = vsel %vm2181_vm7, %v2183_v62, %v2179_v2  ;;  %3891 = vrcp.f32 %v4651_v63  ;;  %v4658_v6 = vpop.f32.mrf.mxu2  ;;  %vm2192_vm8 = vweird.f32 %v3888_v60  ;;  %v1049_v34 = vadd.f32 %v4391_v54, %v1048_v59 }
 0x151   :  { %v4660_v52 = vmul.f32 %v2184_v4, %v1602_v61  ;;  %v2188_v8 = vsub.f32 1.0, %v2187_v3  ;;  %v1103_v18 = vmax.f32 %v941_v9, 0.0  ;;  %vm2193_vm10 = vmor %vm2191_vm9, %vm2192_vm8  ;;  %v2212_v25 = vand.u32 2147483648, %v4651_v63 }
 0x152   :  { %v1402_v16 = vpop.f32.mrf.mxu1  ;;  %v1146_v44 = vmax.f32 %v1049_v34, 0.0  ;;  %v2210_v47 = vand.u32 2147483647, %v4651_v63  ;;  %vm2206_vm13 = vweird.f32 %v4651_v63  ;;  %v1607_v57 = vadd.f32 %v4638_v42, %v4569_v7 }
 0x153   :  { %v2189_v17 = vmul.f32 %v3888_v60, %v2188_v8  ;;  %v1403_v19 = vadd.f32 %v1402_v16, %v4533_v31  ;;  %v1170_v24 = vpack.c.bf16 %v1103_v18, %v1102_v15  ;;  %v2213_v58 = vor.u32 1.1754944e-38, %v2212_v25 }
 0x154   :  { %v4690_v48 = vpack.c.bf16 %v1147_v45, %v1146_v44  ;;  %vm2211_vm15 = vcmp.eq.f32.partialorder %v2210_v47, 8.507059e+37 }
 0x155   :  { %v3890_v22 = vpop.eup %3889  ;;  %v2190_v23 = vadd.f32 %v3888_v60, %v2189_v17  ;;  %v3757_v27 = vmul.f32 -1.442695, %v1403_v19  ;;  %3681 = vmatmul.msk.bf16.gmra.mxu1 %vm1252_vm1, %v1170_v24  ;;  %3721 = vmatmul.msk.bf16.gmra.mxu2 %vm1252_vm1, %v1170_v24  ;;  %v683_v19 = vpack.c.bf16 %v386_v11, %v385_v10 }
 0x156   :  { %v3892_v30 = vpop.eup %3891  ;;  %v4675_v32 = vadd.f32 1.0, %v3890_v22  ;;  %v943_v33 = vpop.f32.mrf.mxu0  ;;  %6988 = vst [vmem:[#allocation6_spill] sm:$0xff] %v4690_v48  ;;  %3703 = vmatmul.msk.bf16.gmra.mxu3 %vm1252_vm1, %v4690_v48 }
 0x157   :  { %v2194_v37 = vsel %vm2193_vm10, %v3888_v60, %v2190_v23  ;;  %v2202_v12 = vmul.f32 %v3892_v30, %v4651_v63  ;;  %3893 = vpow2.f32 %v3757_v27  ;;  %vm2207_vm12 = vweird.f32 %v3892_v30 }
 0x158   :  { %v2199_v36 = vsel %vm2196_vm11, %v2198_v28, %v2194_v37  ;;  %3895 = vrcp.f32 %v4675_v32  ;;  %v4683_v38 = vpop.f32.mrf.mxu2  ;;  %vm2208_vm14 = vmor %vm2206_vm13, %vm2207_vm12  ;;  %v944_v0 = vadd.f32 %v4391_v54, %v943_v33  ;;  %v2225_v4 = vand.u32 2147483647, %v4675_v32 }
 0x159   :  { %v4685_v39 = vmul.f32 %v2199_v36, %v1604_v20  ;;  %v2203_v40 = vsub.f32 1.0, %v2202_v12  ;;  %3618 = vmatmul.msk.bf16.gmra.mxu0 %vm748_vm0, %v682_v21  ;;  %v2227_v8 = vand.u32 2147483648, %v4675_v32  ;;  %vm2221_vm3 = vweird.f32 %v4675_v32  ;;  %v1055_v20 = vpop.f32.mrf.mxu3 }
 0x15a   :  { %v1404_v41 = vpop.f32.mrf.mxu1  ;;  %v1104_v14 = vmax.f32 %v944_v0, 0.0  ;;  %v1054_v27 = vadd.f32 %v4391_v54, %v1053_v51  ;;  %v1056_v29 = vadd.f32 %v4391_v54, %v1055_v20  ;;  %vm2226_vm5 = vcmp.eq.f32.partialorder %v2225_v4, 8.507059e+37  ;;  %v387_v4 = vld [vmem:[%s6968_s1 + $0x170] sm:$0xff] }
 0x15b   :  { %v2204_v46 = vmul.f32 %v3892_v30, %v2203_v40  ;;  %v1405_v16 = vadd.f32 %v1404_v41, %v4533_v31  ;;  %v2228_v22 = vor.u32 1.1754944e-38, %v2227_v8 }
 0x15c   :  { %v1148_v25 = vmax.f32 %v1054_v27, 0.0  ;;  %v1149_v41 = vmax.f32 %v1056_v29, 0.0 }
 0x15d   :  { %v3894_v49 = vpop.eup %3893  ;;  %v2205_v50 = vadd.f32 %v3892_v30, %v2204_v46  ;;  %v3758_v34 = vmul.f32 -1.442695, %v1405_v16 }
 0x15e   :  { %v3896_v56 = vpop.eup %3895  ;;  %v4695_v59 = vadd.f32 1.0, %v3894_v49  ;;  %v945_v60 = vpop.f32.mrf.mxu0  ;;  %v4733_v47 = vpack.c.bf16 %v1149_v41, %v1148_v25 }
 0x15f   :  { %v2209_v61 = vsel %vm2208_vm14, %v3892_v30, %v2205_v50  ;;  %v2217_v62 = vmul.f32 %v3896_v56, %v4675_v32  ;;  %v946_v3 = vadd.f32 %v4391_v54, %v945_v60  ;;  %vm2222_vm2 = vweird.f32 %v3896_v56 }
 0x160   :  { %v2214_v63 = vsel %vm2211_vm15, %v2213_v58, %v2209_v61  ;;  %3897 = vrcp.f32 %v4695_v59  ;;  %v4702_v1 = vpop.f32.mrf.mxu2  ;;  %vm2223_vm4 = vmor %vm2221_vm3, %vm2222_vm2  ;;  %v1609_v30 = vadd.f32 %v4658_v6, %v4569_v7  ;;  %v2242_v36 = vand.u32 2147483648, %v4695_v59  ;;  %6989 = vst [vmem:[#allocation7_spill] sm:$0xff] %v4733_v47 }
 0x161   :  { %v4704_v42 = vmul.f32 %v2214_v63, %v1607_v57  ;;  %v2218_v2 = vsub.f32 1.0, %v2217_v62  ;;  %v1105_v15 = vmax.f32 %v946_v3, 0.0  ;;  %v2240_v45 = vand.u32 2147483647, %v4695_v59  ;;  %v1058_v50 = vpop.f32.mrf.mxu3 }
 0x162   :  { %v1407_v9 = vpop.f32.mrf.mxu1  ;;  %3899 = vpow2.f32 %v3758_v34  ;;  %vm2236_vm7 = vweird.f32 %v4695_v59  ;;  %v2243_v51 = vor.u32 1.1754944e-38, %v2242_v36  ;;  %v1612_v58 = vadd.f32 %v4683_v38, %v4569_v7  ;;  %v388_v38 = vld [vmem:[%s6968_s1 + $0x178] sm:$0xff]  ;;  %v4779_v36 = vld [vmem:[%s6970_s3] ss:$0 sm:$0xff] }
 0x163   :  { %v2219_v5 = vmul.f32 %v3896_v56, %v2218_v2  ;;  %v1171_v18 = vpack.c.bf16 %v1105_v15, %v1104_v14  ;;  %v1408_v23 = vadd.f32 %v1407_v9, %v4533_v31  ;;  %vm2241_vm9 = vcmp.eq.f32.partialorder %v2240_v45, 8.507059e+37 }
 0x164   :  { %v684_v15 = vpack.c.bf16 %v388_v38, %v387_v4 }
 0x165   :  { %v2220_v17 = vadd.f32 %v3896_v56, %v2219_v5  ;;  %3682 = vmatmul.msk.bf16.gmra.mxu1 %vm1252_vm1, %v1171_v18  ;;  %3722 = vmatmul.msk.bf16.gmra.mxu2 %vm1252_vm1, %v1171_v18  ;;  %v3759_v6 = vmul.f32 -1.442695, %v1408_v23  ;;  %v1059_v18 = vadd.f32 %v4391_v54, %v1058_v50 }
 0x166   :  { %v3898_v21 = vpop.eup %3897  ;;  %v948_v24 = vpop.f32.mrf.mxu0  ;;  %3704 = vmatmul.msk.bf16.gmra.mxu3 %vm1252_vm1, %v4733_v47 }
 0x167   :  { %v2224_v28 = vsel %vm2223_vm4, %v3896_v56, %v2220_v17  ;;  %v2232_v32 = vmul.f32 %v3898_v21, %v4695_v59  ;;  %vm2237_vm6 = vweird.f32 %v3898_v21  ;;  %3901 = vpow2.f32 %v3759_v6 }
 0x168   :  { %v2229_v33 = vsel %vm2226_vm5, %v2228_v22, %v2224_v28  ;;  %v4725_v35 = vpop.f32.mrf.mxu2  ;;  %vm2238_vm8 = vmor %vm2236_vm7, %vm2237_vm6  ;;  %v949_v61 = vadd.f32 %v4391_v54, %v948_v24  ;;  %v3900_v2 = vpop.eup %3899  ;;  %v1150_v27 = vmax.f32 %v1059_v18, 0.0 }
 0x169   :  { %v4727_v37 = vmul.f32 %v2229_v33, %v1609_v30  ;;  %v2233_v12 = vsub.f32 1.0, %v2232_v32  ;;  %3619 = vmatmul.msk.bf16.gmra.mxu0 %vm748_vm0, %v683_v19  ;;  %v4752_v11 = vadd.f32 1.0, %v3900_v2  ;;  %v1060_v16 = vpop.f32.mrf.mxu3 }
 0x16a   :  { %v1409_v40 = vpop.f32.mrf.mxu1  ;;  %v1106_v8 = vmax.f32 %v949_v61, 0.0  ;;  %v1061_v19 = vadd.f32 %v4391_v54, %v1060_v16 }
 0x16b   :  { %v2234_v44 = vmul.f32 %v3898_v21, %v2233_v12  ;;  %v1410_v46 = vadd.f32 %v1409_v40, %v4533_v31  ;;  %vm2251_vm11 = vweird.f32 %v4752_v11 }
 0x16c   :  { %v1151_v29 = vmax.f32 %v1061_v19, 0.0 }
 0x16d   :  { %v2235_v49 = vadd.f32 %v3898_v21, %v2234_v44  ;;  %v3760_v56 = vmul.f32 -1.442695, %v1410_v46  ;;  %v3902_v10 = vpop.eup %3901  ;;  %v389_v46 = vld [vmem:[%s6968_s1 + $0x180] sm:$0xff] }
 0x16e   :  { %v950_v57 = vpop.f32.mrf.mxu0  ;;  %v4757_v20 = vadd.f32 1.0, %v3902_v10  ;;  %v4769_v28 = vpack.c.bf16 %v1151_v29, %v1150_v27 }
 0x16f   :  { %v2239_v60 = vsel %vm2238_vm8, %v3898_v21, %v2235_v49  ;;  %v951_v63 = vadd.f32 %v4391_v54, %v950_v57  ;;  %3903 = vpow2.f32 %v3760_v56  ;;  %v390_v49 = vld [vmem:[%s6968_s1 + $0x188] sm:$0xff] }
 0x170   :  { %v2244_v62 = vsel %vm2241_vm9, %v2243_v51, %v2239_v60  ;;  %v4741_v0 = vpop.f32.mrf.mxu2  ;;  %3905 = vrcp.f32 %v4752_v11  ;;  %6990 = vst [vmem:[#allocation8_spill] sm:$0xff] %v4769_v28  ;;  %vm2266_vm14 = vweird.f32 %v4757_v20 }
 0x171   :  { %v4743_v59 = vmul.f32 %v2244_v62, %v1612_v58  ;;  %v1107_v9 = vmax.f32 %v951_v63, 0.0  ;;  %3907 = vrcp.f32 %v4757_v20  ;;  %v1063_v33 = vpop.f32.mrf.mxu3  ;;  %v685_v63 = vpack.c.bf16 %v390_v49, %v389_v46 }
 0x172   :  { %v1412_v3 = vpop.f32.mrf.mxu1 }
 0x173   :  { %v1172_v5 = vpack.c.bf16 %v1107_v9, %v1106_v8  ;;  %v1413_v14 = vadd.f32 %v1412_v3, %v4533_v31  ;;  %v1064_v9 = vadd.f32 %v4779_v36, %v1063_v33 }
 0x175   :  { %3683 = vmatmul.msk.bf16.gmra.mxu1 %vm1252_vm1, %v1172_v5  ;;  %3723 = vmatmul.msk.bf16.gmra.mxu2 %vm1252_vm1, %v1172_v5  ;;  %v3904_v21 = vpop.eup %3903  ;;  %v3761_v23 = vmul.f32 -1.442695, %v1413_v14  ;;  %v1152_v19 = vmax.f32 %v1064_v9, 0.0 }
 0x176   :  { %v953_v17 = vpop.f32.mrf.mxu0  ;;  %v4766_v54 = vadd.f32 1.0, %v3904_v21  ;;  %3705 = vmatmul.msk.bf16.gmra.mxu3 %vm1252_vm1, %v4769_v28  ;;  %v4773_v12 = vpop.eup %3905 }
 0x177   :  { %3909 = vpow2.f32 %v3761_v23  ;;  %v954_v6 = vadd.f32 %v4779_v36, %v953_v17  ;;  %v4784_v25 = vpop.eup %3907  ;;  %v2247_v44 = vmul.f32 %v4773_v12, %v4752_v11  ;;  %vm2252_vm10 = vweird.f32 %v4773_v12 }
 0x178   :  { %v4761_v22 = vpop.f32.mrf.mxu2  ;;  %3911 = vrcp.f32 %v4766_v54  ;;  %v2262_v58 = vmul.f32 %v4784_v25, %v4757_v20  ;;  %vm2267_vm12 = vweird.f32 %v4784_v25  ;;  %vm4843_vm13 = vmor %vm2251_vm11, %vm2252_vm10  ;;  %vm2281_vm2 = vweird.f32 %v4766_v54 }
 0x179   :  { %3620 = vmatmul.msk.bf16.gmra.mxu0 %vm748_vm0, %v684_v15  ;;  %v1108_v51 = vmax.f32 %v954_v6, 0.0  ;;  %v1065_v2 = vpop.f32.mrf.mxu3  ;;  %v2248_v4 = vsub.f32 1.0, %v2247_v44  ;;  %vm4873_vm3 = vmor %vm2266_vm14, %vm2267_vm12 }
 0x17a   :  { %v1414_v24 = vpop.f32.mrf.mxu1  ;;  %v1066_v10 = vadd.f32 %v4779_v36, %v1065_v2  ;;  %v2263_v5 = vsub.f32 1.0, %v2262_v58  ;;  %v391_v2 = vld [vmem:[%s6968_s1 + $0x190] sm:$0xff]  ;;  %v1614_v58 = vadd.f32 %v4702_v1, %v4569_v7 }
 0x17b   :  { %v1415_v30 = vadd.f32 %v1414_v24, %v4533_v31  ;;  %v2249_v17 = vmul.f32 %v4773_v12, %v2248_v4 }
 0x17c   :  { %v1153_v21 = vmax.f32 %v1066_v10, 0.0  ;;  %v2264_v24 = vmul.f32 %v4784_v25, %v2263_v5 }
 0x17d   :  { %v3762_v32 = vmul.f32 -1.442695, %v1415_v30  ;;  %v3910_v50 = vpop.eup %3909  ;;  %v2270_v30 = vand.u32 2147483647, %v4757_v20  ;;  %v4822_v6 = vadd.f32 %v4773_v12, %v2249_v17 }
 0x17e   :  { %v955_v34 = vpop.f32.mrf.mxu0  ;;  %v4798_v60 = vpop.eup %3911  ;;  %v4800_v38 = vadd.f32 1.0, %v3910_v50  ;;  %v4817_v27 = vpack.c.bf16 %v1153_v21, %v1152_v19  ;;  %v2285_v21 = vand.u32 2147483647, %v4766_v54 }
 0x17f   :  { %3913 = vpow2.f32 %v3762_v32  ;;  %v956_v41 = vadd.f32 %v4779_v36, %v955_v34  ;;  %v2277_v15 = vmul.f32 %v4798_v60, %v4766_v54  ;;  %vm4848_vm15 = vcmp.eq.f32.partialorder %v2270_v30, 8.507059e+37 }
 0x180   :  { %v4782_v40 = vpop.f32.mrf.mxu2  ;;  %6991 = vst [vmem:[#allocation9_spill] sm:$0xff] %v4817_v27  ;;  %vm2282_vm4 = vweird.f32 %v4798_v60  ;;  %vm4908_vm6 = vcmp.eq.f32.partialorder %v2285_v21, 8.507059e+37  ;;  %vm2296_vm7 = vweird.f32 %v4800_v38 }
 0x181   :  { %v1109_v56 = vmax.f32 %v956_v41, 0.0  ;;  %v2278_v32 = vsub.f32 1.0, %v2277_v15  ;;  %v1068_v34 = vpop.f32.mrf.mxu3  ;;  %v2272_v41 = vand.u32 2147483648, %v4757_v20  ;;  %vm4904_vm5 = vmor %vm2281_vm2, %vm2282_vm4 }
 0x182   :  { %v1417_v45 = vpop.f32.mrf.mxu1 }
 0x183   :  { %v1418_v57 = vadd.f32 %v1417_v45, %v4533_v31  ;;  %v1173_v61 = vpack.c.bf16 %v1109_v56, %v1108_v51  ;;  %v2265_v56 = vadd.f32 %v4784_v25, %v2264_v24  ;;  %v2273_v4 = vor.u32 1.1754944e-38, %v2272_v41 }
 0x185   :  { %v3763_v62 = vmul.f32 -1.442695, %v1418_v57  ;;  %v3914_v3 = vpop.eup %3913  ;;  %3684 = vmatmul.msk.bf16.gmra.mxu1 %vm1252_vm1, %v1173_v61  ;;  %3724 = vmatmul.msk.bf16.gmra.mxu2 %vm1252_vm1, %v1173_v61 }
 0x186   :  { %v958_v8 = vpop.f32.mrf.mxu0  ;;  %v4810_v16 = vadd.f32 1.0, %v3914_v3  ;;  %3706 = vmatmul.msk.bf16.gmra.mxu3 %vm1252_vm1, %v4817_v27  ;;  %v392_v3 = vld [vmem:[%s6968_s1 + $0x198] sm:$0xff] }
 0x187   :  { %3915 = vpow2.f32 %v3763_v62  ;;  %v959_v49 = vadd.f32 %v4779_v36, %v958_v8  ;;  %v2279_v62 = vmul.f32 %v4798_v60, %v2278_v32  ;;  %v4866_v8 = vadd.f32 %v4741_v0, %v4569_v7 }
 0x188   :  { %v4806_v14 = vpop.f32.mrf.mxu2  ;;  %3917 = vrcp.f32 %v4800_v38  ;;  %v2269_v0 = vsel %vm4873_vm3, %v4784_v25, %v2265_v56  ;;  %v686_v24 = vpack.c.bf16 %v392_v3, %v391_v2  ;;  %v1069_v56 = vadd.f32 %v4779_v36, %v1068_v34 }
 0x189   :  { %3621 = vmatmul.msk.bf16.gmra.mxu0 %vm748_vm0, %v685_v63  ;;  %3919 = vrcp.f32 %v4810_v16  ;;  %v1110_v17 = vmax.f32 %v959_v49, 0.0  ;;  %v2280_v30 = vadd.f32 %v4798_v60, %v2279_v62  ;;  %v1070_v41 = vpop.f32.mrf.mxu3  ;;  %v2302_v62 = vand.u32 2147483648, %v4800_v38 }
 0x18a   :  { %v1419_v18 = vpop.f32.mrf.mxu1  ;;  %v1071_v2 = vadd.f32 %v4779_v36, %v1070_v41  ;;  %v2317_v21 = vand.u32 2147483648, %v4810_v16  ;;  %vm2311_vm9 = vweird.f32 %v4810_v16 }
 0x18b   :  { %v1420_v23 = vadd.f32 %v1419_v18, %v4533_v31 }
 0x18c   :  { %v1155_v41 = vmax.f32 %v1071_v2, 0.0 }
 0x18d   :  { %v3916_v29 = vpop.eup %3915  ;;  %v3764_v33 = vmul.f32 -1.442695, %v1420_v23  ;;  %v2287_v23 = vand.u32 2147483648, %v4766_v54  ;;  %v4921_v54 = vsel %vm4848_vm15, %v2273_v4, %v2269_v0  ;;  %v4931_v4 = vor.u32 1.1754944e-38, %v2302_v62 }
 0x18e   :  { %v4826_v44 = vadd.f32 1.0, %v3916_v29  ;;  %v960_v45 = vpop.f32.mrf.mxu0  ;;  %v4833_v50 = vpop.eup %3917 }
 0x18f   :  { %3921 = vpow2.f32 %v3764_v33  ;;  %v961_v63 = vadd.f32 %v4779_v36, %v960_v45  ;;  %v4869_v10 = vpop.eup %3919  ;;  %v2292_v15 = vmul.f32 %v4833_v50, %v4800_v38  ;;  %vm2297_vm8 = vweird.f32 %v4833_v50 }
 0x190   :  { %3923 = vrcp.f32 %v4826_v44  ;;  %v4839_v57 = vpop.f32.mrf.mxu2  ;;  %v2307_v49 = vmul.f32 %v4869_v10, %v4810_v16  ;;  %vm2312_vm10 = vweird.f32 %v4869_v10  ;;  %vm2326_vm14 = vweird.f32 %v4826_v44  ;;  %vm4997_vm2 = vmor %vm2296_vm7, %vm2297_vm8 }
 0x191   :  { %v1111_v18 = vmax.f32 %v961_v63, 0.0  ;;  %v2293_v3 = vsub.f32 1.0, %v2292_v15  ;;  %v2288_v15 = vor.u32 1.1754944e-38, %v2287_v23  ;;  %vm5022_vm7 = vmor %vm2311_vm9, %vm2312_vm10 }
 0x192   :  { %v1422_v9 = vpop.f32.mrf.mxu1  ;;  %v2308_v23 = vsub.f32 1.0, %v2307_v49 }
 0x193   :  { %v1423_v19 = vadd.f32 %v1422_v9, %v4533_v31  ;;  %v1174_v32 = vpack.c.bf16 %v1111_v18, %v1110_v17  ;;  %v4914_v17 = vadd.f32 %v4761_v22, %v4569_v7  ;;  %v2300_v22 = vand.u32 2147483647, %v4800_v38 }
 0x194   :  { %v2294_v61 = vmul.f32 %v4833_v50, %v2293_v3  ;;  %v4957_v3 = vor.u32 1.1754944e-38, %v2317_v21 }
 0x195   :  { %v3922_v29 = vpop.eup %3921  ;;  %v3765_v33 = vmul.f32 -1.442695, %v1423_v19  ;;  %3685 = vmatmul.msk.bf16.gmra.mxu1 %vm1252_vm1, %v1174_v32  ;;  %3725 = vmatmul.msk.bf16.gmra.mxu2 %vm1252_vm1, %v1174_v32  ;;  %v2284_v19 = vsel %vm4904_vm5, %v4798_v60, %v2280_v30  ;;  %v4935_v60 = vadd.f32 %v4782_v40, %v4569_v7  ;;  %v4946_v30 = vld [vmem:[%s6968_s1 + $0x1a8] sm:$0xff]  ;;  %v2315_v40 = vand.u32 2147483647, %v4810_v16 }
 0x196   :  { %v4887_v45 = vpop.eup %3923  ;;  %v4891_v63 = vadd.f32 1.0, %v3922_v29  ;;  %v963_v25 = vpop.f32.mrf.mxu0  ;;  %v4950_v49 = vsel %vm4908_vm6, %v2288_v15, %v2284_v19  ;;  %v2295_v21 = vadd.f32 %v4833_v50, %v2294_v61  ;;  %vm4973_vm11 = vcmp.eq.f32.partialorder %v2300_v22, 8.507059e+37 }
 0x197   :  { %v2322_v9 = vmul.f32 %v4887_v45, %v4826_v44  ;;  %3925 = vpow2.f32 %v3765_v33  ;;  %v1154_v33 = vmax.f32 %v1069_v56, 0.0  ;;  %v964_v15 = vadd.f32 %v4779_v36, %v963_v25 }
 0x198   :  { %3927 = vrcp.f32 %v4891_v63  ;;  %v4917_v18 = vpop.f32.mrf.mxu2  ;;  %vm4977_vm12 = vcmp.eq.f32.partialorder %v2315_v40, 8.507059e+37  ;;  %vm2327_vm15 = vweird.f32 %v4887_v45  ;;  %v2345_v51 = vand.u32 2147483647, %v4891_v63 }
 0x199   :  { %v2323_v29 = vsub.f32 1.0, %v2322_v9  ;;  %3622 = vmatmul.msk.bf16.gmra.mxu0 %vm748_vm0, %v686_v24  ;;  %v4941_v24 = vld [vmem:[%s6968_s1 + $0x1a0] sm:$0xff]  ;;  %v4954_v56 = vpack.c.bf16 %v1155_v41, %v1154_v33  ;;  %v4968_v41 = vpop.f32.mrf.mxu3  ;;  %v2347_v33 = vand.u32 2147483648, %v4891_v63  ;;  %v1112_v46 = vmax.f32 %v964_v15, 0.0  ;;  %vm5007_vm4 = vmor %vm2326_vm14, %vm2327_vm15 }
 0x19a   :  { %v1424_v32 = vpop.f32.mrf.mxu1  ;;  %vm2341_vm6 = vweird.f32 %v4891_v63  ;;  %vm2346_vm9 = vcmp.eq.f32.partialorder %v2345_v51, 8.507059e+37  ;;  %v7015_v51 = vand.u32 2147483647, %v4752_v11 }
 0x19b   :  { %v1425_v0 = vadd.f32 %v1424_v32, %v4533_v31  ;;  %7002 = vst [vmem:[#allocation10_spill] sm:$0xff] %v4954_v56  ;;  %v2324_v62 = vmul.f32 %v4887_v45, %v2323_v29  ;;  %v2309_v32 = vmul.f32 %v4869_v10, %v2308_v23  ;;  %3707 = vmatmul.msk.bf16.gmra.mxu3 %vm1252_vm1, %v4954_v56  ;;  %v2348_v16 = vor.u32 1.1754944e-38, %v2347_v33 }
 0x19c   :  { %vm5047_vm10 = vcmp.eq.f32.partialorder %v7015_v51, 8.507059e+37  ;;  %v1074_v23 = vadd.f32 %v4779_v36, %v4968_v41  ;;  %v396_v51 = vld [vmem:[%s6968_s1 + $0x1b8] sm:$0xff] }
 0x19d   :  { %v3926_v2 = vpop.eup %3925  ;;  %v3766_v9 = vmul.f32 -1.442695, %v1425_v0  ;;  %v2330_v0 = vand.u32 2147483647, %v4826_v44  ;;  %v2310_v20 = vadd.f32 %v4869_v10, %v2309_v32  ;;  %v2299_v32 = vsel %vm4997_vm2, %v4833_v50, %v2295_v21 }
 0x19e   :  { %v3928_v5 = vpop.eup %3927  ;;  %v4961_v34 = vadd.f32 1.0, %v3926_v2  ;;  %v965_v19 = vpop.f32.mrf.mxu0  ;;  %v2332_v2 = vand.u32 2147483648, %v4826_v44 }
 0x19f   :  { %v2337_v29 = vmul.f32 %v3928_v5, %v4891_v63  ;;  %3929 = vpow2.f32 %v3766_v9  ;;  %v2325_v9 = vadd.f32 %v4887_v45, %v2324_v62  ;;  %v966_v40 = vadd.f32 %v4779_v36, %v965_v19 }
 0x1a0   :  { %3931 = vrcp.f32 %v4961_v34  ;;  %v4985_v61 = vpop.f32.mrf.mxu2  ;;  %vm2342_vm3 = vweird.f32 %v3928_v5  ;;  %vm5011_vm5 = vcmp.eq.f32.partialorder %v2330_v0, 8.507059e+37  ;;  %v2333_v63 = vor.u32 1.1754944e-38, %v2332_v2 }
 0x1a1   :  { %v2338_v22 = vsub.f32 1.0, %v2337_v29  ;;  %v1113_v29 = vmax.f32 %v966_v40, 0.0  ;;  %v2329_v44 = vsel %vm5007_vm4, %v4887_v45, %v2325_v9  ;;  %vm2343_vm8 = vmor %vm2341_vm6, %vm2342_vm3  ;;  %v2304_v2 = vsel %vm4973_vm11, %v4931_v4, %v2299_v32 }
 0x1a2   :  { %v1427_v56 = vpop.f32.mrf.mxu1 }
 0x1a3   :  { %v2339_v62 = vmul.f32 %v3928_v5, %v2338_v22  ;;  %v1428_v19 = vadd.f32 %v1427_v56, %v4533_v31  ;;  %v1629_v22 = vadd.f32 %v4839_v57, %v4569_v7  ;;  %v1175_v21 = vpack.c.bf16 %v1113_v29, %v1112_v46  ;;  %v1075_v46 = vpop.f32.mrf.mxu3 }
 0x1a4   :  { %v2314_v57 = vsel %vm5022_vm7, %v4869_v10, %v2310_v20  ;;  %v1627_v20 = vadd.f32 %v4806_v14, %v4569_v7  ;;  %v2334_v10 = vsel %vm5011_vm5, %v2333_v63, %v2329_v44  ;;  %v2360_v29 = vand.u32 2147483647, %v4961_v34 }
 0x1a5   :  { %v3930_v56 = vpop.eup %3929  ;;  %v2340_v50 = vadd.f32 %v3928_v5, %v2339_v62  ;;  %v3767_v0 = vmul.f32 -1.442695, %v1428_v19  ;;  %3686 = vmatmul.msk.bf16.gmra.mxu1 %vm1252_vm1, %v1175_v21  ;;  %3726 = vmatmul.msk.bf16.gmra.mxu2 %vm1252_vm1, %v1175_v21  ;;  %v2319_v14 = vsel %vm4977_vm12, %v4957_v3, %v2314_v57  ;;  %v7018_v62 = vpack.c.bf16 %v4946_v30, %v4941_v24 }
 0x1a6   :  { %v3932_v40 = vpop.eup %3931  ;;  %v5033_v28 = vadd.f32 1.0, %v3930_v56  ;;  %v968_v47 = vpop.f32.mrf.mxu0  ;;  %v2362_v19 = vand.u32 2147483648, %v4961_v34  ;;  %v1076_v4 = vadd.f32 %v4779_v36, %v1075_v46  ;;  %v3325_v32 = vmul.f32 %v2334_v10, %v1627_v20 }
 0x1a7   :  { %v2344_v48 = vsel %vm2343_vm8, %v3928_v5, %v2340_v50  ;;  %v2352_v15 = vmul.f32 %v3932_v40, %v4961_v34  ;;  %3933 = vpow2.f32 %v3767_v0  ;;  %vm2357_vm11 = vweird.f32 %v3932_v40 }
 0x1a8   :  { %v2349_v45 = vsel %vm2346_vm9, %v2348_v16, %v2344_v48  ;;  %3935 = vrcp.f32 %v5033_v28  ;;  %v5043_v33 = vpop.f32.mrf.mxu2  ;;  %v3323_v24 = vmul.f32 %v2304_v2, %v4914_v17  ;;  %v3324_v30 = vmul.f32 %v2319_v14, %v4935_v60 }
 0x1a9   :  { %v3326_v9 = vmul.f32 %v2349_v45, %v1629_v22  ;;  %v2353_v48 = vsub.f32 1.0, %v2352_v15  ;;  %3623 = vmatmul.msk.bf16.gmra.mxu0 %vm748_vm0, %v7018_v62  ;;  %v1156_v22 = vmax.f32 %v1074_v23, 0.0  ;;  %v1157_v56 = vmax.f32 %v1076_v4, 0.0 }
 0x1aa   :  { %v1429_v38 = vpop.f32.mrf.mxu1  ;;  %v1632_v44 = vadd.f32 %v4917_v18, %v4569_v7  ;;  %vm2356_vm12 = vweird.f32 %v4961_v34  ;;  %vm2361_vm15 = vcmp.eq.f32.partialorder %v2360_v29, 8.507059e+37  ;;  %v2363_v0 = vor.u32 1.1754944e-38, %v2362_v19 }
 0x1ab   :  { %v2354_v25 = vmul.f32 %v3932_v40, %v2353_v48  ;;  %v1430_v3 = vadd.f32 %v1429_v38, %v4533_v31  ;;  %3412 = vmatpush.msrb.mxu3 %v3326_v9  ;;  %vm2358_vm14 = vmor %vm2356_vm12, %vm2357_vm11  ;;  %v5074_v63 = vpack.c.bf16 %v1157_v56, %v1156_v22  ;;  %v969_v15 = vadd.f32 %v4779_v36, %v968_v47 }
 0x1ac   :  { %v7019_v18 = vand.u32 2147483648, %v4752_v11  ;;  %v1617_v46 = vadd.f32 %v4725_v35, %v4569_v7  ;;  %v395_v35 = vld [vmem:[%s6968_s1 + $0x1b0] sm:$0xff]  ;;  %v7021_v2 = vsel %vm4843_vm13, %v4773_v12, %v4822_v6  ;;  %v2375_v14 = vand.u32 2147483647, %v5033_v28 }
 0x1ad   :  { %v3934_v27 = vpop.eup %3933  ;;  %v2355_v50 = vadd.f32 %v3932_v40, %v2354_v25  ;;  %v3768_v41 = vmul.f32 -1.442695, %v1430_v3  ;;  %3413 = vmatpush.msrb.mxu3 %v3325_v32  ;;  %v2377_v9 = vand.u32 2147483648, %v5033_v28  ;;  %v1114_v62 = vmax.f32 %v969_v15, 0.0 }
 0x1ae   :  { %v3936_v21 = vpop.eup %3935  ;;  %v5072_v57 = vadd.f32 1.0, %v3934_v27  ;;  %v970_v17 = vpop.f32.mrf.mxu0  ;;  %v2258_v34 = vor.u32 1.1754944e-38, %v7019_v18  ;;  %3708 = vmatmul.msk.bf16.gmra.mxu3 %vm1252_vm1, %v5074_v63  ;;  %v688_v38 = vpack.c.bf16 %v396_v51, %v395_v35  ;;  %vm2371_vm13 = vweird.f32 %v5033_v28  ;;  %v398_v35 = vld [vmem:[%s6968_s1 + $0x1c8] sm:$0xff] }
 0x1af   :  { %v2359_v60 = vsel %vm2358_vm14, %v3932_v40, %v2355_v50  ;;  %v2367_v16 = vmul.f32 %v3936_v21, %v5033_v28  ;;  %3937 = vpow2.f32 %v3768_v41  ;;  %3414 = vmatpush.msrb.mxu3 %v3324_v30  ;;  %v3322_v40 = vmul.f32 %v4950_v49, %v4866_v8 }
 0x1b0   :  { %v2364_v20 = vsel %vm2361_vm15, %v2363_v0, %v2359_v60  ;;  %3939 = vrcp.f32 %v5072_v57  ;;  %v5083_v10 = vpop.f32.mrf.mxu2  ;;  %v971_v11 = vadd.f32 %v4779_v36, %v970_v17  ;;  %v2259_v8 = vsel %vm5047_vm10, %v2258_v34, %v7021_v2 }
 0x1b1   :  { %v5089_v47 = vmul.f32 %v2364_v20, %v1632_v44  ;;  %v2368_v45 = vsub.f32 1.0, %v2367_v16  ;;  %3415 = vmatpush.msrb.mxu3 %v3323_v24  ;;  %v3321_v49 = vmul.f32 %v4921_v54, %v1617_v46  ;;  %vm2372_vm2 = vweird.f32 %v3936_v21 }
 0x1b2   :  { %v1115_v29 = vmax.f32 %v971_v11, 0.0  ;;  %v1432_v19 = vpop.f32.mrf.mxu1  ;;  %v3320_v4 = vmul.f32 %v2259_v8, %v1614_v58  ;;  %v1634_v32 = vadd.f32 %v4985_v61, %v4569_v7  ;;  %vm2373_vm3 = vmor %vm2371_vm13, %vm2372_vm2  ;;  %v2378_v25 = vor.u32 1.1754944e-38, %v2377_v9 }
 0x1b3   :  { %7020 = vst [vmem:[#allocation11_spill] sm:$0xff] %v5089_v47  ;;  %v2369_v48 = vmul.f32 %v3936_v21, %v2368_v45  ;;  %3416 = vmatpush.msrb.mxu3 %v3322_v40  ;;  %v1433_v54 = vadd.f32 %v1432_v19, %v4533_v31  ;;  %vm2376_vm4 = vcmp.eq.f32.partialorder %v2375_v14, 8.507059e+37  ;;  %v2390_v27 = vand.u32 2147483647, %v5072_v57 }
 0x1b4   :  { %v1176_v5 = vpack.c.bf16 %v1115_v29, %v1114_v62  ;;  %v2392_v44 = vand.u32 2147483648, %v5072_v57  ;;  %vm2386_vm6 = vweird.f32 %v5072_v57  ;;  %v1637_v16 = vadd.f32 %v5043_v33, %v4569_v7 }
 0x1b5   :  { %v3938_v12 = vpop.eup %3937  ;;  %v2370_v6 = vadd.f32 %v3936_v21, %v2369_v48  ;;  %3417 = vmatpush.msrb.mxu3 %v3321_v49  ;;  %v3769_v28 = vmul.f32 -1.442695, %v1433_v54  ;;  %vm2391_vm8 = vcmp.eq.f32.partialorder %v2390_v27, 8.507059e+37 }
 0x1b6   :  { %v3940_v23 = vpop.eup %3939  ;;  %v5115_v3 = vadd.f32 1.0, %v3938_v12  ;;  %v973_v1 = vpop.f32.mrf.mxu0  ;;  %3687 = vmatmul.msk.bf16.gmra.mxu1 %vm1252_vm1, %v1176_v5  ;;  %3727 = vmatmul.msk.bf16.gmra.mxu2 %vm1252_vm1, %v1176_v5  ;;  %v2393_v15 = vor.u32 1.1754944e-38, %v2392_v44 }
 0x1b7   :  { %v2374_v24 = vsel %vm2373_vm3, %v3936_v21, %v2370_v6  ;;  %v2382_v30 = vmul.f32 %v3940_v23, %v5072_v57  ;;  %3418 = vmatpush.msrb.mxu3 %v3320_v4  ;;  %vm2387_vm5 = vweird.f32 %v3940_v23 }
 0x1b8   :  { %v2379_v22 = vsel %vm2376_vm4, %v2378_v25, %v2374_v24  ;;  %3941 = vrcp.f32 %v5115_v3  ;;  %v5126_v50 = vpop.f32.mrf.mxu2  ;;  %vm2388_vm7 = vmor %vm2386_vm6, %vm2387_vm5  ;;  %v2405_v51 = vand.u32 2147483647, %v5115_v3  ;;  %v2407_v2 = vand.u32 2147483648, %v5115_v3 }
 0x1b9   :  { %v5121_v61 = vmul.f32 %v2379_v22, %v1634_v32  ;;  %v2383_v56 = vsub.f32 1.0, %v2382_v30  ;;  %3943 = vpow2.f32 %v3769_v28  ;;  %3624 = vmatmul.msk.bf16.gmra.mxu0 %vm748_vm0, %v688_v38  ;;  %3419 = vmatpush.msrb.mxu3 %v4743_v59  ;;  %vm2401_vm10 = vweird.f32 %v5115_v3 }
 0x1ba   :  { %v1434_v21 = vpop.f32.mrf.mxu1  ;;  %v2408_v58 = vor.u32 1.1754944e-38, %v2407_v2  ;;  %v1639_v38 = vadd.f32 %v5083_v10, %v4569_v7  ;;  %vm2406_vm12 = vcmp.eq.f32.partialorder %v2405_v51, 8.507059e+37  ;;  %v1642_v44 = vadd.f32 %v5126_v50, %v4569_v7 }
 0x1bb   :  { %7022 = vst [vmem:[#allocation12_spill] sm:$0xff] %v5121_v61  ;;  %v2384_v41 = vmul.f32 %v3940_v23, %v2383_v56  ;;  %3420 = vmatpush.msrb.mxu3 %v4727_v37  ;;  %v1435_v17 = vadd.f32 %v1434_v21, %v4533_v31  ;;  %v974_v37 = vadd.f32 %v4779_v36, %v973_v1 }
 0x1bd   :  { %v2385_v0 = vadd.f32 %v3940_v23, %v2384_v41  ;;  %3421 = vmatpush.msrb.mxu3 %v4704_v42  ;;  %v3770_v20 = vmul.f32 -1.442695, %v1435_v17  ;;  %v397_v42 = vld [vmem:[%s6968_s1 + $0x1c0] sm:$0xff]  ;;  %v1116_v49 = vmax.f32 %v974_v37, 0.0 }
 0x1be   :  { %v3942_v60 = vpop.eup %3941  ;;  %v975_v59 = vpop.f32.mrf.mxu0  ;;  %3742 = vmatmul.msk.bf16.vlgmr.msra.gmra.mxu3 %vm1252_vm1, %v4646_v55  ;;  %v689_v48 = vpack.c.bf16 %v398_v35, %v397_v42 }
 0x1bf   :  { %v3944_v18 = vpop.eup %3943  ;;  %v2389_v34 = vsel %vm2388_vm7, %v3940_v23, %v2385_v0  ;;  %v2397_v46 = vmul.f32 %v3942_v60, %v5115_v3  ;;  %v976_v45 = vadd.f32 %v4779_v36, %v975_v59  ;;  %3422 = vmatpush.msrb.mxu3 %v4685_v39  ;;  %3945 = vpow2.f32 %v3770_v20 }
 0x1c0   :  { %v2394_v57 = vsel %vm2391_vm8, %v2393_v15, %v2389_v34  ;;  %v5137_v40 = vadd.f32 1.0, %v3944_v18  ;;  %v5154_v39 = vpop.f32.mrf.mxu2  ;;  %vm2402_vm9 = vweird.f32 %v3942_v60  ;;  %v7025_v15 = vld [vmem:[#allocation6_spill] sm:$0xff] }
 0x1c1   :  { %v5141_v33 = vmul.f32 %v2394_v57, %v1637_v16  ;;  %v2398_v11 = vsub.f32 1.0, %v2397_v46  ;;  %3423 = vmatpush.msrb.mxu3 %v4660_v52  ;;  %v1117_v14 = vmax.f32 %v976_v45, 0.0  ;;  %vm2403_vm11 = vmor %vm2401_vm10, %vm2402_vm9  ;;  %v400_v16 = vld [vmem:[%s6968_s1 + $0x1d8] sm:$0xff] }
 0x1c2   :  { %3947 = vrcp.f32 %v5137_v40  ;;  %v1437_v9 = vpop.f32.mrf.mxu1  ;;  %v2422_v32 = vand.u32 2147483648, %v5137_v40  ;;  %vm2416_vm15 = vweird.f32 %v5137_v40 }
 0x1c3   :  { %7023 = vst [vmem:[#allocation13_spill] sm:$0xff] %v5141_v33  ;;  %v2399_v8 = vmul.f32 %v3942_v60, %v2398_v11  ;;  %3424 = vmatpush.msrb.mxu3 %v4640_v43  ;;  %v1177_v55 = vpack.c.bf16 %v1117_v14, %v1116_v49  ;;  %v1438_v29 = vadd.f32 %v1437_v9, %v4533_v31 }
 0x1c4   :  { %v2423_v41 = vor.u32 1.1754944e-38, %v2422_v32 }
 0x1c5   :  { %v2400_v62 = vadd.f32 %v3942_v60, %v2399_v8  ;;  %3425 = vmatpush.msrb.mxu3 %v4615_v13  ;;  %v3946_v52 = vpop.eup %3945  ;;  %v3771_v6 = vmul.f32 -1.442695, %v1438_v29 }
 0x1c6   :  { %v978_v19 = vpop.f32.mrf.mxu0  ;;  %3688 = vmatmul.msk.bf16.gmra.mxu1 %vm1252_vm1, %v1177_v55  ;;  %3728 = vmatmul.msk.bf16.gmra.mxu2 %vm1252_vm1, %v1177_v55  ;;  %v5165_v54 = vadd.f32 1.0, %v3946_v52 }
 0x1c7   :  { %v2404_v12 = vsel %vm2403_vm11, %v3942_v60, %v2400_v62  ;;  %3426 = vmatpush.msrb.mxu3 %v4599_v53  ;;  %3949 = vpow2.f32 %v3771_v6  ;;  %v2420_v53 = vand.u32 2147483647, %v5137_v40  ;;  %v979_v22 = vadd.f32 %v4779_v36, %v978_v19  ;;  %v399_v60 = vld [vmem:[%s6968_s1 + $0x1d0] sm:$0xff] }
 0x1c8   :  { %v3948_v43 = vpop.eup %3947  ;;  %v2409_v5 = vsel %vm2406_vm12, %v2408_v58, %v2404_v12  ;;  %3951 = vrcp.f32 %v5165_v54  ;;  %v5173_v10 = vpop.f32.mrf.mxu2  ;;  %v2435_v57 = vand.u32 2147483647, %v5165_v54  ;;  %v690_v11 = vpack.c.bf16 %v400_v16, %v399_v60 }
 0x1c9   :  { %v5168_v23 = vmul.f32 %v2409_v5, %v1639_v38  ;;  %v2412_v13 = vmul.f32 %v3948_v43, %v5137_v40  ;;  %3625 = vmatmul.msk.bf16.gmra.mxu0 %vm748_vm0, %v689_v48  ;;  %3427 = vmatpush.msrb.mxu3 %v4579_v26  ;;  %vm2417_vm14 = vweird.f32 %v3948_v43  ;;  %vm2421_vm13 = vcmp.eq.f32.partialorder %v2420_v53, 8.507059e+37  ;;  %v5195_v50 = vpop.f32.mrf.mxu3 }
 0x1ca   :  { %v1439_v25 = vpop.f32.mrf.mxu1  ;;  %vm2418_vm2 = vmor %vm2416_vm15, %vm2417_vm14  ;;  %v1118_v37 = vmax.f32 %v979_v22, 0.0  ;;  %v2437_v40 = vand.u32 2147483648, %v5165_v54  ;;  %vm2431_vm4 = vweird.f32 %v5165_v54  ;;  %v1644_v48 = vadd.f32 %v5154_v39, %v4569_v7 }
 0x1cb   :  { %7024 = vst [vmem:[#allocation14_spill] sm:$0xff] %v5168_v23  ;;  %v2413_v4 = vsub.f32 1.0, %v2412_v13  ;;  %v1440_v1 = vadd.f32 %v1439_v25, %v4533_v31  ;;  %vm2436_vm6 = vcmp.eq.f32.partialorder %v2435_v57, 8.507059e+37 }
 0x1cc   :  { %v2438_v62 = vor.u32 1.1754944e-38, %v2437_v40 }
 0x1cd   :  { %v2414_v3 = vmul.f32 %v3948_v43, %v2413_v4  ;;  %v3950_v30 = vpop.eup %3949  ;;  %v3772_v56 = vmul.f32 -1.442695, %v1440_v1 }
 0x1ce   :  { %v980_v24 = vpop.f32.mrf.mxu0  ;;  %v3952_v27 = vpop.eup %3951  ;;  %v5184_v21 = vadd.f32 1.0, %v3950_v30  ;;  %3743 = vmatmul.msk.bf16.gmra.mxu3 %vm1252_vm1, %v7025_v15  ;;  %v1647_v30 = vadd.f32 %v5173_v10, %v4569_v7 }
 0x1cf   :  { %v2415_v28 = vadd.f32 %v3948_v43, %v2414_v3  ;;  %v981_v26 = vadd.f32 %v4779_v36, %v980_v24  ;;  %v2427_v17 = vmul.f32 %v3952_v27, %v5165_v54  ;;  %3953 = vpow2.f32 %v3772_v56  ;;  %v401_v56 = vld [vmem:[%s6968_s1 + $0x1e0] sm:$0xff] }
 0x1d0   :  { %3955 = vrcp.f32 %v5184_v21  ;;  %v5198_v18 = vpop.f32.mrf.mxu2  ;;  %vm2432_vm3 = vweird.f32 %v3952_v27  ;;  %v2452_v39 = vand.u32 2147483648, %v5184_v21  ;;  %v2450_v54 = vand.u32 2147483647, %v5184_v21 }
 0x1d1   :  { %v2419_v0 = vsel %vm2418_vm2, %v3948_v43, %v2415_v28  ;;  %v2428_v46 = vsub.f32 1.0, %v2427_v17  ;;  %v1119_v20 = vmax.f32 %v981_v26, 0.0  ;;  %vm2433_vm5 = vmor %vm2431_vm4, %vm2432_vm3  ;;  %v5212_v19 = vpop.f32.mrf.mxu3  ;;  %vm2446_vm8 = vweird.f32 %v5184_v21  ;;  %v402_v26 = vld [vmem:[%s6968_s1 + $0x1e8] sm:$0xff] }
 0x1d2   :  { %v2424_v59 = vsel %vm2421_vm13, %v2423_v41, %v2419_v0  ;;  %v1442_v45 = vpop.f32.mrf.mxu1  ;;  %v2453_v1 = vor.u32 1.1754944e-38, %v2452_v39  ;;  %vm2451_vm10 = vcmp.eq.f32.partialorder %v2450_v54, 8.507059e+37 }
 0x1d3   :  { %v5200_v34 = vmul.f32 %v2424_v59, %v1642_v44  ;;  %v2429_v42 = vmul.f32 %v3952_v27, %v2428_v46  ;;  %v1178_v35 = vpack.c.bf16 %v1119_v20, %v1118_v37  ;;  %v1443_v51 = vadd.f32 %v1442_v45, %v4533_v31 }
 0x1d4   :  { %v691_v59 = vpack.c.bf16 %v402_v26, %v401_v56 }
 0x1d5   :  { %7026 = vst [vmem:[#allocation6_spill] sm:$0xff] %v5200_v34  ;;  %v3954_v8 = vpop.eup %3953  ;;  %v2430_v49 = vadd.f32 %v3952_v27, %v2429_v42  ;;  %v3773_v14 = vmul.f32 -1.442695, %v1443_v51  ;;  %v1649_v42 = vadd.f32 %v5198_v18, %v4569_v7 }
 0x1d6   :  { %v983_v2 = vpop.f32.mrf.mxu0  ;;  %3689 = vmatmul.msk.bf16.gmra.mxu1 %vm1252_vm1, %v1178_v35  ;;  %3729 = vmatmul.msk.bf16.gmra.mxu2 %vm1252_vm1, %v1178_v35  ;;  %v3956_v9 = vpop.eup %3955  ;;  %v2054_v55 = vadd.f32 1.0, %v3954_v8 }
 0x1d7   :  { %v2434_v29 = vsel %vm2433_vm5, %v3952_v27, %v2430_v49  ;;  %v2442_v58 = vmul.f32 %v3956_v9, %v5184_v21  ;;  %3957 = vpow2.f32 %v3773_v14  ;;  %vm2447_vm7 = vweird.f32 %v3956_v9  ;;  %v7028_v27 = vld [vmem:[#allocation7_spill] sm:$0xff] }
 0x1d8   :  { %v2439_v52 = vsel %vm2436_vm6, %v2438_v62, %v2434_v29  ;;  %3959 = vrcp.f32 %v2054_v55  ;;  %v5214_v38 = vpop.f32.mrf.mxu2  ;;  %v984_v25 = vadd.f32 %v4779_v36, %v983_v2  ;;  %vm2448_vm9 = vmor %vm2446_vm8, %vm2447_vm7  ;;  %v2467_v16 = vand.u32 2147483648, %v2054_v55 }
 0x1d9   :  { %3626 = vmatmul.msk.bf16.gmra.mxu0 %vm748_vm0, %v690_v11  ;;  %v5216_v12 = vmul.f32 %v2439_v52, %v1644_v48  ;;  %v2443_v6 = vsub.f32 1.0, %v2442_v58  ;;  %v5233_v44 = vpop.f32.mrf.mxu3  ;;  %v2465_v37 = vand.u32 2147483647, %v2054_v55  ;;  %vm2461_vm12 = vweird.f32 %v2054_v55 }
 0x1da   :  { %v1444_v43 = vpop.f32.mrf.mxu1  ;;  %v1120_v17 = vmax.f32 %v984_v25, 0.0  ;;  %v2468_v11 = vor.u32 1.1754944e-38, %v2467_v16  ;;  %v7030_v25 = vld [vmem:[#allocation8_spill] sm:$0xff] }
 0x1db   :  { %7027 = vst [vmem:[#allocation15_spill] sm:$0xff] %v5216_v12  ;;  %v2444_v5 = vmul.f32 %v3956_v9, %v2443_v6  ;;  %vm2466_vm15 = vcmp.eq.f32.partialorder %v2465_v37, 8.507059e+37  ;;  %v1445_v48 = vadd.f32 %v1444_v43, %v4533_v31  ;;  %v1652_v43 = vadd.f32 %v5214_v38, %v4569_v7 }
 0x1dd   :  { %v3958_v4 = vpop.eup %3957  ;;  %v2445_v32 = vadd.f32 %v3956_v9, %v2444_v5  ;;  %v3774_v39 = vmul.f32 -1.442695, %v1445_v48  ;;  %v7033_v48 = vld [vmem:[#allocation9_spill] sm:$0xff] }
 0x1de   :  { %v985_v13 = vpop.f32.mrf.mxu0  ;;  %v3960_v53 = vpop.eup %3959  ;;  %v2055_v24 = vadd.f32 1.0, %v3958_v4  ;;  %3744 = vmatmul.msk.bf16.gmra.mxu3 %vm1252_vm1, %v7028_v27 }
 0x1df   :  { %v986_v3 = vadd.f32 %v4779_v36, %v985_v13  ;;  %v2449_v28 = vsel %vm2448_vm9, %v3956_v9, %v2445_v32  ;;  %v2457_v22 = vmul.f32 %v3960_v53, %v2054_v55  ;;  %vm2462_vm11 = vweird.f32 %v3960_v53 }
 0x1e0   :  { %v2454_v41 = vsel %vm2451_vm10, %v2453_v1, %v2449_v28  ;;  %3961 = vrcp.f32 %v2055_v24  ;;  %v5235_v21 = vpop.f32.mrf.mxu2  ;;  %vm2463_vm14 = vmor %vm2461_vm12, %vm2462_vm11  ;;  %v2482_v62 = vand.u32 2147483648, %v2055_v24  ;;  %v2480_v18 = vand.u32 2147483647, %v2055_v24 }
 0x1e1   :  { %v5237_v10 = vmul.f32 %v2454_v41, %v1647_v30  ;;  %v2458_v0 = vsub.f32 1.0, %v2457_v22  ;;  %v1121_v60 = vmax.f32 %v986_v3, 0.0  ;;  %v5244_v2 = vpop.f32.mrf.mxu3  ;;  %vm2476_vm13 = vweird.f32 %v2055_v24  ;;  %v403_v30 = vld [vmem:[%s6968_s1 + $0x1f0] sm:$0xff] }
 0x1e2   :  { %v1447_v15 = vpop.f32.mrf.mxu1  ;;  %v2483_v5 = vor.u32 1.1754944e-38, %v2482_v62  ;;  %vm2481_vm4 = vcmp.eq.f32.partialorder %v2480_v18, 8.507059e+37  ;;  %3963 = vpow2.f32 %v3774_v39 }
 0x1e3   :  { %7029 = vst [vmem:[#allocation7_spill] sm:$0xff] %v5237_v10  ;;  %v2459_v46 = vmul.f32 %v3960_v53, %v2458_v0  ;;  %v1179_v20 = vpack.c.bf16 %v1121_v60, %v1120_v17  ;;  %v1448_v58 = vadd.f32 %v1447_v15, %v4533_v31 }
 0x1e5   :  { %v2460_v40 = vadd.f32 %v3960_v53, %v2459_v46  ;;  %v3775_v1 = vmul.f32 -1.442695, %v1448_v58 }
 0x1e6   :  { %v988_v57 = vpop.f32.mrf.mxu0  ;;  %3690 = vmatmul.msk.bf16.gmra.mxu1 %vm1252_vm1, %v1179_v20  ;;  %3730 = vmatmul.msk.bf16.gmra.mxu2 %vm1252_vm1, %v1179_v20  ;;  %v3962_v45 = vpop.eup %3961 }
 0x1e7   :  { %v2464_v35 = vsel %vm2463_vm14, %v3960_v53, %v2460_v40  ;;  %v2472_v51 = vmul.f32 %v3962_v45, %v2055_v24  ;;  %vm2477_vm2 = vweird.f32 %v3962_v45  ;;  %v989_v54 = vadd.f32 %v4779_v36, %v988_v57 }
 0x1e8   :  { %v2469_v8 = vsel %vm2466_vm15, %v2468_v11, %v2464_v35  ;;  %v5246_v49 = vpop.f32.mrf.mxu2  ;;  %vm2478_vm3 = vmor %vm2476_vm13, %vm2477_vm2  ;;  %3965 = vpow2.f32 %v3775_v1  ;;  %v3964_v60 = vpop.eup %3963  ;;  %v5287_v35 = vld [vmem:[%s6970_s3] ss:$0 sm:$0xff] }
 0x1e9   :  { %3627 = vmatmul.msk.bf16.gmra.mxu0 %vm748_vm0, %v691_v59  ;;  %v5248_v14 = vmul.f32 %v2469_v8, %v1649_v42  ;;  %v2473_v9 = vsub.f32 1.0, %v2472_v51  ;;  %v5259_v3 = vpop.f32.mrf.mxu3  ;;  %v1122_v28 = vmax.f32 %v989_v54, 0.0  ;;  %v5279_v20 = vadd.f32 1.0, %v3964_v60 }
 0x1ea   :  { %v1449_v55 = vpop.f32.mrf.mxu1  ;;  %7031 = vst [vmem:[#allocation8_spill] sm:$0xff] %v5259_v3 }
 0x1eb   :  { %v2474_v29 = vmul.f32 %v3962_v45, %v2473_v9  ;;  %v1450_v13 = vadd.f32 %v1449_v55, %v4533_v31  ;;  %v405_v55 = vld [vmem:[%s6968_s1 + $0x200] sm:$0xff] }
 0x1ed   :  { %v2475_v6 = vadd.f32 %v3962_v45, %v2474_v29  ;;  %v3776_v22 = vmul.f32 -1.442695, %v1450_v13  ;;  %v406_v29 = vld [vmem:[%s6968_s1 + $0x208] sm:$0xff] }
 0x1ee   :  { %v990_v52 = vpop.f32.mrf.mxu0  ;;  %3745 = vmatmul.msk.bf16.gmra.mxu3 %vm1252_vm1, %v7030_v25  ;;  %v3966_v46 = vpop.eup %3965 }
 0x1ef   :  { %v991_v4 = vadd.f32 %v4779_v36, %v990_v52  ;;  %v2479_v32 = vsel %vm2478_vm3, %v3962_v45, %v2475_v6  ;;  %v404_v36 = vld [vmem:[%s6968_s1 + $0x1f8] sm:$0xff]  ;;  %3967 = vpow2.f32 %v3776_v22  ;;  %v5282_v11 = vadd.f32 1.0, %v3966_v46 }
 0x1f0   :  { %v2484_v53 = vsel %vm2481_vm4, %v2483_v5, %v2479_v32  ;;  %v5261_v24 = vpop.f32.mrf.mxu2  ;;  %v692_v27 = vpack.c.bf16 %v404_v36, %v403_v30  ;;  %v693_v5 = vpack.c.bf16 %v406_v29, %v405_v55  ;;  %v1548_v22 = vadd.f32 %v5195_v50, %v4533_v31 }
 0x1f1   :  { %v5269_v38 = vmul.f32 %v2484_v53, %v1652_v43  ;;  %v1123_v56 = vmax.f32 %v991_v4, 0.0  ;;  %v5277_v59 = vpop.f32.mrf.mxu3  ;;  %v5348_v55 = vadd.f32 %v5235_v21, %v4569_v7  ;;  %vm2506_vm6 = vweird.f32 %v5282_v11 }
 0x1f2   :  { %v1452_v26 = vpop.f32.mrf.mxu1  ;;  %7032 = vst [vmem:[#allocation16_spill] sm:$0xff] %v5277_v59  ;;  %v3815_v46 = vmul.f32 -1.442695, %v1548_v22  ;;  %v7049_v12 = vand.u32 2147483647, %v5282_v11 }
 0x1f3   :  { %v1180_v41 = vpack.c.bf16 %v1123_v56, %v1122_v28  ;;  %v1453_v17 = vadd.f32 %v1452_v26, %v4533_v31 }
 0x1f5   :  { %v3777_v15 = vmul.f32 -1.442695, %v1453_v17  ;;  %v3968_v40 = vpop.eup %3967 }
 0x1f6   :  { %v993_v0 = vpop.f32.mrf.mxu0  ;;  %3691 = vmatmul.msk.bf16.gmra.mxu1 %vm1252_vm1, %v1180_v41  ;;  %3731 = vmatmul.msk.bf16.gmra.mxu2 %vm1252_vm1, %v1180_v41  ;;  %v5292_v9 = vadd.f32 1.0, %v3968_v40 }
 0x1f7   :  { %3969 = vpow2.f32 %v3777_v15  ;;  %v994_v51 = vadd.f32 %v5287_v35, %v993_v0 }
 0x1f8   :  { %v5275_v16 = vpop.f32.mrf.mxu2  ;;  %3971 = vrcp.f32 %v5279_v20  ;;  %vm2521_vm11 = vweird.f32 %v5292_v9 }
 0x1f9   :  { %3628 = vmatmul.msk.bf16.gmra.mxu0 %vm748_vm0, %v692_v27  ;;  %v1124_v18 = vmax.f32 %v994_v51, 0.0  ;;  %v5307_v54 = vpop.f32.mrf.mxu3  ;;  %v2497_v51 = vand.u32 2147483648, %v5279_v20 }
 0x1fa   :  { %v1454_v37 = vpop.f32.mrf.mxu1  ;;  %7034 = vst [vmem:[#allocation9_spill] sm:$0xff] %v5307_v54 }
 0x1fb   :  { %v1455_v57 = vadd.f32 %v1454_v37, %v4533_v31 }
 0x1fd   :  { %v3778_v42 = vmul.f32 -1.442695, %v1455_v57  ;;  %v3970_v6 = vpop.eup %3969 }
 0x1fe   :  { %v995_v45 = vpop.f32.mrf.mxu0  ;;  %3746 = vmatmul.msk.bf16.gmra.mxu3 %vm1252_vm1, %v7033_v48  ;;  %v5309_v43 = vpop.eup %3971  ;;  %v5311_v53 = vadd.f32 1.0, %v3970_v6 }
 0x1ff   :  { %v996_v8 = vadd.f32 %v5287_v35, %v995_v45  ;;  %3973 = vpow2.f32 %v3778_v42  ;;  %v2487_v28 = vmul.f32 %v5309_v43, %v5279_v20  ;;  %vm2492_vm5 = vweird.f32 %v5309_v43 }
 0x200   :  { %v5296_v62 = vpop.f32.mrf.mxu2  ;;  %3975 = vrcp.f32 %v5282_v11  ;;  %vm2536_vm14 = vweird.f32 %v5311_v53 }
 0x201   :  { %v1125_v58 = vmax.f32 %v996_v8, 0.0  ;;  %3977 = vrcp.f32 %v5292_v9  ;;  %v2488_v15 = vsub.f32 1.0, %v2487_v28  ;;  %v5335_v37 = vpop.f32.mrf.mxu3  ;;  %v7036_v8 = vld [vmem:[#allocation10_spill] sm:$0xff] }
 0x202   :  { %v1457_v52 = vpop.f32.mrf.mxu1  ;;  %7035 = vst [vmem:[#allocation17_spill] sm:$0xff] %v5335_v37 }
 0x203   :  { %v1458_v39 = vadd.f32 %v1457_v52, %v4533_v31  ;;  %v1181_v13 = vpack.c.bf16 %v1125_v58, %v1124_v18  ;;  %v2489_v58 = vmul.f32 %v5309_v43, %v2488_v15 }
 0x205   :  { %v3779_v32 = vmul.f32 -1.442695, %v1458_v39  ;;  %v3974_v25 = vpop.eup %3973  ;;  %v5359_v39 = vadd.f32 %v5212_v19, %v4533_v31 }
 0x206   :  { %v998_v4 = vpop.f32.mrf.mxu0  ;;  %3692 = vmatmul.msk.bf16.gmra.mxu1 %vm1252_vm1, %v1181_v13  ;;  %3732 = vmatmul.msk.bf16.gmra.mxu2 %vm1252_vm1, %v1181_v13  ;;  %v5315_v1 = vpop.eup %3975  ;;  %v5326_v56 = vadd.f32 1.0, %v3974_v25  ;;  %v2512_v25 = vand.u32 2147483648, %v5282_v11 }
 0x207   :  { %3979 = vpow2.f32 %v3779_v32  ;;  %v5320_v36 = vpop.eup %3977  ;;  %v2502_v26 = vmul.f32 %v5315_v1, %v5282_v11  ;;  %v999_v45 = vadd.f32 %v5287_v35, %v998_v4  ;;  %v5363_v32 = vor.u32 1.1754944e-38, %v2497_v51 }
 0x208   :  { %v5318_v30 = vpop.f32.mrf.mxu2  ;;  %3981 = vrcp.f32 %v5311_v53  ;;  %v2517_v0 = vmul.f32 %v5320_v36, %v5292_v9  ;;  %vm2507_vm7 = vweird.f32 %v5315_v1  ;;  %vm2522_vm9 = vweird.f32 %v5320_v36 }
 0x209   :  { %3629 = vmatmul.msk.bf16.gmra.mxu0 %vm748_vm0, %v693_v5  ;;  %3983 = vrcp.f32 %v5326_v56  ;;  %v2503_v57 = vsub.f32 1.0, %v2502_v26  ;;  %vm2491_vm0 = vweird.f32 %v5279_v20  ;;  %v1126_v21 = vmax.f32 %v999_v45, 0.0  ;;  %vm5424_vm10 = vmor %vm2506_vm6, %vm2507_vm7 }
 0x20a   :  { %v1459_v27 = vpop.f32.mrf.mxu1  ;;  %v2518_v29 = vsub.f32 1.0, %v2517_v0  ;;  %v5373_v0 = vadd.f32 %v5309_v43, %v2489_v58  ;;  %vm5404_vm8 = vmor %vm2491_vm0, %vm2492_vm5  ;;  %vm2551_vm2 = vweird.f32 %v5326_v56  ;;  %vm5493_vm6 = vcmp.eq.f32.partialorder %v7049_v12, 8.507059e+37 }
 0x20b   :  { %v1460_v41 = vadd.f32 %v1459_v27, %v4533_v31  ;;  %v2504_v6 = vmul.f32 %v5315_v1, %v2503_v57  ;;  %vm5439_vm12 = vmor %vm2521_vm11, %vm2522_vm9 }
 0x20c   :  { %v2519_v19 = vmul.f32 %v5320_v36, %v2518_v29  ;;  %v5398_v29 = vpop.f32.mrf.mxu3 }
 0x20d   :  { %v3980_v60 = vpop.eup %3979  ;;  %v3780_v50 = vmul.f32 -1.442695, %v1460_v41  ;;  %7037 = vst [vmem:[#allocation10_spill] sm:$0xff] %v5398_v29  ;;  %v2555_v29 = vand.u32 2147483647, %v5326_v56 }
 0x20e   :  { %v1000_v17 = vpop.f32.mrf.mxu0  ;;  %v5337_v40 = vadd.f32 1.0, %v3980_v60  ;;  %3747 = vmatmul.msk.bf16.gmra.mxu3 %vm1252_vm1, %v7036_v8  ;;  %v5344_v48 = vpop.eup %3981  ;;  %v5378_v60 = vadd.f32 %v5261_v24, %v4569_v7  ;;  %v5394_v24 = vor.u32 1.1754944e-38, %v2512_v25 }
 0x20f   :  { %v1001_v42 = vadd.f32 %v5287_v35, %v1000_v17  ;;  %3985 = vpow2.f32 %v3780_v50  ;;  %v5361_v4 = vpop.eup %3983  ;;  %v2532_v28 = vmul.f32 %v5344_v48, %v5311_v53  ;;  %v5383_v50 = vadd.f32 %v5315_v1, %v2504_v6 }
 0x210   :  { %3987 = vrcp.f32 %v5337_v40  ;;  %v5351_v18 = vpop.f32.mrf.mxu2  ;;  %v2547_v57 = vmul.f32 %v5361_v4, %v5326_v56  ;;  %v5409_v6 = vadd.f32 %v5320_v36, %v2519_v19  ;;  %vm2537_vm15 = vweird.f32 %v5344_v48 }
 0x211   :  { %3989 = vpow2.f32 %v3815_v46  ;;  %v1127_v5 = vmax.f32 %v1001_v42, 0.0  ;;  %v2533_v51 = vsub.f32 1.0, %v2532_v28  ;;  %v2525_v28 = vand.u32 2147483647, %v5292_v9  ;;  %vm5505_vm9 = vmor %vm2536_vm14, %vm2537_vm15 }
 0x212   :  { %v1462_v13 = vpop.f32.mrf.mxu1  ;;  %vm2552_vm3 = vweird.f32 %v5361_v4  ;;  %vm5475_vm4 = vcmp.eq.f32.partialorder %v2555_v29, 8.507059e+37  ;;  %vm2566_vm0 = vweird.f32 %v5337_v40 }
 0x213   :  { %v1463_v22 = vadd.f32 %v1462_v13, %v4533_v31  ;;  %v1182_v26 = vpack.c.bf16 %v1127_v5, %v1126_v21  ;;  %v2542_v21 = vand.u32 2147483648, %v5311_v53  ;;  %v2534_v17 = vmul.f32 %v5344_v48, %v2533_v51 }
 0x214   :  { %vm5497_vm7 = vcmp.eq.f32.partialorder %v2525_v28, 8.507059e+37 }
 0x215   :  { %v3986_v41 = vpop.eup %3985  ;;  %v3781_v15 = vmul.f32 -1.442695, %v1463_v22  ;;  %v2535_v61 = vadd.f32 %v5344_v48, %v2534_v17  ;;  %v2572_v17 = vand.u32 2147483648, %v5337_v40 }
 0x216   :  { %v1003_v27 = vpop.f32.mrf.mxu0  ;;  %v5380_v46 = vpop.eup %3987  ;;  %v5388_v45 = vadd.f32 1.0, %v3986_v41  ;;  %3693 = vmatmul.msk.bf16.gmra.mxu1 %vm1252_vm1, %v1182_v26  ;;  %3733 = vmatmul.msk.bf16.gmra.mxu2 %vm1252_vm1, %v1182_v26  ;;  %v5437_v41 = vadd.f32 %v5275_v16, %v4569_v7  ;;  %v5452_v26 = vor.u32 1.1754944e-38, %v2542_v21 }
 0x217   :  { %v5392_v42 = vpop.eup %3989  ;;  %v2562_v8 = vmul.f32 %v5380_v46, %v5337_v40  ;;  %3991 = vpow2.f32 %v3781_v15  ;;  %v2548_v15 = vsub.f32 1.0, %v2547_v57  ;;  %v2540_v57 = vand.u32 2147483647, %v5311_v53 }
 0x218   :  { %3993 = vrcp.f32 %v5388_v45  ;;  %v5414_v5 = vpop.f32.mrf.mxu2  ;;  %v1004_v21 = vadd.f32 %v5287_v35, %v1003_v27  ;;  %vm2567_vm5 = vweird.f32 %v5380_v46  ;;  %v2585_v12 = vand.u32 2147483647, %v5388_v45 }
 0x219   :  { %v2563_v22 = vsub.f32 1.0, %v2562_v8  ;;  %v2557_v8 = vand.u32 2147483648, %v5326_v56  ;;  %v2549_v3 = vmul.f32 %v5361_v4, %v2548_v15  ;;  %vm5470_vm13 = vcmp.eq.f32.partialorder %v2540_v57, 8.507059e+37  ;;  %v5487_v15 = vpop.f32.mrf.mxu3  ;;  %vm5520_vm14 = vmor %vm2566_vm0, %vm2567_vm5 }
 0x21a   :  { %v1464_v13 = vpop.f32.mrf.mxu1  ;;  %7048 = vst [vmem:[#allocation18_spill] sm:$0xff] %v5487_v15  ;;  %v1128_v57 = vmax.f32 %v1004_v21, 0.0  ;;  %v2539_v11 = vsel %vm5505_vm9, %v5344_v48, %v2535_v61  ;;  %v1669_v21 = vadd.f32 %v5351_v18, %v4569_v7  ;;  %vm5534_vm9 = vmor %vm2551_vm2, %vm2552_vm3  ;;  %vm2581_vm0 = vweird.f32 %v5388_v45 }
 0x21b   :  { %v1465_v19 = vadd.f32 %v1464_v13, %v4533_v31  ;;  %v2564_v51 = vmul.f32 %v5380_v46, %v2563_v22  ;;  %v2558_v33 = vor.u32 1.1754944e-38, %v2557_v8  ;;  %v2550_v29 = vadd.f32 %v5361_v4, %v2549_v3 }
 0x21c   :  { %v2587_v8 = vand.u32 2147483648, %v5388_v45  ;;  %vm2586_vm3 = vcmp.eq.f32.partialorder %v2585_v12, 8.507059e+37  ;;  %v1664_v53 = vadd.f32 %v5296_v62, %v4569_v7  ;;  %v7068_v22 = vsel %vm5439_vm12, %v5320_v36, %v5409_v6 }
 0x21d   :  { %v3992_v54 = vpop.eup %3991  ;;  %v3782_v13 = vmul.f32 -1.442695, %v1465_v19 }
 0x21e   :  { %v1005_v37 = vpop.f32.mrf.mxu0  ;;  %v5458_v59 = vpop.eup %3993  ;;  %v5461_v16 = vadd.f32 1.0, %v3992_v54  ;;  %3748 = vmatmul.msk.bf16.gmra.mxu3 %vm1252_vm1, %v5074_v63  ;;  %v2565_v63 = vadd.f32 %v5380_v46, %v2564_v51  ;;  %v2588_v56 = vor.u32 1.1754944e-38, %v2587_v8  ;;  %v2544_v8 = vsel %vm5470_vm13, %v5452_v26, %v2539_v11 }
 0x21f   :  { %v1006_v47 = vadd.f32 %v5287_v35, %v1005_v37  ;;  %v2577_v23 = vmul.f32 %v5458_v59, %v5388_v45  ;;  %3995 = vpow2.f32 %v3782_v13  ;;  %v2570_v37 = vand.u32 2147483647, %v5337_v40 }
 0x220   :  { %3997 = vrcp.f32 %v5461_v16  ;;  %v5482_v27 = vpop.f32.mrf.mxu2  ;;  %vm2582_vm11 = vweird.f32 %v5458_v59  ;;  %v2569_v40 = vsel %vm5520_vm14, %v5380_v46, %v2565_v63  ;;  %v7062_v63 = vand.u32 2147483647, %v5279_v20 }
 0x221   :  { %v2578_v19 = vsub.f32 1.0, %v2577_v23  ;;  %v1129_v13 = vmax.f32 %v1006_v47, 0.0  ;;  %vm5524_vm15 = vcmp.eq.f32.partialorder %v2570_v37, 8.507059e+37  ;;  %vm2583_vm2 = vmor %vm2581_vm0, %vm2582_vm11  ;;  %v2600_v28 = vand.u32 2147483647, %v5461_v16 }
 0x222   :  { %v1467_v34 = vpop.f32.mrf.mxu1  ;;  %vm5556_vm5 = vcmp.eq.f32.partialorder %v7062_v63, 8.507059e+37  ;;  %v3339_v11 = vmul.f32 %v2544_v8, %v5437_v41 }
 0x223   :  { %v2579_v47 = vmul.f32 %v5458_v59, %v2578_v19  ;;  %v1468_v3 = vadd.f32 %v1467_v34, %v4533_v31  ;;  %v1183_v34 = vpack.c.bf16 %v1129_v13, %v1128_v57  ;;  %v2554_v57 = vsel %vm5534_vm9, %v5361_v4, %v2550_v29 }
 0x224   :  { %v2573_v13 = vor.u32 1.1754944e-38, %v2572_v17  ;;  %v1667_v17 = vadd.f32 %v5318_v30, %v4569_v7  ;;  %v2559_v20 = vsel %vm5475_vm4, %v2558_v33, %v2554_v57  ;;  %v5579_v33 = vpop.f32.mrf.mxu3  ;;  %vm2601_vm12 = vcmp.eq.f32.partialorder %v2600_v28, 8.507059e+37 }
 0x225   :  { %v3996_v15 = vpop.eup %3995  ;;  %v2580_v48 = vadd.f32 %v5458_v59, %v2579_v47  ;;  %v3783_v18 = vmul.f32 -1.442695, %v1468_v3  ;;  %v7065_v3 = vand.u32 2147483648, %v5292_v9  ;;  %7066 = vst [vmem:[#allocation19_spill] sm:$0xff] %v5579_v33  ;;  %v7067_v9 = vsel %vm5424_vm10, %v5315_v1, %v5383_v50 }
 0x226   :  { %v1008_v19 = vpop.f32.mrf.mxu0  ;;  %v3998_v37 = vpop.eup %3997  ;;  %v5548_v23 = vadd.f32 1.0, %v3996_v15  ;;  %3694 = vmatmul.msk.bf16.gmra.mxu1 %vm1252_vm1, %v1183_v34  ;;  %3734 = vmatmul.msk.bf16.gmra.mxu2 %vm1252_vm1, %v1183_v34  ;;  %v2574_v15 = vsel %vm5524_vm15, %v2573_v13, %v2569_v40  ;;  %v2602_v34 = vand.u32 2147483648, %v5461_v16  ;;  %v2514_v62 = vsel %vm5493_vm6, %v5394_v24, %v7067_v9 }
 0x227   :  { %v2584_v46 = vsel %vm2583_vm2, %v5458_v59, %v2580_v48  ;;  %v2592_v45 = vmul.f32 %v3998_v37, %v5461_v16  ;;  %3999 = vpow2.f32 %v3783_v18  ;;  %v2528_v30 = vor.u32 1.1754944e-38, %v7065_v3 }
 0x228   :  { %v2589_v29 = vsel %vm2586_vm3, %v2588_v56, %v2584_v46  ;;  %4001 = vrcp.f32 %v5548_v23  ;;  %v5565_v59 = vpop.f32.mrf.mxu2  ;;  %v3341_v40 = vmul.f32 %v2574_v15, %v1667_v17  ;;  %vm2597_vm11 = vweird.f32 %v3998_v37 }
 0x229   :  { %v3342_v47 = vmul.f32 %v2589_v29, %v1669_v21  ;;  %v2593_v12 = vsub.f32 1.0, %v2592_v45  ;;  %v2529_v54 = vsel %vm5497_vm7, %v2528_v30, %v7068_v22  ;;  %v3340_v21 = vmul.f32 %v2559_v20, %v1664_v53 }
 0x22a   :  { %v1469_v61 = vpop.f32.mrf.mxu1  ;;  %v1672_v1 = vadd.f32 %v5414_v5, %v4569_v7  ;;  %vm2596_vm10 = vweird.f32 %v5461_v16  ;;  %v2603_v36 = vor.u32 1.1754944e-38, %v2602_v34  ;;  %v1009_v6 = vadd.f32 %v5287_v35, %v1008_v19 }
 0x22b   :  { %v2594_v48 = vmul.f32 %v3998_v37, %v2593_v12  ;;  %v1470_v26 = vadd.f32 %v1469_v61, %v4533_v31  ;;  %3432 = vmatpush.msra.mxu3 %v3342_v47  ;;  %vm2598_vm13 = vmor %vm2596_vm10, %vm2597_vm11  ;;  %v1657_v5 = vadd.f32 %v5246_v49, %v4569_v7  ;;  %v3816_v16 = vmul.f32 -1.442695, %v5359_v39 }
 0x22c   :  { %v7069_v19 = vsel %vm5404_vm8, %v5309_v43, %v5373_v0  ;;  %v3338_v46 = vmul.f32 %v2529_v54, %v5378_v60  ;;  %v2617_v63 = vand.u32 2147483648, %v5548_v23  ;;  %v1130_v17 = vmax.f32 %v1009_v6, 0.0  ;;  %v5633_v30 = vpop.f32.mrf.mxu3 }
 0x22d   :  { %v4000_v25 = vpop.eup %3999  ;;  %v2595_v50 = vadd.f32 %v3998_v37, %v2594_v48  ;;  %v3784_v10 = vmul.f32 -1.442695, %v1470_v26  ;;  %3433 = vmatpush.msra.mxu3 %v3341_v40  ;;  %v3337_v39 = vmul.f32 %v2514_v62, %v1657_v5  ;;  %v2615_v43 = vand.u32 2147483647, %v5548_v23 }
 0x22e   :  { %v1010_v18 = vpop.f32.mrf.mxu0  ;;  %v4002_v52 = vpop.eup %4001  ;;  %v5601_v24 = vadd.f32 1.0, %v4000_v25  ;;  %v1553_v60 = vadd.f32 %v5233_v44, %v4533_v31  ;;  %vm2611_vm8 = vweird.f32 %v5548_v23  ;;  %v2618_v44 = vor.u32 1.1754944e-38, %v2617_v63 }
 0x22f   :  { %v1011_v41 = vadd.f32 %v5287_v35, %v1010_v18  ;;  %v2599_v51 = vsel %vm2598_vm13, %v3998_v37, %v2595_v50  ;;  %v2607_v57 = vmul.f32 %v4002_v52, %v5548_v23  ;;  %4003 = vpow2.f32 %v3784_v10  ;;  %3434 = vmatpush.msra.mxu3 %v3340_v21  ;;  %v7070_v10 = vld [vmem:[#allocation7_spill] sm:$0xff] }
 0x230   :  { %v2604_v13 = vsel %vm2601_vm12, %v2603_v36, %v2599_v51  ;;  %4005 = vrcp.f32 %v5601_v24  ;;  %v5610_v56 = vpop.f32.mrf.mxu2  ;;  %v2499_v37 = vsel %vm5556_vm5, %v5363_v32, %v7069_v19  ;;  %vm2612_vm4 = vweird.f32 %v4002_v52 }
 0x231   :  { %v5621_v45 = vmul.f32 %v2604_v13, %v1672_v1  ;;  %v2608_v49 = vsub.f32 1.0, %v2607_v57  ;;  %3435 = vmatpush.msra.mxu3 %v3339_v11  ;;  %v1131_v15 = vmax.f32 %v1011_v41, 0.0  ;;  %v5627_v32 = vadd.f32 1.0, %v5392_v42  ;;  %vm2613_vm6 = vmor %vm2611_vm8, %vm2612_vm4  ;;  %v7071_v57 = vld [vmem:[#allocation15_spill] sm:$0xff] }
 0x232   :  { %v3336_v47 = vmul.f32 %v2499_v37, %v5348_v55  ;;  %4007 = vpow2.f32 %v3816_v16  ;;  %v1674_v42 = vadd.f32 %v5482_v27, %v4569_v7  ;;  %vm2616_vm7 = vcmp.eq.f32.partialorder %v2615_v43, 8.507059e+37 }
 0x233   :  { %v1472_v29 = vpop.f32.mrf.mxu1  ;;  %v2609_v58 = vmul.f32 %v4002_v52, %v2608_v49  ;;  %3436 = vmatpush.msra.mxu3 %v3338_v46  ;;  %v1184_v4 = vpack.c.bf16 %v1131_v15, %v1130_v17  ;;  %v3817_v34 = vmul.f32 -1.442695, %v1553_v60  ;;  %v1555_v61 = vadd.f32 %v5244_v2, %v4533_v31  ;;  %v7073_v49 = vld [vmem:[#allocation6_spill] sm:$0xff] }
 0x234   :  { %v1473_v0 = vadd.f32 %v1472_v29, %v4533_v31  ;;  %v2632_v9 = vand.u32 2147483648, %v5601_v24  ;;  %v2630_v54 = vand.u32 2147483647, %v5601_v24  ;;  %vm2626_vm15 = vweird.f32 %v5601_v24  ;;  %v7074_v60 = vld [vmem:[#allocation14_spill] sm:$0xff] }
 0x235   :  { %v4004_v20 = vpop.eup %4003  ;;  %v2610_v12 = vadd.f32 %v4002_v52, %v2609_v58  ;;  %3437 = vmatpush.msra.mxu3 %v3337_v39  ;;  %v3818_v21 = vmul.f32 -1.442695, %v1555_v61  ;;  %vm3106_vm4 = vweird.f32 %v5627_v32 }
 0x236   :  { %v1013_v8 = vpop.f32.mrf.mxu0  ;;  %v3785_v3 = vmul.f32 -1.442695, %v1473_v0  ;;  %v4006_v53 = vpop.eup %4005  ;;  %v5638_v28 = vadd.f32 1.0, %v4004_v20  ;;  %3695 = vmatmul.msk.bf16.gmra.mxu1 %vm1252_vm1, %v1184_v4  ;;  %3735 = vmatmul.msk.bf16.gmra.mxu2 %vm1252_vm1, %v1184_v4  ;;  %v2633_v36 = vor.u32 1.1754944e-38, %v2632_v9  ;;  %vm2631_vm0 = vcmp.eq.f32.partialorder %v2630_v54, 8.507059e+37  ;;  %v7076_v9 = vld [vmem:[#allocation12_spill] sm:$0xff] }
 0x237   :  { %v2614_v55 = vsel %vm2613_vm6, %v4002_v52, %v2610_v12  ;;  %v2622_v23 = vmul.f32 %v4006_v53, %v5601_v24  ;;  %3438 = vmatpush.msra.mxu3 %v3336_v47  ;;  %vm2627_vm14 = vweird.f32 %v4006_v53  ;;  %v5667_v24 = vpop.f32.mrf.mxu3 }
 0x238   :  { %4009 = vpow2.f32 %v3785_v3  ;;  %v2619_v27 = vsel %vm2616_vm7, %v2618_v44, %v2614_v55  ;;  %v4008_v11 = vpop.eup %4007  ;;  %vm2628_vm9 = vmor %vm2626_vm15, %vm2627_vm14  ;;  %7072 = vst [vmem:[#allocation7_spill] sm:$0xff] %v5667_v24  ;;  %v2645_v63 = vand.u32 2147483647, %v5638_v28  ;;  %v2647_v17 = vand.u32 2147483648, %v5638_v28 }
 0x239   :  { %4011 = vrcp.f32 %v5638_v28  ;;  %v5646_v40 = vpop.f32.mrf.mxu2  ;;  %v5648_v48 = vmul.f32 %v2619_v27, %v1674_v42  ;;  %v2623_v26 = vsub.f32 1.0, %v2622_v23  ;;  %3439 = vmatpush.msra.mxu3 %v5269_v38  ;;  %v1677_v38 = vadd.f32 %v5565_v59, %v4569_v7  ;;  %v7075_v42 = vld [vmem:[#allocation13_spill] sm:$0xff] }
 0x23a   :  { %4013 = vrcp.f32 %v5627_v32  ;;  %v5671_v16 = vadd.f32 1.0, %v4008_v11  ;;  %vm2641_vm3 = vweird.f32 %v5638_v28  ;;  %v1679_v55 = vadd.f32 %v5610_v56, %v4569_v7 }
 0x23b   :  { %v1474_v62 = vpop.f32.mrf.mxu1  ;;  %v2624_v22 = vmul.f32 %v4006_v53, %v2623_v26  ;;  %3440 = vmatpush.msra.mxu3 %v5248_v14  ;;  %4015 = vpow2.f32 %v3817_v34  ;;  %v1014_v14 = vadd.f32 %v5287_v35, %v1013_v8  ;;  %vm2646_vm11 = vcmp.eq.f32.partialorder %v2645_v63, 8.507059e+37 }
 0x23c   :  { %v1475_v2 = vadd.f32 %v1474_v62, %v4533_v31  ;;  %v2648_v23 = vor.u32 1.1754944e-38, %v2647_v17  ;;  %v3110_v63 = vand.u32 2147483647, %v5627_v32 }
 0x23d   :  { %v2625_v1 = vadd.f32 %v4006_v53, %v2624_v22  ;;  %3441 = vmatpush.msra.mxu3 %v7070_v10  ;;  %v1132_v15 = vmax.f32 %v1014_v14, 0.0 }
 0x23e   :  { %v1015_v18 = vpop.f32.mrf.mxu0  ;;  %v4010_v25 = vpop.eup %4009  ;;  %v3786_v50 = vmul.f32 -1.442695, %v1475_v2  ;;  %vm5756_vm15 = vcmp.eq.f32.partialorder %v3110_v63, 8.507059e+37 }
 0x23f   :  { %v4012_v52 = vpop.eup %4011  ;;  %v5661_v6 = vadd.f32 1.0, %v4010_v25  ;;  %v1016_v41 = vadd.f32 %v5287_v35, %v1015_v18  ;;  %v2629_v51 = vsel %vm2628_vm9, %v4006_v53, %v2625_v1  ;;  %3442 = vmatpush.msra.mxu3 %v7071_v57  ;;  %v5707_v18 = vpop.f32.mrf.mxu3  ;;  %v1682_v1 = vadd.f32 %v5646_v40, %v4569_v7 }
 0x240   :  { %v2637_v59 = vmul.f32 %v4012_v52, %v5638_v28  ;;  %4017 = vpow2.f32 %v3786_v50  ;;  %v5669_v5 = vpop.eup %4013  ;;  %v2634_v13 = vsel %vm2631_vm0, %v2633_v36, %v2629_v51  ;;  %vm2642_vm2 = vweird.f32 %v4012_v52  ;;  %7078 = vst [vmem:[#allocation15_spill] sm:$0xff] %v5707_v18 }
 0x241   :  { %4019 = vrcp.f32 %v5661_v6  ;;  %v5674_v19 = vpop.f32.mrf.mxu2  ;;  %v5676_v37 = vmul.f32 %v2634_v13, %v1677_v38  ;;  %3443 = vmatpush.msra.mxu3 %v7073_v49  ;;  %v4016_v39 = vpop.eup %4015  ;;  %v1133_v29 = vmax.f32 %v1016_v41, 0.0  ;;  %v3102_v20 = vmul.f32 %v5669_v5, %v5627_v32  ;;  %vm2643_vm5 = vmor %vm2641_vm3, %vm2642_vm2 }
 0x242   :  { %4021 = vpow2.f32 %v3818_v21  ;;  %v2638_v46 = vsub.f32 1.0, %v2637_v59  ;;  %v5686_v12 = vadd.f32 1.0, %v4016_v39  ;;  %v2660_v26 = vand.u32 2147483647, %v5661_v6  ;;  %v7077_v21 = vld [vmem:[#allocation11_spill] sm:$0xff] }
 0x243   :  { %v1477_v58 = vpop.f32.mrf.mxu1  ;;  %3444 = vmatpush.msra.mxu3 %v7074_v60  ;;  %4023 = vrcp.f32 %v5671_v16  ;;  %v1185_v4 = vpack.c.bf16 %v1133_v29, %v1132_v15  ;;  %v2662_v62 = vand.u32 2147483648, %v5661_v6  ;;  %v3103_v54 = vsub.f32 1.0, %v3102_v20 }
 0x244   :  { %v2639_v43 = vmul.f32 %v4012_v52, %v2638_v46  ;;  %v1478_v0 = vadd.f32 %v1477_v58, %v4533_v31  ;;  %vm2656_vm10 = vweird.f32 %v5661_v6  ;;  %vm5718_vm12 = vcmp.eq.f32.partialorder %v2660_v26, 8.507059e+37 }
 0x245   :  { %3445 = vmatpush.msra.mxu3 %v7075_v42  ;;  %v2663_v14 = vor.u32 1.1754944e-38, %v2662_v62  ;;  %v3104_v51 = vmul.f32 %v5669_v5, %v3103_v54  ;;  %v3112_v59 = vand.u32 2147483648, %v5627_v32  ;;  %vm3107_vm8 = vweird.f32 %v5669_v5 }
 0x246   :  { %v1018_v8 = vpop.f32.mrf.mxu0  ;;  %v4018_v47 = vpop.eup %4017  ;;  %v2640_v3 = vadd.f32 %v4012_v52, %v2639_v43  ;;  %v3787_v53 = vmul.f32 -1.442695, %v1478_v0  ;;  %3696 = vmatmul.msk.bf16.gmra.mxu1 %vm1252_vm1, %v1185_v4  ;;  %3736 = vmatmul.msk.bf16.gmra.mxu2 %vm1252_vm1, %v1185_v4  ;;  %vm5745_vm7 = vmor %vm3106_vm4, %vm3107_vm8  ;;  %vm3121_vm3 = vweird.f32 %v5671_v16  ;;  %v3125_v4 = vand.u32 2147483647, %v5671_v16 }
 0x247   :  { %v4020_v44 = vpop.eup %4019  ;;  %v5693_v34 = vadd.f32 1.0, %v4018_v47  ;;  %3446 = vmatpush.msra.mxu3 %v7076_v9  ;;  %v1019_v49 = vadd.f32 %v5287_v35, %v1018_v8  ;;  %v3105_v29 = vadd.f32 %v5669_v5, %v3104_v51  ;;  %v1684_v47 = vadd.f32 %v5674_v19, %v4569_v7 }
 0x248   :  { %v4022_v61 = vpop.eup %4021  ;;  %v2644_v27 = vsel %vm2643_vm5, %v4012_v52, %v2640_v3  ;;  %v2652_v28 = vmul.f32 %v4020_v44, %v5661_v6  ;;  %4025 = vpow2.f32 %v3787_v53  ;;  %vm2657_vm13 = vweird.f32 %v4020_v44 }
 0x249   :  { %v2649_v56 = vsel %vm2646_vm11, %v2648_v23, %v2644_v27  ;;  %4027 = vrcp.f32 %v5693_v34  ;;  %v5702_v22 = vpop.f32.mrf.mxu2  ;;  %3447 = vmatpush.msra.mxu3 %v7077_v21  ;;  %v5709_v25 = vpop.eup %4023  ;;  %v5712_v38 = vadd.f32 1.0, %v4022_v61  ;;  %vm2658_vm6 = vmor %vm2656_vm10, %vm2657_vm13  ;;  %v2675_v0 = vand.u32 2147483647, %v5693_v34 }
 0x24a   :  { %v5704_v2 = vmul.f32 %v2649_v56, %v1679_v55  ;;  %v2653_v11 = vsub.f32 1.0, %v2652_v28  ;;  %4029 = vrcp.f32 %v5686_v12  ;;  %v3117_v8 = vmul.f32 %v5709_v25, %v5671_v16  ;;  %v1756_v27 = vpop.f32.mrf.mxu3 }
 0x24b   :  { %v1479_v50 = vpop.f32.mrf.mxu1  ;;  %v2677_v53 = vand.u32 2147483648, %v5693_v34  ;;  %v1134_v42 = vmax.f32 %v1019_v49, 0.0  ;;  %v3109_v28 = vsel %vm5745_vm7, %v5669_v5, %v3105_v29  ;;  %v3113_v19 = vor.u32 1.1754944e-38, %v3112_v59 }
 0x24c   :  { %v2654_v10 = vmul.f32 %v4020_v44, %v2653_v11  ;;  %v1480_v52 = vadd.f32 %v1479_v50, %v4533_v31  ;;  %vm2671_vm9 = vweird.f32 %v5693_v34  ;;  %vm5765_vm0 = vcmp.eq.f32.partialorder %v2675_v0, 8.507059e+37 }
 0x24d   :  { %v3118_v62 = vsub.f32 1.0, %v3117_v8  ;;  %v2678_v21 = vor.u32 1.1754944e-38, %v2677_v53  ;;  %v1757_v50 = vadd.f32 %v1756_v27, %v4569_v7  ;;  %v3114_v36 = vsel %vm5756_vm15, %v3113_v19, %v3109_v28 }
 0x24e   :  { %v1020_v41 = vpop.f32.mrf.mxu0  ;;  %v4026_v57 = vpop.eup %4025  ;;  %v2655_v13 = vadd.f32 %v4020_v44, %v2654_v10  ;;  %v3788_v40 = vmul.f32 -1.442695, %v1480_v52  ;;  %vm3122_vm5 = vweird.f32 %v5709_v25  ;;  %v3127_v8 = vand.u32 2147483648, %v5671_v16 }
 0x24f   :  { %v4028_v6 = vpop.eup %4027  ;;  %v5726_v46 = vadd.f32 1.0, %v4026_v57  ;;  %v1021_v39 = vadd.f32 %v5287_v35, %v1020_v41  ;;  %v3119_v51 = vmul.f32 %v5709_v25, %v3118_v62  ;;  %v5798_v63 = vmul.f32 %v3114_v36, %v1757_v50 }
 0x250   :  { %v2659_v17 = vsel %vm2658_vm6, %v4020_v44, %v2655_v13  ;;  %v2667_v15 = vmul.f32 %v4028_v6, %v5693_v34  ;;  %4031 = vpow2.f32 %v3788_v40  ;;  %v5733_v58 = vpop.eup %4029  ;;  %vm2672_vm14 = vweird.f32 %v4028_v6 }
 0x251   :  { %v2664_v43 = vsel %vm5718_vm12, %v2663_v14, %v2659_v17  ;;  %4033 = vrcp.f32 %v5726_v46  ;;  %v5739_v60 = vpop.f32.mrf.mxu2  ;;  %v1135_v44 = vmax.f32 %v1021_v39, 0.0  ;;  %vm2673_vm2 = vmor %vm2671_vm9, %vm2672_vm14  ;;  %v2690_v5 = vand.u32 2147483647, %v5726_v46  ;;  %7089 = vst [vmem:[#allocation6_spill] sm:$0xff] %v5798_v63 }
 0x252   :  { %v5751_v20 = vmul.f32 %v2664_v43, %v1682_v1  ;;  %v2668_v3 = vsub.f32 1.0, %v2667_v15  ;;  %v2692_v34 = vand.u32 2147483648, %v5726_v46  ;;  %vm2686_vm11 = vweird.f32 %v5726_v46  ;;  %vm5802_vm12 = vmor %vm3121_vm3, %vm3122_vm5  ;;  %v1758_v32 = vpop.f32.mrf.mxu3 }
 0x253   :  { %v1482_v55 = vpop.f32.mrf.mxu1  ;;  %v1186_v9 = vpack.c.bf16 %v1135_v44, %v1134_v42  ;;  %vm5794_vm10 = vcmp.eq.f32.partialorder %v2690_v5, 8.507059e+37  ;;  %v3120_v29 = vadd.f32 %v5709_v25, %v3119_v51  ;;  %v3128_v27 = vor.u32 1.1754944e-38, %v3127_v8 }
 0x254   :  { %v2669_v23 = vmul.f32 %v4028_v6, %v2668_v3  ;;  %v1483_v61 = vadd.f32 %v1482_v55, %v4533_v31  ;;  %vm3126_vm8 = vcmp.eq.f32.partialorder %v3125_v4, 8.507059e+37  ;;  %vm3136_vm14 = vweird.f32 %v5686_v12 }
 0x255   :  { %v3124_v16 = vsel %vm5802_vm12, %v5709_v25, %v3120_v29  ;;  %vm3137_vm15 = vweird.f32 %v5733_v58  ;;  %v1689_v29 = vadd.f32 %v5739_v60, %v4569_v7  ;;  %vm3151_vm12 = vweird.f32 %v5712_v38 }
 0x256   :  { %v1023_v56 = vpop.f32.mrf.mxu0  ;;  %v4032_v54 = vpop.eup %4031  ;;  %v2670_v11 = vadd.f32 %v4028_v6, %v2669_v23  ;;  %v3789_v1 = vmul.f32 -1.442695, %v1483_v61  ;;  %3697 = vmatmul.msk.bf16.gmra.mxu1 %vm1252_vm1, %v1186_v9  ;;  %3737 = vmatmul.msk.bf16.gmra.mxu2 %vm1252_vm1, %v1186_v9  ;;  %v3129_v50 = vsel %vm3126_vm8, %v3128_v27, %v3124_v16 }
 0x257   :  { %v4034_v10 = vpop.eup %4033  ;;  %v5773_v52 = vadd.f32 1.0, %v4032_v54  ;;  %v1024_v42 = vadd.f32 %v5287_v35, %v1023_v56  ;;  %v1759_v56 = vadd.f32 %v1758_v32, %v4569_v7 }
 0x258   :  { %v2674_v14 = vsel %vm2673_vm2, %v4028_v6, %v2670_v11  ;;  %v2682_v41 = vmul.f32 %v4034_v10, %v5726_v46  ;;  %4035 = vpow2.f32 %v3789_v1  ;;  %v1687_v6 = vadd.f32 %v5702_v22, %v4569_v7 }
 0x259   :  { %v2679_v59 = vsel %vm5765_vm0, %v2678_v21, %v2674_v14  ;;  %4037 = vrcp.f32 %v5773_v52  ;;  %v5784_v57 = vpop.f32.mrf.mxu2  ;;  %vm2687_vm13 = vweird.f32 %v4034_v10  ;;  %v2693_v22 = vor.u32 1.1754944e-38, %v2692_v34  ;;  %vm5847_vm0 = vmor %vm3136_vm14, %vm3137_vm15 }
 0x25a   :  { %4039 = vrcp.f32 %v5712_v38  ;;  %v5789_v13 = vmul.f32 %v2679_v59, %v1684_v47  ;;  %v2683_v40 = vsub.f32 1.0, %v2682_v41  ;;  %v3132_v47 = vmul.f32 %v5733_v58, %v5686_v12  ;;  %vm2688_vm4 = vmor %vm2686_vm11, %vm2687_vm13  ;;  %v1761_v8 = vpop.f32.mrf.mxu3 }
 0x25b   :  { %v1484_v39 = vpop.f32.mrf.mxu1  ;;  %v1136_v54 = vmax.f32 %v1024_v42, 0.0  ;;  %v2707_v21 = vand.u32 2147483648, %v5773_v52  ;;  %v2705_v34 = vand.u32 2147483647, %v5773_v52  ;;  %vm2701_vm7 = vweird.f32 %v5773_v52 }
 0x25c   :  { %v2684_v17 = vmul.f32 %v4034_v10, %v2683_v40  ;;  %v1485_v15 = vadd.f32 %v1484_v39, %v4533_v31  ;;  %v3133_v28 = vsub.f32 1.0, %v3132_v47  ;;  %v5837_v14 = vmul.f32 %v3129_v50, %v1759_v56 }
 0x25d   :  { %v2708_v49 = vor.u32 1.1754944e-38, %v2707_v21  ;;  %vm2706_vm2 = vcmp.eq.f32.partialorder %v2705_v34, 8.507059e+37  ;;  %v3157_v50 = vand.u32 2147483648, %v5712_v38  ;;  %v3155_v34 = vand.u32 2147483647, %v5712_v38 }
 0x25e   :  { %v1025_v0 = vpop.f32.mrf.mxu0  ;;  %v4036_v3 = vpop.eup %4035  ;;  %v2685_v53 = vadd.f32 %v4034_v10, %v2684_v17  ;;  %v3790_v44 = vmul.f32 -1.442695, %v1485_v15  ;;  %7092 = vst [vmem:[#allocation14_spill] sm:$0xff] %v5837_v14  ;;  %v3140_v17 = vand.u32 2147483647, %v5686_v12  ;;  %v3142_v15 = vand.u32 2147483648, %v5686_v12 }
 0x25f   :  { %v1026_v55 = vadd.f32 %v5287_v35, %v1025_v0  ;;  %v4038_v23 = vpop.eup %4037  ;;  %v5815_v61 = vadd.f32 1.0, %v4036_v3 }
 0x260   :  { %v5820_v19 = vpop.eup %4039  ;;  %v2689_v26 = vsel %vm2688_vm4, %v4034_v10, %v2685_v53  ;;  %v2697_v9 = vmul.f32 %v4038_v23, %v5773_v52  ;;  %4041 = vpow2.f32 %v3790_v44  ;;  %vm2702_vm6 = vweird.f32 %v4038_v23 }
 0x261   :  { %v2694_v35 = vsel %vm5794_vm10, %v2693_v22, %v2689_v26  ;;  %4043 = vrcp.f32 %v5815_v61  ;;  %v5826_v46 = vpop.f32.mrf.mxu2  ;;  %v1137_v11 = vmax.f32 %v1026_v55, 0.0  ;;  %v3134_v10 = vmul.f32 %v5733_v58, %v3133_v28  ;;  %vm2703_vm9 = vmor %vm2701_vm7, %vm2702_vm6 }
 0x262   :  { %v5829_v62 = vmul.f32 %v2694_v35, %v1687_v6  ;;  %v2698_v25 = vsub.f32 1.0, %v2697_v9  ;;  %v1762_v53 = vadd.f32 %v1761_v8, %v4569_v7  ;;  %v2722_v60 = vand.u32 2147483648, %v5815_v61 }
 0x263   :  { %v5832_v1 = vpop.f32.mrf.mxu1  ;;  %v1187_v36 = vpack.c.bf16 %v1137_v11, %v1136_v54  ;;  %v3135_v40 = vadd.f32 %v5733_v58, %v3134_v10  ;;  %vm3141_vm3 = vcmp.eq.f32.partialorder %v3140_v17, 8.507059e+37  ;;  %v3143_v44 = vor.u32 1.1754944e-38, %v3142_v15  ;;  %v1763_v15 = vpop.f32.mrf.mxu3 }
 0x264   :  { %v2699_v5 = vmul.f32 %v4038_v23, %v2698_v25  ;;  %v2720_v32 = vand.u32 2147483647, %v5815_v61  ;;  %vm2716_vm11 = vweird.f32 %v5815_v61  ;;  %v1692_v25 = vadd.f32 %v5784_v57, %v4569_v7 }
 0x265   :  { %v3139_v12 = vsel %vm5847_vm0, %v5733_v58, %v3135_v40  ;;  %v5873_v58 = vld [vmem:[%s6970_s3] ss:$0 sm:$0xff]  ;;  %vm3152_vm4 = vweird.f32 %v5820_v19  ;;  %vm3156_vm7 = vcmp.eq.f32.partialorder %v3155_v34, 8.507059e+37 }
 0x266   :  { %v1028_v41 = vpop.f32.mrf.mxu0  ;;  %v4042_v51 = vpop.eup %4041  ;;  %v2700_v59 = vadd.f32 %v4038_v23, %v2699_v5  ;;  %3698 = vmatmul.msk.bf16.gmra.mxu1 %vm1252_vm1, %v1187_v36  ;;  %3738 = vmatmul.msk.bf16.gmra.mxu2 %vm1252_vm1, %v1187_v36  ;;  %v3144_v16 = vsel %vm3141_vm3, %v3143_v44, %v3139_v12  ;;  %vm2721_vm13 = vcmp.eq.f32.partialorder %v2720_v32, 8.507059e+37  ;;  %vm5895_vm6 = vmor %vm3151_vm12, %vm3152_vm4 }
 0x267   :  { %v4044_v6 = vpop.eup %4043  ;;  %v5843_v39 = vadd.f32 1.0, %v4042_v51  ;;  %v1029_v26 = vadd.f32 %v5873_v58, %v1028_v41  ;;  %v5876_v9 = vmul.f32 %v3144_v16, %v1762_v53 }
 0x268   :  { %v2704_v43 = vsel %vm2703_vm9, %v4038_v23, %v2700_v59  ;;  %v2712_v22 = vmul.f32 %v4044_v6, %v5815_v61  ;;  %vm2717_vm5 = vweird.f32 %v4044_v6  ;;  %v3147_v23 = vmul.f32 %v5820_v19, %v5712_v38 }
 0x269   :  { %v2709_v0 = vsel %vm2706_vm2, %v2708_v49, %v2704_v43  ;;  %4045 = vrcp.f32 %v5843_v39  ;;  %v5857_v4 = vpop.f32.mrf.mxu2  ;;  %7095 = vst [vmem:[#allocation13_spill] sm:$0xff] %v5876_v9  ;;  %vm2718_vm10 = vmor %vm2716_vm11, %vm2717_vm5  ;;  %v2723_v61 = vor.u32 1.1754944e-38, %v2722_v60  ;;  %v1138_v41 = vmax.f32 %v1029_v26, 0.0 }
 0x26a   :  { %v5859_v47 = vmul.f32 %v2709_v0, %v1689_v29  ;;  %v2713_v3 = vsub.f32 1.0, %v2712_v22  ;;  %v3148_v54 = vsub.f32 1.0, %v3147_v23  ;;  %v2735_v59 = vand.u32 2147483647, %v5843_v39 }
 0x26b   :  { %v1489_v42 = vpop.f32.mrf.mxu1  ;;  %v2737_v40 = vand.u32 2147483648, %v5843_v39  ;;  %v3158_v43 = vor.u32 1.1754944e-38, %v3157_v50  ;;  %v1488_v22 = vadd.f32 %v5832_v1, %v4533_v31  ;;  %vm2731_vm14 = vweird.f32 %v5843_v39 }
 0x26c   :  { %v2714_v55 = vmul.f32 %v4044_v6, %v2713_v3  ;;  %v1764_v38 = vadd.f32 %v1763_v15, %v4569_v7  ;;  %v1694_v1 = vadd.f32 %v5826_v46, %v4569_v7  ;;  %vm2736_vm9 = vcmp.eq.f32.partialorder %v2735_v59, 8.507059e+37 }
 0x26d   :  { %v2738_v53 = vor.u32 1.1754944e-38, %v2737_v40  ;;  %v1490_v23 = vadd.f32 %v1489_v42, %v4533_v31 }
 0x26e   :  { %v1030_v27 = vpop.f32.mrf.mxu0  ;;  %v2715_v28 = vadd.f32 %v4044_v6, %v2714_v55 }
 0x26f   :  { %v1031_v35 = vadd.f32 %v5873_v58, %v1030_v27  ;;  %v4046_v56 = vpop.eup %4045 }
 0x270   :  { %v2719_v11 = vsel %vm2718_vm10, %v4044_v6, %v2715_v28  ;;  %v2727_v21 = vmul.f32 %v4046_v56, %v5843_v39  ;;  %v3149_v6 = vmul.f32 %v5820_v19, %v3148_v54  ;;  %vm2732_vm8 = vweird.f32 %v4046_v56 }
 0x271   :  { %v2724_v10 = vsel %vm2721_vm13, %v2723_v61, %v2719_v11  ;;  %v5883_v5 = vpop.f32.mrf.mxu2  ;;  %v1139_v51 = vmax.f32 %v1031_v35, 0.0  ;;  %vm2733_vm15 = vmor %vm2731_vm14, %vm2732_vm8  ;;  %v3791_v39 = vmul.f32 -1.442695, %v1488_v22  ;;  %v3792_v35 = vmul.f32 -1.442695, %v1490_v23 }
 0x272   :  { %v5888_v36 = vmul.f32 %v2724_v10, %v1692_v25  ;;  %v2728_v57 = vsub.f32 1.0, %v2727_v21  ;;  %v3150_v0 = vadd.f32 %v5820_v19, %v3149_v6 }
 0x273   :  { %v1188_v52 = vpack.c.bf16 %v1139_v51, %v1138_v41  ;;  %v1492_v17 = vpop.f32.mrf.mxu1  ;;  %4047 = vpow2.f32 %v3791_v39 }
 0x274   :  { %v2729_v49 = vmul.f32 %v4046_v56, %v2728_v57  ;;  %v3154_v12 = vsel %vm5895_vm6, %v5820_v19, %v3150_v0  ;;  %v1493_v19 = vadd.f32 %v1492_v17, %v4533_v31  ;;  %4049 = vpow2.f32 %v3792_v35 }
 0x275   :  { %v3159_v44 = vsel %vm3156_vm7, %v3158_v43, %v3154_v12 }
 0x276   :  { %v1033_v8 = vpop.f32.mrf.mxu0  ;;  %v2730_v3 = vadd.f32 %v4046_v56, %v2729_v49  ;;  %3699 = vmatmul.msk.bf16.gmra.mxu1 %vm1252_vm1, %v1188_v52  ;;  %3739 = vmatmul.msk.bf16.gmra.mxu2 %vm1252_vm1, %v1188_v52  ;;  %v5916_v27 = vmul.f32 %v3159_v44, %v1764_v38  ;;  %v3793_v61 = vmul.f32 -1.442695, %v1493_v19 }
 0x277   :  { %v1034_v46 = vadd.f32 %v5873_v58, %v1033_v8 }
 0x278   :  { %v2734_v60 = vsel %vm2733_vm15, %v4046_v56, %v2730_v3  ;;  %7098 = vst [vmem:[#allocation12_spill] sm:$0xff] %v5916_v27  ;;  %4051 = vpow2.f32 %v3793_v61 }
 0x279   :  { %v2739_v55 = vsel %vm2736_vm9, %v2738_v53, %v2734_v60  ;;  %v5914_v16 = vpop.f32.mrf.mxu2  ;;  %v1140_v54 = vmax.f32 %v1034_v46, 0.0  ;;  %v4048_v21 = vpop.eup %4047 }
 0x27a   :  { %v5911_v32 = vmul.f32 %v2739_v55, %v1694_v1  ;;  %v5925_v51 = vadd.f32 1.0, %v4048_v21  ;;  %v4050_v40 = vpop.eup %4049 }
 0x27b   :  { %v1494_v28 = vpop.f32.mrf.mxu1  ;;  %v5932_v52 = vadd.f32 1.0, %v4050_v40 }
 0x27c   :  { %v1495_v25 = vadd.f32 %v1494_v28, %v4533_v31  ;;  %vm2746_vm0 = vweird.f32 %v5925_v51 }
 0x27d   :  { %vm2761_vm15 = vweird.f32 %v5932_v52 }
 0x27e   :  { %v1035_v26 = vpop.f32.mrf.mxu0  ;;  %v3794_v50 = vmul.f32 -1.442695, %v1495_v25  ;;  %v4052_v49 = vpop.eup %4051 }
 0x27f   :  { %v1036_v56 = vadd.f32 %v5873_v58, %v1035_v26  ;;  %v5935_v43 = vadd.f32 1.0, %v4052_v49  ;;  %v5980_v49 = vadd.f32 %v5857_v4, %v4569_v7 }
 0x280   :  { %4053 = vpow2.f32 %v3794_v50 }
 0x281   :  { %v1141_v42 = vmax.f32 %v1036_v56, 0.0  ;;  %v5922_v11 = vpop.f32.mrf.mxu2  ;;  %vm2776_vm8 = vweird.f32 %v5935_v43 }
 0x283   :  { %v1189_v10 = vpack.c.bf16 %v1141_v42, %v1140_v54  ;;  %v1497_v34 = vpop.f32.mrf.mxu1 }
 0x284   :  { %v1498_v57 = vadd.f32 %v1497_v34, %v4533_v31 }
 0x286   :  { %v1038_v41 = vpop.f32.mrf.mxu0  ;;  %v3795_v59 = vmul.f32 -1.442695, %v1498_v57  ;;  %3700 = vmatmul.msk.bf16.gmra.mxu1 %vm1252_vm1, %v1189_v10  ;;  %3740 = vmatmul.msk.bf16.gmra.mxu2 %vm1252_vm1, %v1189_v10  ;;  %v4054_v15 = vpop.eup %4053 }
 0x287   :  { %v1039_v3 = vadd.f32 %v5873_v58, %v1038_v41  ;;  %v5941_v38 = vadd.f32 1.0, %v4054_v15  ;;  %v2752_v41 = vand.u32 2147483648, %v5925_v51 }
 0x288   :  { %4055 = vpow2.f32 %v3795_v59 }
 0x289   :  { %4057 = vrcp.f32 %v5925_v51  ;;  %v5930_v6 = vpop.f32.mrf.mxu2  ;;  %v1142_v55 = vmax.f32 %v1039_v3, 0.0  ;;  %vm2791_vm3 = vweird.f32 %v5941_v38 }
 0x28a   :  { %4059 = vrcp.f32 %v5932_v52 }
 0x28b   :  { %v1499_v17 = vpop.f32.mrf.mxu1 }
 0x28c   :  { %v1500_v29 = vadd.f32 %v1499_v17, %v4533_v31  ;;  %v2767_v17 = vand.u32 2147483648, %v5932_v52 }
 0x28e   :  { %v1040_v22 = vpop.f32.mrf.mxu0  ;;  %v4056_v0 = vpop.eup %4055  ;;  %v3796_v8 = vmul.f32 -1.442695, %v1500_v29 }
 0x28f   :  { %v5939_v53 = vpop.eup %4057  ;;  %v5943_v12 = vadd.f32 1.0, %v4056_v0  ;;  %v1041_v1 = vadd.f32 %v5873_v58, %v1040_v22 }
 0x290   :  { %4061 = vpow2.f32 %v3796_v8  ;;  %v2742_v44 = vmul.f32 %v5939_v53, %v5925_v51  ;;  %v5952_v23 = vpop.eup %4059 }
 0x291   :  { %4063 = vrcp.f32 %v5935_v43  ;;  %v5947_v60 = vpop.f32.mrf.mxu2  ;;  %v1143_v19 = vmax.f32 %v1041_v1, 0.0  ;;  %v2757_v25 = vmul.f32 %v5952_v23, %v5932_v52  ;;  %vm2806_vm10 = vweird.f32 %v5943_v12 }
 0x292   :  { %4065 = vrcp.f32 %v5941_v38  ;;  %v2743_v58 = vsub.f32 1.0, %v2742_v44  ;;  %vm2762_vm4 = vweird.f32 %v5952_v23 }
 0x293   :  { %v1502_v39 = vpop.f32.mrf.mxu1  ;;  %4067 = vrcp.f32 %v5943_v12  ;;  %v1190_v46 = vpack.c.bf16 %v1143_v19, %v1142_v55  ;;  %v2758_v34 = vsub.f32 1.0, %v2757_v25  ;;  %v5996_v55 = vor.u32 1.1754944e-38, %v2752_v41 }
 0x294   :  { %v1503_v28 = vadd.f32 %v1502_v39, %v4533_v31  ;;  %v2744_v50 = vmul.f32 %v5939_v53, %v2743_v58  ;;  %v6000_v39 = vadd.f32 %v5883_v5, %v4569_v7  ;;  %v2812_v5 = vand.u32 2147483648, %v5943_v12 }
 0x295   :  { %v2759_v1 = vmul.f32 %v5952_v23, %v2758_v34 }
 0x296   :  { %v4062_v26 = vpop.eup %4061  ;;  %v3797_v35 = vmul.f32 -1.442695, %v1503_v28  ;;  %3701 = vmatmul.msk.bf16.gmra.mxu1 %vm1252_vm1, %v1190_v46  ;;  %3741 = vmatmul.msk.bf16.gmra.mxu2 %vm1252_vm1, %v1190_v46  ;;  %v5986_v22 = vadd.f32 %v5939_v53, %v2744_v50  ;;  %vm2747_vm1 = vweird.f32 %v5939_v53  ;;  %v2813_v4 = vor.u32 1.1754944e-38, %v2812_v5 }
 0x297   :  { %v5956_v56 = vpop.eup %4063  ;;  %v5960_v61 = vadd.f32 1.0, %v4062_v26  ;;  %vm6004_vm2 = vmor %vm2746_vm0, %vm2747_vm1  ;;  %v6020_v34 = vadd.f32 %v5952_v23, %v2759_v1 }
 0x298   :  { %4069 = vpow2.f32 %v3797_v35  ;;  %v5964_v54 = vpop.eup %4065  ;;  %v2772_v10 = vmul.f32 %v5956_v56, %v5935_v43  ;;  %v6009_v35 = vor.u32 1.1754944e-38, %v2767_v17  ;;  %vm2777_vm5 = vweird.f32 %v5956_v56 }
 0x299   :  { %4071 = vrcp.f32 %v5960_v61  ;;  %v5967_v42 = vpop.f32.mrf.mxu2  ;;  %v5969_v21 = vpop.eup %4067  ;;  %v2787_v59 = vmul.f32 %v5964_v54, %v5941_v38  ;;  %vm2792_vm11 = vweird.f32 %v5964_v54  ;;  %vm2821_vm7 = vweird.f32 %v5960_v61 }
 0x29a   :  { %v2802_v15 = vmul.f32 %v5969_v21, %v5943_v12  ;;  %v2773_v0 = vsub.f32 1.0, %v2772_v10  ;;  %vm2807_vm12 = vweird.f32 %v5969_v21  ;;  %vm6082_vm9 = vmor %vm2791_vm3, %vm2792_vm11 }
 0x29b   :  { %v1504_v57 = vpop.f32.mrf.mxu1  ;;  %v2788_v28 = vsub.f32 1.0, %v2787_v59  ;;  %v6026_v59 = vadd.f32 %v5922_v11, %v4569_v7  ;;  %vm6095_vm1 = vmor %vm2806_vm10, %vm2807_vm12 }
 0x29c   :  { %v1505_v40 = vadd.f32 %v1504_v57, %v4533_v31  ;;  %v2803_v46 = vsub.f32 1.0, %v2802_v15  ;;  %v2774_v50 = vmul.f32 %v5956_v56, %v2773_v0  ;;  %v7123_v0 = vand.u32 2147483647, %v5935_v43 }
 0x29d   :  { %v2789_v17 = vmul.f32 %v5964_v54, %v2788_v28  ;;  %v2827_v28 = vand.u32 2147483648, %v5960_v61 }
 0x29e   :  { %v4070_v29 = vpop.eup %4069  ;;  %v3798_v8 = vmul.f32 -1.442695, %v1505_v40  ;;  %v2804_v1 = vmul.f32 %v5969_v21, %v2803_v46  ;;  %v6037_v11 = vadd.f32 %v5956_v56, %v2774_v50 }
 0x29f   :  { %v5989_v3 = vpop.eup %4071  ;;  %v5994_v44 = vadd.f32 1.0, %v4070_v29  ;;  %v6047_v50 = vadd.f32 %v5964_v54, %v2789_v17  ;;  %v2825_v17 = vand.u32 2147483647, %v5960_v61 }
 0x2a0   :  { %v2817_v19 = vmul.f32 %v5989_v3, %v5960_v61  ;;  %vm2822_vm13 = vweird.f32 %v5989_v3  ;;  %v6075_v61 = vld [vmem:[%s6967_s0] sm:$0x1f] }
 0x2a1   :  { %4073 = vrcp.f32 %v5994_v44  ;;  %v6012_v25 = vpop.f32.mrf.mxu2  ;;  %vm6068_vm14 = vmor %vm2821_vm7, %vm2822_vm13  ;;  %v2840_v9 = vand.u32 2147483647, %v5994_v44  ;;  %vm2826_vm3 = vcmp.eq.f32.partialorder %v2825_v17, 8.507059e+37  ;;  %vm2836_vm11 = vweird.f32 %v5994_v44 }
 0x2a2   :  { %v2818_v10 = vsub.f32 1.0, %v2817_v19  ;;  %4075 = vpow2.f32 %v3798_v8  ;;  %v2810_v19 = vand.u32 2147483647, %v5943_v12  ;;  %v718_v12 = vperm.slane %v6075_v61, 0 }
 0x2a3   :  { %v1507_v40 = vpop.f32.mrf.mxu1  ;;  %vm2841_vm7 = vcmp.eq.f32.partialorder %v2840_v9, 8.507059e+37 }
 0x2a4   :  { %v2819_v15 = vmul.f32 %v5989_v3, %v2818_v10  ;;  %v1508_v29 = vadd.f32 %v1507_v40, %v4533_v31  ;;  %vm6054_vm6 = vcmp.eq.f32.partialorder %v2810_v19, 8.507059e+37  ;;  %v2828_v19 = vor.u32 1.1754944e-38, %v2827_v28 }
 0x2a5   :  { %v2842_v28 = vand.u32 2147483648, %v5994_v44 }
 0x2a6   :  { %v3799_v41 = vmul.f32 -1.442695, %v1508_v29  ;;  %v2820_v10 = vadd.f32 %v5989_v3, %v2819_v15  ;;  %v2805_v29 = vadd.f32 %v5969_v21, %v2804_v1 }
 0x2a7   :  { %v4074_v57 = vpop.eup %4073 }
 0x2a8   :  { %v4076_v46 = vpop.eup %4075  ;;  %v2832_v40 = vmul.f32 %v4074_v57, %v5994_v44  ;;  %4077 = vpow2.f32 %v3799_v41  ;;  %v1709_v41 = vadd.f32 %v5947_v60, %v4569_v7  ;;  %v2824_v5 = vsel %vm6068_vm14, %v5989_v3, %v2820_v10  ;;  %vm6135_vm14 = vmor %vm2776_vm8, %vm2777_vm5 }
 0x2a9   :  { %v6060_v15 = vadd.f32 1.0, %v4076_v46  ;;  %v6062_v8 = vpop.f32.mrf.mxu2  ;;  %vm2837_vm0 = vweird.f32 %v4074_v57  ;;  %v2794_v10 = vsel %vm6082_vm9, %v5964_v54, %v6047_v50  ;;  %v2809_v1 = vsel %vm6095_vm1, %v5969_v21, %v2805_v29 }
 0x2aa   :  { %v2833_v58 = vsub.f32 1.0, %v2832_v40  ;;  %v99_v40 = vlaneseq  ;;  %v2829_v33 = vsel %vm2826_vm3, %v2828_v19, %v2824_v5  ;;  %vm2838_vm13 = vmor %vm2836_vm11, %vm2837_vm0  ;;  %v2843_v54 = vor.u32 1.1754944e-38, %v2842_v28 }
 0x2ab   :  { %4079 = vrcp.f32 %v6060_v15  ;;  %v1509_v46 = vpop.f32.mrf.mxu1  ;;  %v3391_v21 = vperm.slane %v718_v12, 0  ;;  %v7113_v29 = vand.u32 2147483647, %v5925_v51  ;;  %v1712_v44 = vadd.f32 %v5967_v42, %v4569_v7 }
 0x2ac   :  { %v2834_v14 = vmul.f32 %v4074_v57, %v2833_v58  ;;  %v1510_v3 = vadd.f32 %v1509_v46, %v4533_v31  ;;  %v7109_v46 = vand.u32 2147483647, %v5932_v52  ;;  %v6118_v63 = vshrl.u32 %v99_v40, 7 }
 0x2ad   :  { %vm6122_vm12 = vcmp.eq.f32.partialorder %v7113_v29, 8.507059e+37  ;;  %v3358_v60 = vmul.f32 %v2829_v33, %v1709_v41  ;;  %v7118_v42 = vand.u32 2147483648, %v5941_v38  ;;  %v2779_v41 = vsel %vm6135_vm14, %v5956_v56, %v6037_v11 }
 0x2ae   :  { %v4078_v27 = vpop.eup %4077  ;;  %v2835_v58 = vadd.f32 %v4074_v57, %v2834_v14  ;;  %v3800_v18 = vmul.f32 -1.442695, %v1510_v3  ;;  %vm6112_vm10 = vcmp.eq.f32.partialorder %v7109_v46, 8.507059e+37  ;;  %7112 = vst [vmem:[#allocation11_spill] sm:$0xff] %v6118_v63  ;;  %v7120_v28 = vand.u32 2147483647, %v5941_v38 }
 0x2af   :  { %v6116_v50 = vadd.f32 1.0, %v4078_v27  ;;  %v1707_v40 = vadd.f32 %v5930_v6, %v4569_v7  ;;  %vm3396_vm8 = vcmp.eq.s32.totalorder %v3391_v21, %v6118_v63  ;;  %vm2781_vm9 = vcmp.eq.f32.partialorder %v7123_v0, 8.507059e+37 }
 0x2b0   :  { %v2839_v17 = vsel %vm2838_vm13, %v4074_v57, %v2835_v58  ;;  %4081 = vpow2.f32 %v3800_v18  ;;  %v2798_v57 = vor.u32 1.1754944e-38, %v7118_v42  ;;  %v2814_v18 = vsel %vm6054_vm6, %v2813_v4, %v2809_v1  ;;  %vm6159_vm6 = vmor %vm2761_vm15, %vm2762_vm4 }
 0x2b1   :  { %v4080_v19 = vpop.eup %4079  ;;  %v2844_v5 = vsel %vm2841_vm7, %v2843_v54, %v2839_v17  ;;  %4083 = vrcp.f32 %v6116_v50  ;;  %v6129_v27 = vpop.f32.mrf.mxu2  ;;  %vm2796_vm5 = vcmp.eq.f32.partialorder %v7120_v28, 8.507059e+37  ;;  %v7124_v38 = vand.u32 2147483648, %v5935_v43 }
 0x2b2   :  { %v6143_v33 = vmul.f32 %v2844_v5, %v1712_v44  ;;  %v2847_v9 = vmul.f32 %v4080_v19, %v6060_v15  ;;  %v2799_v11 = vsel %vm2796_vm5, %v2798_v57, %v2794_v10  ;;  %v6981_v6 = vmov 1.0  }
 0x2b3   :  { %v1512_v3 = vpop.f32.mrf.mxu1  ;;  %v2783_v56 = vor.u32 1.1754944e-38, %v7124_v38  ;;  %3834 = vmatmul.msk.f32.vlgmr.msrb.gmra.mxu3 %vm3396_vm8, %v6981_v6  ;;  %v2764_v52 = vsel %vm6159_vm6, %v5952_v23, %v6020_v34  ;;  %v3357_v12 = vmul.f32 %v2814_v18, %v1707_v40  ;;  %v2857_v58 = vand.u32 2147483648, %v6060_v15 }
 0x2b4   :  { %7119 = vst [vmem:[#allocation20_spill] sm:$0xff] %v6143_v33  ;;  %v2848_v1 = vsub.f32 1.0, %v2847_v9  ;;  %3452 = vmatpush.msrb.mxu3 %v3358_v60  ;;  %v1513_v46 = vadd.f32 %v1512_v3, %v4533_v31  ;;  %vm2852_vm4 = vweird.f32 %v4080_v19  ;;  %v2855_v10 = vand.u32 2147483647, %v6060_v15 }
 0x2b5   :  { %v2784_v21 = vsel %vm2781_vm9, %v2783_v56, %v2779_v41  ;;  %v1702_v44 = vadd.f32 %v5914_v16, %v4569_v7  ;;  %v3356_v17 = vmul.f32 %v2799_v11, %v6026_v59  ;;  %v2769_v34 = vsel %vm6112_vm10, %v6009_v35, %v2764_v52 }
 0x2b6   :  { %v4082_v54 = vpop.eup %4081  ;;  %v2849_v43 = vmul.f32 %v4080_v19, %v2848_v1  ;;  %3453 = vmatpush.msrb.mxu3 %v3357_v12  ;;  %v3801_v23 = vmul.f32 -1.442695, %v1513_v46  ;;  %vm2851_vm15 = vweird.f32 %v6060_v15  ;;  %v7125_v16 = vsel %vm6004_vm2, %v5939_v53, %v5986_v22 }
 0x2b7   :  { %v4084_v29 = vpop.eup %4083  ;;  %v6178_v5 = vadd.f32 1.0, %v4082_v54  ;;  %v2754_v59 = vsel %vm6122_vm12, %v5996_v55, %v7125_v16  ;;  %v3355_v42 = vmul.f32 %v2784_v21, %v1702_v44  ;;  %vm2853_vm1 = vmor %vm2851_vm15, %vm2852_vm4  ;;  %v2858_v57 = vor.u32 1.1754944e-38, %v2857_v58 }
 0x2b8   :  { %v2850_v60 = vadd.f32 %v4080_v19, %v2849_v43  ;;  %v2862_v51 = vmul.f32 %v4084_v29, %v6116_v50  ;;  %3454 = vmatpush.msrb.mxu3 %v3356_v17  ;;  %v1714_v35 = vadd.f32 %v6012_v25, %v4569_v7  ;;  %vm2856_vm0 = vcmp.eq.f32.partialorder %v2855_v10, 8.507059e+37 }
 0x2b9   :  { %4085 = vrcp.f32 %v6178_v5  ;;  %v6194_v24 = vpop.f32.mrf.mxu2  ;;  %v3354_v53 = vmul.f32 %v2769_v34, %v6000_v39  ;;  %v2872_v14 = vand.u32 2147483648, %v6116_v50  ;;  %vm2867_vm2 = vweird.f32 %v4084_v29 }
 0x2ba   :  { %v2854_v15 = vsel %vm2853_vm1, %v4080_v19, %v2850_v60  ;;  %v2863_v26 = vsub.f32 1.0, %v2862_v51  ;;  %3455 = vmatpush.msrb.mxu3 %v3355_v42  ;;  %4087 = vpow2.f32 %v3801_v23  ;;  %v2870_v41 = vand.u32 2147483647, %v6116_v50 }
 0x2bb   :  { %v2859_v22 = vsel %vm2856_vm0, %v2858_v57, %v2854_v15  ;;  %v1514_v55 = vpop.f32.mrf.mxu1  ;;  %v3353_v28 = vmul.f32 %v2754_v59, %v5980_v49  ;;  %vm2866_vm3 = vweird.f32 %v6116_v50  ;;  %v2873_v40 = vor.u32 1.1754944e-38, %v2872_v14 }
 0x2bc   :  { %v6200_v18 = vmul.f32 %v2859_v22, %v1714_v35  ;;  %v2864_v9 = vmul.f32 %v4084_v29, %v2863_v26  ;;  %3456 = vmatpush.msrb.mxu3 %v3354_v53  ;;  %v1515_v39 = vadd.f32 %v1514_v55, %v4533_v31  ;;  %vm2868_vm11 = vmor %vm2866_vm3, %vm2867_vm2  ;;  %v1717_v3 = vadd.f32 %v6062_v8, %v4569_v7 }
 0x2bd   :  { %vm2871_vm10 = vcmp.eq.f32.partialorder %v2870_v41, 8.507059e+37  ;;  %v2887_v12 = vand.u32 2147483648, %v6178_v5  ;;  %v2885_v46 = vand.u32 2147483647, %v6178_v5  ;;  %vm2881_vm12 = vweird.f32 %v6178_v5 }
 0x2be   :  { %7126 = vst [vmem:[#allocation21_spill] sm:$0xff] %v6200_v18  ;;  %v2865_v25 = vadd.f32 %v4084_v29, %v2864_v9  ;;  %3457 = vmatpush.msrb.mxu3 %v3353_v28  ;;  %v3802_v49 = vmul.f32 -1.442695, %v1515_v39  ;;  %v1722_v15 = vadd.f32 %v6194_v24, %v4569_v7 }
 0x2bf   :  { %v4086_v19 = vpop.eup %4085  ;;  %v2888_v21 = vor.u32 1.1754944e-38, %v2887_v12  ;;  %vm2886_vm14 = vcmp.eq.f32.partialorder %v2885_v46, 8.507059e+37 }
 0x2c0   :  { %v2869_v4 = vsel %vm2868_vm11, %v4084_v29, %v2865_v25  ;;  %v2877_v0 = vmul.f32 %v4086_v19, %v6178_v5  ;;  %v4088_v38 = vpop.eup %4087  ;;  %3458 = vmatpush.msrb.mxu3 %v5911_v32  ;;  %4089 = vpow2.f32 %v3802_v49  ;;  %vm2882_vm13 = vweird.f32 %v4086_v19 }
 0x2c1   :  { %v2874_v56 = vsel %vm2871_vm10, %v2873_v40, %v2869_v4  ;;  %v6210_v11 = vpop.f32.mrf.mxu2  ;;  %v2083_v52 = vadd.f32 1.0, %v4088_v38  ;;  %vm2883_vm7 = vmor %vm2881_vm12, %vm2882_vm13 }
 0x2c2   :  { %v6212_v50 = vmul.f32 %v2874_v56, %v1717_v3  ;;  %v2878_v1 = vsub.f32 1.0, %v2877_v0  ;;  %3459 = vmatpush.msrb.mxu3 %v5888_v36  ;;  %v1719_v36 = vadd.f32 %v6129_v27, %v4569_v7  ;;  %v1724_v0 = vadd.f32 %v6210_v11, %v4569_v7 }
 0x2c3   :  { %v1517_v8 = vpop.f32.mrf.mxu1  ;;  %4091 = vrcp.f32 %v2083_v52  ;;  %v2902_v60 = vand.u32 2147483648, %v2083_v52  ;;  %vm2896_vm8 = vweird.f32 %v2083_v52 }
 0x2c4   :  { %7127 = vst [vmem:[#allocation22_spill] sm:$0xff] %v6212_v50  ;;  %v2879_v58 = vmul.f32 %v4086_v19, %v2878_v1  ;;  %3460 = vmatpush.msrb.mxu3 %v5859_v47  ;;  %v1518_v54 = vadd.f32 %v1517_v8, %v4533_v31 }
 0x2c6   :  { %v2880_v32 = vadd.f32 %v4086_v19, %v2879_v58  ;;  %3461 = vmatpush.msrb.mxu3 %v5829_v62  ;;  %v3803_v10 = vmul.f32 -1.442695, %v1518_v54  ;;  %v4090_v29 = vpop.eup %4089 }
 0x2c7   :  { %v2084_v5 = vadd.f32 1.0, %v4090_v29 }
 0x2c8   :  { %v2884_v43 = vsel %vm2883_vm7, %v4086_v19, %v2880_v32  ;;  %3462 = vmatpush.msrb.mxu3 %v5789_v13  ;;  %4093 = vpow2.f32 %v3803_v10  ;;  %v2900_v13 = vand.u32 2147483647, %v2083_v52 }
 0x2c9   :  { %v2889_v44 = vsel %vm2886_vm14, %v2888_v21, %v2884_v43  ;;  %v4092_v47 = vpop.eup %4091  ;;  %v6226_v23 = vpop.f32.mrf.mxu2  ;;  %4095 = vrcp.f32 %v2084_v5  ;;  %v2917_v41 = vand.u32 2147483648, %v2084_v5  ;;  %v2915_v24 = vand.u32 2147483647, %v2084_v5 }
 0x2ca   :  { %v6224_v17 = vmul.f32 %v2889_v44, %v1719_v36  ;;  %v2892_v34 = vmul.f32 %v4092_v47, %v2083_v52  ;;  %3463 = vmatpush.msrb.mxu3 %v5751_v20  ;;  %vm2897_vm5 = vweird.f32 %v4092_v47  ;;  %vm2901_vm9 = vcmp.eq.f32.partialorder %v2900_v13, 8.507059e+37 }
 0x2cb   :  { %v1519_v62 = vpop.f32.mrf.mxu1  ;;  %vm2898_vm6 = vmor %vm2896_vm8, %vm2897_vm5  ;;  %vm2911_vm15 = vweird.f32 %v2084_v5  ;;  %vm2916_vm0 = vcmp.eq.f32.partialorder %v2915_v24, 8.507059e+37  ;;  %v1727_v11 = vadd.f32 %v6226_v23, %v4569_v7  ;;  %v6251_v23 = vpop.f32.mrf.mxu3 }
 0x2cc   :  { %7128 = vst [vmem:[#allocation23_spill] sm:$0xff] %v6224_v17  ;;  %v2893_v27 = vsub.f32 1.0, %v2892_v34  ;;  %3464 = vmatpush.msrb.mxu3 %v5704_v2  ;;  %v1520_v51 = vadd.f32 %v1519_v62, %v4533_v31  ;;  %v2903_v2 = vor.u32 1.1754944e-38, %v2902_v60 }
 0x2cd   :  { %7132 = vst [vmem:[#allocation27_spill] sm:$0xff] %v6251_v23 }
 0x2ce   :  { %v2894_v16 = vmul.f32 %v4092_v47, %v2893_v27  ;;  %3465 = vmatpush.msrb.mxu3 %v5676_v37  ;;  %v4094_v59 = vpop.eup %4093  ;;  %v3804_v42 = vmul.f32 -1.442695, %v1520_v51 }
 0x2cf   :  { %v2085_v35 = vadd.f32 1.0, %v4094_v59  ;;  %v4096_v20 = vpop.eup %4095 }
 0x2d0   :  { %v2895_v57 = vadd.f32 %v4092_v47, %v2894_v16  ;;  %3466 = vmatpush.msrb.mxu3 %v5648_v48  ;;  %4097 = vpow2.f32 %v3804_v42  ;;  %v2907_v53 = vmul.f32 %v4096_v20, %v2084_v5  ;;  %vm2912_vm4 = vweird.f32 %v4096_v20 }
 0x2d1   :  { %4099 = vrcp.f32 %v2085_v35  ;;  %v1728_v14 = vpop.f32.mrf.mxu2  ;;  %vm2913_vm1 = vmor %vm2911_vm15, %vm2912_vm4  ;;  %v2932_v12 = vand.u32 2147483648, %v2085_v35  ;;  %v2930_v58 = vand.u32 2147483647, %v2085_v35  ;;  %vm2926_vm3 = vweird.f32 %v2085_v35 }
 0x2d2   :  { %v2899_v26 = vsel %vm2898_vm6, %v4092_v47, %v2895_v57  ;;  %3467 = vmatpush.msrb.mxu3 %v5621_v45  ;;  %v2908_v9 = vsub.f32 1.0, %v2907_v53  ;;  %v2918_v45 = vor.u32 1.1754944e-38, %v2917_v41  ;;  %v1729_v57 = vadd.f32 %v1728_v14, %v4569_v7 }
 0x2d3   :  { %v1522_v37 = vpop.f32.mrf.mxu1  ;;  %v2904_v22 = vsel %vm2901_vm9, %v2903_v2, %v2899_v26  ;;  %v2933_v43 = vor.u32 1.1754944e-38, %v2932_v12  ;;  %vm2931_vm10 = vcmp.eq.f32.partialorder %v2930_v58, 8.507059e+37 }
 0x2d4   :  { %v6236_v55 = vmul.f32 %v2904_v22, %v1722_v15  ;;  %v1523_v48 = vadd.f32 %v1522_v37, %v4533_v31  ;;  %v2909_v28 = vmul.f32 %v4096_v20, %v2908_v9  ;;  %v719_v9 = vperm.slane %v6075_v61, 1 }
 0x2d6   :  { %7129 = vst [vmem:[#allocation24_spill] sm:$0xff] %v6236_v55  ;;  %v3805_v25 = vmul.f32 -1.442695, %v1523_v48  ;;  %v4098_v39 = vpop.eup %4097  ;;  %v2910_v40 = vadd.f32 %v4096_v20, %v2909_v28  ;;  %v3392_v41 = vperm.slane %v719_v9, 0 }
 0x2d7   :  { %v4100_v19 = vpop.eup %4099  ;;  %v2086_v3 = vadd.f32 1.0, %v4098_v39 }
 0x2d8   :  { %4101 = vpow2.f32 %v3805_v25  ;;  %v2922_v4 = vmul.f32 %v4100_v19, %v2085_v35  ;;  %v2914_v38 = vsel %vm2913_vm1, %v4096_v20, %v2910_v40  ;;  %vm2927_vm2 = vweird.f32 %v4100_v19 }
 0x2d9   :  { %4103 = vrcp.f32 %v2086_v3  ;;  %v2919_v49 = vsel %vm2916_vm0, %v2918_v45, %v2914_v38  ;;  %v1731_v46 = vpop.f32.mrf.mxu2  ;;  %vm2928_vm11 = vmor %vm2926_vm3, %vm2927_vm2  ;;  %v2947_v62 = vand.u32 2147483648, %v2086_v3  ;;  %v2945_v60 = vand.u32 2147483647, %v2086_v3  ;;  %v7136_v45 = vld [vmem:[#allocation8_spill] sm:$0xff] }
 0x2da   :  { %v2923_v1 = vsub.f32 1.0, %v2922_v4  ;;  %v6243_v52 = vmul.f32 %v2919_v49, %v1724_v0  ;;  %vm2941_vm12 = vweird.f32 %v2086_v3  ;;  %v1732_v14 = vadd.f32 %v1731_v46, %v4569_v7  ;;  %v7137_v0 = vld [vmem:[#allocation16_spill] sm:$0xff] }
 0x2db   :  { %v6241_v56 = vpop.f32.mrf.mxu1  ;;  %v2948_v59 = vor.u32 1.1754944e-38, %v2947_v62  ;;  %vm2946_vm14 = vcmp.eq.f32.partialorder %v2945_v60, 8.507059e+37  ;;  %vm3397_vm4 = vcmp.eq.s32.totalorder %v3392_v41, %v6118_v63  ;;  %v1558_v4 = vadd.f32 %v7136_v45, %v4533_v31 }
 0x2dc   :  { %7130 = vst [vmem:[#allocation25_spill] sm:$0xff] %v6243_v52  ;;  %v2924_v8 = vmul.f32 %v4100_v19, %v2923_v1  ;;  %3835 = vmatmul.msk.f32.vlgmr.msra.gmra.mxu3 %vm3397_vm4, %v6981_v6  ;;  %v1560_v38 = vadd.f32 %v7137_v0, %v4533_v31  ;;  %v720_v49 = vperm.slane %v6075_v61, 2  ;;  %v1525_v1 = vadd.f32 %v6241_v56, %v4533_v31  ;;  %v7139_v61 = vld [vmem:[#allocation17_spill] sm:$0xff] }
 0x2dd   :  { %v3819_v58 = vmul.f32 -1.442695, %v1558_v4  ;;  %v1565_v56 = vadd.f32 %v7139_v61, %v4533_v31 }
 0x2de   :  { %v4102_v32 = vpop.eup %4101  ;;  %v2925_v54 = vadd.f32 %v4100_v19, %v2924_v8  ;;  %v3393_v8 = vperm.slane %v720_v49, 0 }
 0x2df   :  { %v2087_v21 = vadd.f32 1.0, %v4102_v32  ;;  %v4104_v36 = vpop.eup %4103  ;;  %v3820_v32 = vmul.f32 -1.442695, %v1560_v38 }
 0x2e0   :  { %v2929_v10 = vsel %vm2928_vm11, %v4100_v19, %v2925_v54  ;;  %v2937_v29 = vmul.f32 %v4104_v36, %v2086_v3  ;;  %vm2942_vm13 = vweird.f32 %v4104_v36  ;;  %v6260_v19 = vpop.f32.mrf.mxu3  ;;  %vm3398_vm15 = vcmp.eq.s32.totalorder %v3393_v8, %v6118_v63 }
 0x2e1   :  { %4105 = vrcp.f32 %v2087_v21  ;;  %v2934_v44 = vsel %vm2931_vm10, %v2933_v43, %v2929_v10  ;;  %v6249_v13 = vpop.f32.mrf.mxu2  ;;  %vm2943_vm7 = vmor %vm2941_vm12, %vm2942_vm13  ;;  %v2962_v53 = vand.u32 2147483648, %v2087_v21  ;;  %v2960_v22 = vand.u32 2147483647, %v2087_v21  ;;  %7134 = vst [vmem:[#allocation29_spill] sm:$0xff] %v6260_v19 }
 0x2e2   :  { %v6247_v5 = vmul.f32 %v2934_v44, %v1727_v11  ;;  %v2938_v34 = vsub.f32 1.0, %v2937_v29  ;;  %vm2956_vm8 = vweird.f32 %v2087_v21  ;;  %4107 = vpow2.f32 %v3819_v58 }
 0x2e3   :  { %v1527_v47 = vpop.f32.mrf.mxu1  ;;  %v2963_v28 = vor.u32 1.1754944e-38, %v2962_v53  ;;  %vm2961_vm9 = vcmp.eq.f32.partialorder %v2960_v22, 8.507059e+37  ;;  %4109 = vpow2.f32 %v3820_v32  ;;  %v7144_v22 = vld [vmem:[#allocation15_spill] sm:$0xff] }
 0x2e4   :  { %7131 = vst [vmem:[#allocation26_spill] sm:$0xff] %v6247_v5  ;;  %v2939_v27 = vmul.f32 %v4104_v36, %v2938_v34  ;;  %v1528_v12 = vadd.f32 %v1527_v47, %v4533_v31  ;;  %3836 = vmatmul.msk.f32.vlgmr.msrb.gmra.mxu3 %vm3398_vm15, %v6981_v6  ;;  %v7140_v34 = vld [vmem:[#allocation10_spill] sm:$0xff]  ;;  %v1580_v9 = vadd.f32 %v7144_v22, %v4533_v31 }
 0x2e5   :  { %v1568_v62 = vadd.f32 %v7140_v34, %v4533_v31 }
 0x2e6   :  { %v2940_v16 = vadd.f32 %v4104_v36, %v2939_v27  ;;  %v3807_v43 = vmul.f32 -1.442695, %v1528_v12  ;;  %v3828_v45 = vmul.f32 -1.442695, %v1580_v9 }
 0x2e7   :  { %v4106_v51 = vpop.eup %4105 }
 0x2e8   :  { %v2952_v42 = vmul.f32 %v4106_v51, %v2087_v21  ;;  %v2944_v35 = vsel %vm2943_vm7, %v4104_v36, %v2940_v16  ;;  %vm2957_vm5 = vweird.f32 %v4106_v51  ;;  %v3806_v21 = vmul.f32 -1.442695, %v1525_v1  ;;  %v7138_v36 = vld [vmem:[#allocation9_spill] sm:$0xff]  ;;  %v6287_v27 = vpop.f32.mrf.mxu3  ;;  %v4108_v53 = vpop.eup %4107 }
 0x2e9   :  { %v2949_v20 = vsel %vm2946_vm14, %v2948_v59, %v2944_v35  ;;  %vm2958_vm6 = vmor %vm2956_vm8, %vm2957_vm5  ;;  %v6258_v39 = vpop.f32.mrf.mxu2  ;;  %v1563_v11 = vadd.f32 %v7138_v36, %v4533_v31  ;;  %7141 = vst [vmem:[#allocation8_spill] sm:$0xff] %v6287_v27  ;;  %v3822_v35 = vmul.f32 -1.442695, %v1565_v56 }
 0x2ea   :  { %v2953_v15 = vsub.f32 1.0, %v2952_v42  ;;  %v6254_v26 = vmul.f32 %v2949_v20, %v1729_v57  ;;  %4111 = vpow2.f32 %v3806_v21  ;;  %v1575_v57 = vadd.f32 %v5633_v30, %v4533_v31 }
 0x2eb   :  { %v1529_v2 = vpop.f32.mrf.mxu1  ;;  %v3821_v42 = vmul.f32 -1.442695, %v1563_v11  ;;  %4113 = vpow2.f32 %v3807_v43  ;;  %v3823_v20 = vmul.f32 -1.442695, %v1568_v62 }
 0x2ec   :  { %7133 = vst [vmem:[#allocation28_spill] sm:$0xff] %v6254_v26  ;;  %v2954_v37 = vmul.f32 %v4106_v51, %v2953_v15  ;;  %v1530_v46 = vadd.f32 %v1529_v2, %v4533_v31  ;;  %v7143_v15 = vld [vmem:[#allocation7_spill] sm:$0xff]  ;;  %v3826_v41 = vmul.f32 -1.442695, %v1575_v57 }
 0x2ed   :  { %v1578_v2 = vadd.f32 %v7143_v15, %v4533_v31 }
 0x2ee   :  { %v2955_v48 = vadd.f32 %v4106_v51, %v2954_v37  ;;  %v3808_v29 = vmul.f32 -1.442695, %v1530_v46 }
 0x2f0   :  { %v2959_v24 = vsel %vm2958_vm6, %v4106_v51, %v2955_v48  ;;  %v7142_v51 = vld [vmem:[#allocation18_spill] sm:$0xff]  ;;  %4115 = vpow2.f32 %v3808_v29  ;;  %v4110_v48 = vpop.eup %4109  ;;  %v6300_v49 = vpop.f32.mrf.mxu3 }
 0x2f1   :  { %v2964_v25 = vsel %vm2961_vm9, %v2963_v28, %v2959_v24  ;;  %v6281_v44 = vpop.f32.mrf.mxu2  ;;  %v1570_v16 = vadd.f32 %v7142_v51, %v4533_v31  ;;  %7145 = vst [vmem:[#allocation16_spill] sm:$0xff] %v6300_v49 }
 0x2f2   :  { %v6262_v40 = vmul.f32 %v2964_v25, %v1732_v14  ;;  %v4112_v14 = vpop.eup %4111  ;;  %v3827_v25 = vmul.f32 -1.442695, %v1578_v2 }
 0x2f3   :  { %v1532_v3 = vpop.f32.mrf.mxu1  ;;  %v3824_v37 = vmul.f32 -1.442695, %v1570_v16  ;;  %v4114_v24 = vpop.eup %4113  ;;  %v6302_v1 = vadd.f32 1.0, %v4112_v14 }
 0x2f4   :  { %7135 = vst [vmem:[#allocation30_spill] sm:$0xff] %v6262_v40  ;;  %v1533_v54 = vadd.f32 %v1532_v3, %v4533_v31  ;;  %v6304_v8 = vadd.f32 1.0, %v4114_v24 }
 0x2f5   :  { %vm2971_vm9 = vweird.f32 %v6302_v1 }
 0x2f6   :  { %v3809_v60 = vmul.f32 -1.442695, %v1533_v54  ;;  %v4116_v3 = vpop.eup %4115  ;;  %vm2986_vm7 = vweird.f32 %v6304_v8 }
 0x2f7   :  { %v6306_v46 = vadd.f32 1.0, %v4116_v3 }
 0x2f8   :  { %4117 = vpow2.f32 %v3809_v60  ;;  %v6319_v60 = vadd.f32 1.0, %v4108_v53 }
 0x2f9   :  { %v6298_v4 = vpop.f32.mrf.mxu2  ;;  %vm3001_vm3 = vweird.f32 %v6306_v46 }
 0x2fb   :  { %v1534_v10 = vpop.f32.mrf.mxu1 }
 0x2fc   :  { %v1535_v47 = vadd.f32 %v1534_v10, %v4533_v31  ;;  %v7146_v10 = vld [vmem:[#allocation19_spill] sm:$0xff] }
 0x2fd   :  { %v1573_v61 = vadd.f32 %v7146_v10, %v4533_v31 }
 0x2fe   :  { %v3810_v59 = vmul.f32 -1.442695, %v1535_v47  ;;  %v4118_v38 = vpop.eup %4117 }
 0x2ff   :  { %v6308_v54 = vadd.f32 1.0, %v4118_v38 }
 0x300   :  { %4119 = vpow2.f32 %v3810_v59  ;;  %v3825_v59 = vmul.f32 -1.442695, %v1573_v61 }
 0x301   :  { %4121 = vpow2.f32 %v3821_v42  ;;  %v6324_v42 = vpop.f32.mrf.mxu2  ;;  %vm3016_vm0 = vweird.f32 %v6308_v54 }
 0x302   :  { %4123 = vpow2.f32 %v3822_v35  ;;  %v6328_v35 = vadd.f32 1.0, %v4110_v48 }
 0x303   :  { %v1537_v28 = vpop.f32.mrf.mxu1  ;;  %4125 = vpow2.f32 %v3823_v20  ;;  %v6330_v20 = vpop.f32.mrf.mxu3 }
 0x304   :  { %v1538_v30 = vadd.f32 %v1537_v28, %v4533_v31  ;;  %4127 = vpow2.f32 %v3824_v37  ;;  %7147 = vst [vmem:[#allocation9_spill] sm:$0xff] %v6328_v35 }
 0x305   :  { %4129 = vpow2.f32 %v3826_v41  ;;  %7148 = vst [vmem:[#allocation17_spill] sm:$0xff] %v6330_v20 }
 0x306   :  { %v3811_v0 = vmul.f32 -1.442695, %v1538_v30  ;;  %v4120_v12 = vpop.eup %4119 }
 0x307   :  { %v4122_v58 = vpop.eup %4121  ;;  %v6311_v36 = vadd.f32 1.0, %v4120_v12 }
 0x308   :  { %4131 = vpow2.f32 %v3811_v0  ;;  %v4124_v32 = vpop.eup %4123  ;;  %v6335_v2 = vadd.f32 1.0, %v4122_v58 }
 0x309   :  { %4133 = vpow2.f32 %v3827_v25  ;;  %v4126_v21 = vpop.eup %4125  ;;  %v6342_v22 = vadd.f32 1.0, %v4124_v32  ;;  %vm3031_vm8 = vweird.f32 %v6311_v36  ;;  %v3035_v55 = vand.u32 2147483647, %v6311_v36 }
 0x30a   :  { %4135 = vpow2.f32 %v3828_v45  ;;  %v4128_v43 = vpop.eup %4127  ;;  %v6348_v41 = vadd.f32 1.0, %v4126_v21  ;;  %v3037_v52 = vand.u32 2147483648, %v6311_v36 }
 0x30b   :  { %4137 = vrcp.f32 %v6302_v1  ;;  %v1539_v11 = vpop.f32.mrf.mxu1  ;;  %v4130_v29 = vpop.eup %4129  ;;  %v6352_v14 = vadd.f32 1.0, %v4128_v43 }
 0x30c   :  { %4139 = vrcp.f32 %v6304_v8  ;;  %v1540_v56 = vadd.f32 %v1539_v11, %v4533_v31  ;;  %v6361_v3 = vadd.f32 1.0, %v4130_v29  ;;  %v6379_v43 = vpop.f32.mrf.mxu2 }
 0x30d   :  { %4141 = vrcp.f32 %v6306_v46 }
 0x30e   :  { %v4132_v47 = vpop.eup %4131  ;;  %4143 = vrcp.f32 %v6308_v54  ;;  %v3812_v34 = vmul.f32 -1.442695, %v1540_v56  ;;  %v6384_v56 = vpop.f32.mrf.mxu3 }
 0x30f   :  { %v4134_v62 = vpop.eup %4133  ;;  %4145 = vrcp.f32 %v6311_v36  ;;  %v6322_v51 = vadd.f32 1.0, %v4132_v47  ;;  %7149 = vst [vmem:[#allocation10_spill] sm:$0xff] %v6384_v56 }
 0x310   :  { %v4136_v16 = vpop.eup %4135  ;;  %4147 = vpow2.f32 %v3812_v34  ;;  %v6369_v12 = vadd.f32 1.0, %v4134_v62 }
 0x311   :  { %v6326_v57 = vpop.eup %4137  ;;  %4149 = vrcp.f32 %v6322_v51  ;;  %v6377_v11 = vadd.f32 1.0, %v4136_v16  ;;  %vm3046_vm13 = vweird.f32 %v6322_v51  ;;  %v3052_v56 = vand.u32 2147483648, %v6322_v51 }
 0x312   :  { %v6333_v15 = vpop.eup %4139  ;;  %4151 = vrcp.f32 %v6319_v60  ;;  %v2967_v30 = vmul.f32 %v6326_v57, %v6302_v1  ;;  %vm2972_vm12 = vweird.f32 %v6326_v57 }
 0x313   :  { %v6337_v53 = vpop.eup %4141  ;;  %4153 = vpow2.f32 %v3825_v59  ;;  %v2982_v24 = vmul.f32 %v6333_v15, %v6304_v8  ;;  %vm2987_vm2 = vweird.f32 %v6333_v15  ;;  %v3053_v40 = vor.u32 1.1754944e-38, %v3052_v56 }
 0x314   :  { %v6340_v37 = vpop.eup %4143  ;;  %4155 = vrcp.f32 %v6328_v35  ;;  %v2997_v58 = vmul.f32 %v6337_v53, %v6306_v46  ;;  %v2968_v29 = vsub.f32 1.0, %v2967_v30  ;;  %vm3002_vm1 = vweird.f32 %v6337_v53  ;;  %v1748_v18 = vpop.f32.mrf.mxu2 }
 0x315   :  { %v6344_v9 = vpop.eup %4145  ;;  %4157 = vrcp.f32 %v6335_v2  ;;  %v3012_v32 = vmul.f32 %v6340_v37, %v6308_v54  ;;  %v2983_v47 = vsub.f32 1.0, %v2982_v24  ;;  %vm3017_vm5 = vweird.f32 %v6340_v37 }
 0x316   :  { %v4148_v48 = vpop.eup %4147  ;;  %4159 = vrcp.f32 %v6342_v22  ;;  %v3027_v45 = vmul.f32 %v6344_v9, %v6311_v36  ;;  %v2998_v16 = vsub.f32 1.0, %v2997_v58  ;;  %vm3032_vm11 = vweird.f32 %v6344_v9  ;;  %v6443_v17 = vpop.f32.mrf.mxu3 }
 0x317   :  { %v6350_v28 = vpop.eup %4149  ;;  %v6358_v25 = vadd.f32 1.0, %v4148_v48  ;;  %v3013_v48 = vsub.f32 1.0, %v3012_v32  ;;  %v2984_v58 = vmul.f32 %v6333_v15, %v2983_v47  ;;  %v3020_v32 = vand.u32 2147483647, %v6308_v54  ;;  %7151 = vst [vmem:[#allocation7_spill] sm:$0xff] %v6443_v17  ;;  %vm6463_vm4 = vmor %vm3031_vm8, %vm3032_vm11 }
 0x318   :  { %v3042_v0 = vmul.f32 %v6350_v28, %v6322_v51  ;;  %v6367_v38 = vpop.eup %4151  ;;  %v3028_v62 = vsub.f32 1.0, %v3027_v45  ;;  %v6404_v45 = vmul.f32 %v6326_v57, %v2968_v29  ;;  %v2999_v29 = vmul.f32 %v6337_v53, %v2998_v16  ;;  %vm6485_vm8 = vmor %vm3016_vm0, %vm3017_vm5 }
 0x319   :  { %4161 = vrcp.f32 %v6358_v25  ;;  %v4154_v21 = vpop.eup %4153  ;;  %v3014_v47 = vmul.f32 %v6340_v37, %v3013_v48  ;;  %vm3047_vm10 = vweird.f32 %v6350_v28  ;;  %v3050_v48 = vand.u32 2147483647, %v6322_v51  ;;  %vm6501_vm0 = vmor %vm3001_vm3, %vm3002_vm1 }
 0x31a   :  { %4163 = vrcp.f32 %v6348_v41  ;;  %v3043_v10 = vsub.f32 1.0, %v3042_v0  ;;  %v6381_v61 = vpop.eup %4155  ;;  %v6389_v59 = vadd.f32 1.0, %v4154_v21  ;;  %v3029_v30 = vmul.f32 %v6344_v9, %v3028_v62  ;;  %vm6453_vm6 = vmor %vm3046_vm13, %vm3047_vm10 }
 0x31b   :  { %4165 = vrcp.f32 %v6352_v14  ;;  %v6386_v34 = vpop.eup %4157  ;;  %v6397_v6 = vmul.f32 %v6381_v61, %v6328_v35  ;;  %v3022_v21 = vand.u32 2147483648, %v6308_v54  ;;  %v3067_v33 = vand.u32 2147483648, %v6358_v25  ;;  %vm6516_vm1 = vmor %vm2986_vm7, %vm2987_vm2 }
 0x31c   :  { %4167 = vrcp.f32 %v6361_v3  ;;  %v6392_v0 = vpop.eup %4159  ;;  %v3044_v24 = vmul.f32 %v6350_v28, %v3043_v10  ;;  %v3065_v50 = vand.u32 2147483647, %v6358_v25  ;;  %v3015_v17 = vadd.f32 %v6340_v37, %v3014_v47  ;;  %vm6538_vm2 = vmor %vm2971_vm9, %vm2972_vm12 }
 0x31d   :  { %4169 = vrcp.f32 %v6369_v12  ;;  %vm3061_vm15 = vweird.f32 %v6358_v25  ;;  %v3000_v26 = vadd.f32 %v6337_v53, %v2999_v29  ;;  %v1749_v35 = vadd.f32 %v1748_v18, %v4569_v7 }
 0x31e   :  { %4171 = vrcp.f32 %v6377_v11  ;;  %v3045_v62 = vadd.f32 %v6350_v28, %v3044_v24  ;;  %v3030_v24 = vadd.f32 %v6344_v9, %v3029_v30  ;;  %v6457_v30 = vpop.f32.mrf.mxu1  ;;  %v3068_v47 = vor.u32 1.1754944e-38, %v3067_v33 }
 0x31f   :  { %v6401_v23 = vpop.eup %4161  ;;  %vm3051_vm11 = vcmp.eq.f32.partialorder %v3050_v48, 8.507059e+37  ;;  %vm3066_vm13 = vcmp.eq.f32.partialorder %v3065_v50, 8.507059e+37  ;;  %v3019_v5 = vsel %vm6485_vm8, %v6340_v37, %v3015_v17  ;;  %v1747_v50 = vadd.f32 %v6379_v43, %v4569_v7 }
 0x320   :  { %v6409_v19 = vpop.eup %4163  ;;  %v3057_v10 = vmul.f32 %v6401_v23, %v6358_v25  ;;  %vm3062_vm14 = vweird.f32 %v6401_v23  ;;  %v3049_v36 = vsel %vm6453_vm6, %v6350_v28, %v3045_v62  ;;  %v2985_v62 = vadd.f32 %v6333_v15, %v2984_v58 }
 0x321   :  { %v6416_v27 = vpop.eup %4165  ;;  %vm3063_vm10 = vmor %vm3061_vm15, %vm3062_vm14  ;;  %v3038_v25 = vor.u32 1.1754944e-38, %v3037_v52  ;;  %v3054_v33 = vsel %vm3051_vm11, %v3053_v40, %v3049_v36  ;;  %vm3036_vm14 = vcmp.eq.f32.partialorder %v3035_v55, 8.507059e+37  ;;  %v2992_v54 = vand.u32 2147483648, %v6304_v8 }
 0x322   :  { %v6422_v49 = vpop.eup %4167  ;;  %v3058_v20 = vsub.f32 1.0, %v3057_v10  ;;  %v3023_v40 = vor.u32 1.1754944e-38, %v3022_v21  ;;  %v3004_v55 = vsel %vm6501_vm0, %v6337_v53, %v3000_v26  ;;  %vm3021_vm5 = vcmp.eq.f32.partialorder %v3020_v32, 8.507059e+37 }
 0x323   :  { %7150 = vst [vmem:[#allocation18_spill] sm:$0xff] %v6422_v49  ;;  %v6429_v16 = vpop.eup %4169  ;;  %v3034_v49 = vsel %vm6463_vm4, %v6344_v9, %v3030_v24  ;;  %v2970_v9 = vadd.f32 %v6326_v57, %v6404_v45  ;;  %v3373_v37 = vmul.f32 %v3054_v33, %v1747_v50  ;;  %v2975_v43 = vand.u32 2147483647, %v6302_v1  ;;  %v6532_v24 = vpop.f32.mrf.mxu3 }
 0x324   :  { %v6435_v63 = vpop.eup %4171  ;;  %v3059_v10 = vmul.f32 %v6401_v23, %v3058_v20  ;;  %v3039_v17 = vsel %vm3036_vm14, %v3038_v25, %v3034_v49  ;;  %v2977_v45 = vand.u32 2147483648, %v6302_v1  ;;  %v7162_v26 = vand.u32 2147483648, %v6306_v46 }
 0x325   :  { %v3024_v58 = vsel %vm3021_vm5, %v3023_v40, %v3019_v5  ;;  %v7163_v32 = vand.u32 2147483647, %v6306_v46  ;;  %v1742_v21 = vadd.f32 %v6298_v4, %v4569_v7  ;;  %4173 = vrcp.f32 %v6389_v59 }
 0x326   :  { %v3060_v51 = vadd.f32 %v6401_v23, %v3059_v10  ;;  %v3008_v53 = vor.u32 1.1754944e-38, %v7162_v26  ;;  %v3192_v48 = vmul.f32 %v6386_v34, %v6335_v2  ;;  %v2993_v46 = vor.u32 1.1754944e-38, %v2992_v54  ;;  %v1544_v4 = vpop.f32.mrf.mxu1 }
 0x327   :  { %vm3006_vm3 = vcmp.eq.f32.partialorder %v7163_v32, 8.507059e+37  ;;  %v2974_v20 = vsel %vm6538_vm2, %v6326_v57, %v2970_v9  ;;  %v7166_v36 = vand.u32 2147483647, %v6304_v8  ;;  %v3162_v1 = vmul.f32 %v6367_v38, %v6319_v60 }
 0x328   :  { %v3064_v28 = vsel %vm3063_vm10, %v6401_v23, %v3060_v51  ;;  %v3009_v10 = vsel %vm3006_vm3, %v3008_v53, %v3004_v55  ;;  %v1739_v51 = vadd.f32 %v6281_v44, %v4569_v7  ;;  %vm2976_vm12 = vcmp.eq.f32.partialorder %v2975_v43, 8.507059e+37 }
 0x329   :  { %v3069_v56 = vsel %vm3066_vm13, %v3068_v47, %v3064_v28  ;;  %vm2991_vm7 = vcmp.eq.f32.partialorder %v7166_v36, 8.507059e+37  ;;  %v3371_v47 = vmul.f32 %v3024_v58, %v1742_v21  ;;  %v3178_v28 = vsub.f32 1.0, %v6397_v6 }
 0x32a   :  { %v3374_v23 = vmul.f32 %v3069_v56, %v1749_v35  ;;  %v1744_v35 = vadd.f32 %v6324_v42, %v4569_v7  ;;  %v2989_v42 = vsel %vm6516_vm1, %v6333_v15, %v2985_v62  ;;  %v2978_v62 = vor.u32 1.1754944e-38, %v2977_v45 }
 0x32b   :  { %v2994_v18 = vsel %vm2991_vm7, %v2993_v46, %v2989_v42  ;;  %v1737_v25 = vadd.f32 %v6258_v39, %v4569_v7  ;;  %v3370_v57 = vmul.f32 %v3009_v10, %v1739_v51  ;;  %v1545_v8 = vadd.f32 %v1544_v4, %v4533_v31  ;;  %v6563_v39 = vpop.eup %4173  ;;  %v6582_v32 = vpop.f32.mrf.mxu3  ;;  %v7169_v46 = vld [vmem:[#allocation30_spill] sm:$0xff] }
 0x32c   :  { %3472 = vmatpush.msra.mxu3 %v3374_v23  ;;  %v3372_v29 = vmul.f32 %v3039_v17, %v1744_v35  ;;  %v3193_v33 = vsub.f32 1.0, %v3192_v48  ;;  %v3207_v44 = vmul.f32 %v6392_v0, %v6342_v22  ;;  %v2979_v56 = vsel %vm2976_vm12, %v2978_v62, %v2974_v20 }
 0x32d   :  { %v3297_v5 = vmul.f32 %v6435_v63, %v6377_v11  ;;  %v1734_v6 = vadd.f32 %v6249_v13, %v4569_v7  ;;  %v3369_v50 = vmul.f32 %v2994_v18, %v1737_v25  ;;  %v1543_v23 = vadd.f32 %v6457_v30, %v4533_v31  ;;  %v7167_v30 = vld [vmem:[#allocation18_spill] sm:$0xff] }
 0x32e   :  { %3473 = vmatpush.msra.mxu3 %v3373_v37  ;;  %v3163_v9 = vsub.f32 1.0, %v3162_v1  ;;  %v3222_v54 = vmul.f32 %v6409_v19, %v6348_v41  ;;  %v3179_v52 = vmul.f32 %v6381_v61, %v3178_v28  ;;  %v3282_v40 = vmul.f32 %v6429_v16, %v6369_v12  ;;  %v7170_v28 = vld [vmem:[#allocation28_spill] sm:$0xff] }
 0x32f   :  { %v3368_v17 = vmul.f32 %v2979_v56, %v1734_v6  ;;  %v3814_v55 = vmul.f32 -1.442695, %v1545_v8  ;;  %v3194_v13 = vmul.f32 %v6386_v34, %v3193_v33  ;;  %v3237_v31 = vmul.f32 %v6416_v27, %v6352_v14 }
 0x330   :  { %3474 = vmatpush.msra.mxu3 %v3372_v29  ;;  %v3267_v35 = vmul.f32 %v7167_v30, %v6361_v3  ;;  %v3170_v37 = vand.u32 2147483647, %v6319_v60  ;;  %v3208_v43 = vsub.f32 1.0, %v3207_v44  ;;  %v3298_v45 = vsub.f32 1.0, %v3297_v5  ;;  %v7168_v29 = vld [vmem:[#allocation9_spill] sm:$0xff]  ;;  %v7171_v44 = vld [vmem:[#allocation26_spill] sm:$0xff] }
 0x331   :  { %v3813_v49 = vmul.f32 -1.442695, %v1543_v23  ;;  %v6577_v26 = vmul.f32 %v6367_v38, %v3163_v9  ;;  %v3172_v53 = vand.u32 2147483648, %v6319_v60  ;;  %v3223_v58 = vsub.f32 1.0, %v3222_v54  ;;  %v7172_v54 = vld [vmem:[#allocation25_spill] sm:$0xff] }
 0x332   :  { %3475 = vmatpush.msra.mxu3 %v3371_v47  ;;  %v3252_v42 = vmul.f32 %v6563_v39, %v6389_v59  ;;  %v6585_v21 = vadd.f32 %v6381_v61, %v3179_v52  ;;  %v3185_v48 = vand.u32 2147483647, %v7168_v29  ;;  %v3283_v15 = vsub.f32 1.0, %v3282_v40  ;;  %v6624_v52 = vld [vmem:[%s6967_s0] sm:$0x1f] }
 0x333   :  { %4175 = vpow2.f32 %v3814_v55  ;;  %v6590_v10 = vadd.f32 %v6386_v34, %v3194_v13  ;;  %v3215_v4 = vand.u32 2147483647, %v6342_v22  ;;  %v3238_v20 = vsub.f32 1.0, %v3237_v31  ;;  %v7190_v13 = vld [vmem:[#allocation21_spill] sm:$0xff] }
 0x334   :  { %3476 = vmatpush.msra.mxu3 %v3370_v57  ;;  %v3268_v36 = vsub.f32 1.0, %v3267_v35  ;;  %v6594_v51 = vmul.f32 %v6392_v0, %v3208_v43  ;;  %v3230_v47 = vand.u32 2147483647, %v6348_v41  ;;  %v3299_v1 = vmul.f32 %v6435_v63, %v3298_v45  ;;  %v7175_v45 = vld [vmem:[#allocation24_spill] sm:$0xff] }
 0x335   :  { %4177 = vpow2.f32 %v3813_v49  ;;  %v6600_v62 = vmul.f32 %v6409_v19, %v3223_v58  ;;  %v3232_v18 = vand.u32 2147483648, %v6348_v41  ;;  %v3245_v25 = vand.u32 2147483647, %v6352_v14  ;;  %v7196_v58 = vld [vmem:[#allocation20_spill] sm:$0xff] }
 0x336   :  { %3477 = vmatpush.msra.mxu3 %v3369_v50  ;;  %v3253_v57 = vsub.f32 1.0, %v3252_v42  ;;  %vm3241_vm6 = vweird.f32 %v6352_v14  ;;  %vm3242_vm9 = vweird.f32 %v6416_v27  ;;  %v3247_v8 = vand.u32 2147483648, %v6352_v14  ;;  %v1788_v42 = vpop.f32.mrf.mxu3 }
 0x337   :  { %v3284_v33 = vmul.f32 %v6429_v16, %v3283_v15  ;;  %vm3301_vm4 = vweird.f32 %v6377_v11  ;;  %vm3302_vm15 = vweird.f32 %v6435_v63  ;;  %v3239_v56 = vmul.f32 %v6416_v27, %v3238_v20 }
 0x338   :  { %3478 = vmatpush.msra.mxu3 %v3368_v17  ;;  %v3269_v5 = vmul.f32 %v7167_v30, %v3268_v36  ;;  %vm3286_vm10 = vweird.f32 %v6369_v12  ;;  %v3307_v6 = vand.u32 2147483648, %v6377_v11  ;;  %vm3226_vm11 = vweird.f32 %v6348_v41  ;;  %vm6635_vm5 = vmor %vm3301_vm4, %vm3302_vm15 }
 0x339   :  { %v4176_v50 = vpop.eup %4175  ;;  %vm3227_vm13 = vweird.f32 %v6409_v19  ;;  %vm3287_vm8 = vweird.f32 %v6429_v16  ;;  %v3300_v23 = vadd.f32 %v6435_v63, %v3299_v1  ;;  %v3305_v9 = vand.u32 2147483647, %v6377_v11  ;;  %v7180_v1 = vld [vmem:[#allocation23_spill] sm:$0xff] }
 0x33a   :  { %3479 = vmatpush.msra.mxu3 %v7169_v46  ;;  %v721_v40 = vperm.slane %v6624_v52, 3  ;;  %v3254_v17 = vmul.f32 %v6563_v39, %v3253_v57  ;;  %vm3256_vm14 = vweird.f32 %v6389_v59  ;;  %vm3257_vm0 = vweird.f32 %v6563_v39  ;;  %vm6652_vm12 = vmor %vm3286_vm10, %vm3287_vm8 }
 0x33b   :  { %v3292_v55 = vand.u32 2147483648, %v6369_v12  ;;  %v4178_v31 = vpop.eup %4177  ;;  %vm3212_vm3 = vweird.f32 %v6392_v0  ;;  %vm3271_vm2 = vweird.f32 %v6361_v3  ;;  %vm3272_vm7 = vweird.f32 %v7167_v30  ;;  %vm6700_vm8 = vmor %vm3256_vm14, %vm3257_vm0 }
 0x33c   :  { %3480 = vmatpush.msra.mxu3 %v7170_v28  ;;  %v3285_v35 = vadd.f32 %v6429_v16, %v3284_v33  ;;  %v3290_v43 = vand.u32 2147483647, %v6369_v12  ;;  %v3275_v11 = vand.u32 2147483647, %v6361_v3  ;;  %v3277_v49 = vand.u32 2147483648, %v6361_v3  ;;  %vm6675_vm10 = vmor %vm3271_vm2, %vm3272_vm7 }
 0x33d   :  { %v3308_v15 = vor.u32 1.1754944e-38, %v3307_v6  ;;  %v6656_v46 = vadd.f32 1.0, %v4176_v50  ;;  %vm3197_vm15 = vweird.f32 %v6386_v34  ;;  %v3270_v20 = vadd.f32 %v7167_v30, %v3269_v5  ;;  %vm6724_vm0 = vmor %vm3241_vm6, %vm3242_vm9 }
 0x33e   :  { %3481 = vmatpush.msra.mxu3 %v7171_v44  ;;  %v3304_v36 = vsel %vm6635_vm5, %v6435_v63, %v3300_v23  ;;  %vm6664_vm1 = vcmp.eq.f32.partialorder %v3305_v9, 8.507059e+37  ;;  %v3394_v28 = vperm.slane %v721_v40, 0  ;;  %v3260_v57 = vand.u32 2147483647, %v6389_v59  ;;  %v7185_v9 = vld [vmem:[#allocation22_spill] sm:$0xff]  ;;  %vm6748_vm6 = vmor %vm3226_vm11, %vm3227_vm13 }
 0x33f   :  { %v3262_v33 = vand.u32 2147483648, %v6389_v59  ;;  %v3293_v63 = vor.u32 1.1754944e-38, %v3292_v55  ;;  %v6679_v5 = vadd.f32 1.0, %v4178_v31  ;;  %vm3182_vm5 = vweird.f32 %v6381_v61  ;;  %v7191_v31 = vld [vmem:[#allocation11_spill] sm:$0xff] }
 0x340   :  { %3482 = vmatpush.msra.mxu3 %v7172_v54  ;;  %v3255_v6 = vadd.f32 %v6563_v39, %v3254_v17  ;;  %v3289_v50 = vsel %vm6652_vm12, %v6429_v16, %v3285_v35  ;;  %vm6687_vm4 = vcmp.eq.f32.partialorder %v3290_v43, 8.507059e+37  ;;  %v1789_v3 = vadd.f32 %v1788_v42, %v4569_v7 }
 0x341   :  { %vm3166_vm2 = vweird.f32 %v6319_v60  ;;  %vm3167_vm7 = vweird.f32 %v6367_v38  ;;  %v3240_v54 = vadd.f32 %v6416_v27, %v3239_v56  ;;  %v3278_v40 = vor.u32 1.1754944e-38, %v3277_v49  ;;  %v7218_v56 = vld [vmem:[#allocation16_spill] sm:$0xff] }
 0x342   :  { %3483 = vmatpush.msra.mxu3 %v7175_v45  ;;  %v3309_v17 = vsel %vm6664_vm1, %v3308_v15, %v3304_v36  ;;  %4179 = vrcp.f32 %v6656_v46  ;;  %v3274_v55 = vsel %vm6675_vm10, %v7167_v30, %v3270_v20  ;;  %vm6710_vm12 = vcmp.eq.f32.partialorder %v3275_v11, 8.507059e+37 }
 0x343   :  { %v1787_v59 = vadd.f32 %v6582_v32, %v4569_v7  ;;  %vm3399_vm14 = vcmp.eq.s32.totalorder %v3394_v28, %v7191_v31  ;;  %v3225_v35 = vadd.f32 %v6409_v19, %v6600_v62  ;;  %v3263_v43 = vor.u32 1.1754944e-38, %v3262_v33 }
 0x344   :  { %3484 = vmatpush.msra.mxu3 %v7180_v1  ;;  %v3294_v45 = vsel %vm6687_vm4, %v3293_v63, %v3289_v50  ;;  %4181 = vrcp.f32 %v6679_v5  ;;  %v3259_v32 = vsel %vm6700_vm8, %v6563_v39, %v3255_v6  ;;  %vm6734_vm1 = vcmp.eq.f32.partialorder %v3260_v57, 8.507059e+37  ;;  %v7202_v1 = vld [vmem:[#allocation7_spill] sm:$0xff]  ;;  %v7208_v50 = vld [vmem:[#allocation10_spill] sm:$0xff] }
 0x345   :  { %v1784_v11 = vadd.f32 %v6532_v24, %v4569_v7  ;;  %v3390_v49 = vmul.f32 %v3309_v17, %v1789_v3  ;;  %v3210_v42 = vadd.f32 %v6392_v0, %v6594_v51  ;;  %v3217_v15 = vand.u32 2147483648, %v6342_v22 }
 0x346   :  { %3485 = vmatpush.msra.mxu3 %v7185_v9  ;;  %v3248_v20 = vor.u32 1.1754944e-38, %v3247_v8  ;;  %v3279_v24 = vsel %vm6710_vm12, %v3278_v40, %v3274_v55  ;;  %v7199_v36 = vmov 1.0   ;;  %v3244_v51 = vsel %vm6724_vm0, %v6416_v27, %v3240_v54 }
 0x347   :  { %vm6764_vm9 = vcmp.eq.f32.partialorder %v3245_v25, 8.507059e+37  ;;  %v1782_v8 = vadd.f32 %v7202_v1, %v4569_v7  ;;  %v3389_v57 = vmul.f32 %v3294_v45, %v1787_v59  ;;  %v3200_v28 = vand.u32 2147483647, %v6335_v2 }
 0x348   :  { %3486 = vmatpush.msra.mxu3 %v7190_v13  ;;  %v6770_v33 = vpop.eup %4179  ;;  %v3202_v44 = vand.u32 2147483648, %v6335_v2  ;;  %vm7203_vm11 = vweird.f32 %v6342_v22  ;;  %v3233_v14 = vor.u32 1.1754944e-38, %v3232_v18  ;;  %v3264_v25 = vsel %vm6734_vm1, %v3263_v43, %v3259_v32  ;;  %v3519_v32 = vld [vmem:[%s6973_s6 + $0x8] sm:$0xff] }
 0x349   :  { %vm6778_vm13 = vmor %vm7203_vm11, %vm3212_vm3  ;;  %v3229_v63 = vsel %vm6748_vm6, %v6409_v19, %v3225_v35  ;;  %vm6791_vm4 = vcmp.eq.f32.partialorder %v3230_v47, 8.507059e+37  ;;  %v1779_v23 = vadd.f32 %v7208_v50, %v4569_v7  ;;  %v3388_v3 = vmul.f32 %v3279_v24, %v1784_v11 }
 0x34a   :  { %3487 = vmatpush.msra.mxu3 %v7196_v58  ;;  %v6797_v9 = vpop.eup %4181  ;;  %v3187_v18 = vand.u32 2147483648, %v7168_v29  ;;  %vm7209_vm3 = vweird.f32 %v6335_v2  ;;  %vm6810_vm8 = vcmp.eq.f32.partialorder %v3215_v4, 8.507059e+37  ;;  %v3218_v47 = vor.u32 1.1754944e-38, %v3217_v15  ;;  %v7214_v2 = vld [vmem:[#allocation17_spill] sm:$0xff]  ;;  %v3528_v4 = vld [vmem:[%s6973_s6 + $0x50] sm:$0xff] }
 0x34b   :  { %3837 = vmatmul.msk.f32.vlgmr.msra.gmra.mxu3 %vm3399_vm14, %v7199_v36  ;;  %vm6804_vm10 = vmor %vm7209_vm3, %vm3197_vm15  ;;  %v3249_v54 = vsel %vm6764_vm9, %v3248_v20, %v3244_v51  ;;  %v3214_v16 = vsel %vm6778_vm13, %v6392_v0, %v3210_v42  ;;  %v1777_v40 = vadd.f32 %v7214_v2, %v4569_v7  ;;  %v3387_v17 = vmul.f32 %v3264_v25, %v1782_v8  ;;  %v1751_v42 = vpop.f32.mrf.mxu2  ;;  %v7224_v15 = vld [vmem:[#allocation29_spill] sm:$0xff]  ;;  %v7232_v2 = vld [vmem:[#allocation14_spill] sm:$0xff] }
 0x34c   :  { %3492 = vmatpush.msrb.mxu3 %v3390_v49  ;;  %v3087_v55 = vmul.f32 %v6770_v33, %v6656_v46  ;;  %v3165_v22 = vadd.f32 %v6367_v38, %v6577_v26  ;;  %vm7215_vm15 = vweird.f32 %v7168_v29  ;;  %v3203_v0 = vor.u32 1.1754944e-38, %v3202_v44  ;;  %vm6841_vm14 = vmor %vm3166_vm2, %vm3167_vm7  ;;  %v3523_v26 = vld [vmem:[%s6973_s6 + $0x28] sm:$0xff] }
 0x34d   :  { %vm6829_vm12 = vmor %vm7215_vm15, %vm3182_vm5  ;;  %v1774_v59 = vadd.f32 %v7218_v56, %v4569_v7  ;;  %v3234_v13 = vsel %vm6791_vm4, %v3233_v14, %v3229_v63  ;;  %v3199_v35 = vsel %vm6804_vm10, %v6386_v34, %v6590_v10  ;;  %vm3201_vm5 = vcmp.eq.f32.partialorder %v3200_v28, 8.507059e+37  ;;  %v7223_v10 = vld [vmem:[#allocation8_spill] sm:$0xff]  ;;  %v3526_v56 = vld [vmem:[%s6973_s6 + $0x40] sm:$0xff] }
 0x34e   :  { %3493 = vmatpush.msrb.mxu3 %v3389_v57  ;;  %v3386_v30 = vmul.f32 %v3249_v54, %v1779_v23  ;;  %v3072_v43 = vmul.f32 %v6797_v9, %v6679_v5  ;;  %v3173_v45 = vor.u32 1.1754944e-38, %v3172_v53  ;;  %vm6855_vm2 = vcmp.eq.f32.partialorder %v3185_v48, 8.507059e+37 }
 0x34f   :  { %v3188_v62 = vor.u32 1.1754944e-38, %v3187_v18  ;;  %v3219_v11 = vsel %vm6810_vm8, %v3218_v47, %v3214_v16  ;;  %v3184_v34 = vsel %vm6829_vm12, %v6381_v61, %v6585_v21  ;;  %v1772_v49 = vadd.f32 %v7223_v10, %v4569_v7  ;;  %v7225_v21 = vld [vmem:[#allocation27_spill] sm:$0xff]  ;;  %v7231_v47 = vld [vmem:[#allocation13_spill] sm:$0xff] }
 0x350   :  { %3494 = vmatpush.msrb.mxu3 %v3388_v3  ;;  %v3385_v58 = vmul.f32 %v3234_v13, %v1777_v40  ;;  %v3088_v53 = vsub.f32 1.0, %v3087_v55  ;;  %v3169_v29 = vsel %vm6841_vm14, %v6367_v38, %v3165_v22  ;;  %vm3171_vm7 = vcmp.eq.f32.partialorder %v3170_v37, 8.507059e+37  ;;  %v7230_v3 = vld [vmem:[#allocation12_spill] sm:$0xff]  ;;  %v7233_v55 = vld [vmem:[#allocation6_spill] sm:$0xff]  ;;  %v3524_v13 = vld [vmem:[%s6973_s6 + $0x30] sm:$0xff] }
 0x351   :  { %v3204_v48 = vsel %vm3201_vm5, %v3203_v0, %v3199_v35  ;;  %v1769_v39 = vadd.f32 %v7224_v15, %v4569_v7  ;;  %v3384_v20 = vmul.f32 %v3219_v11, %v1774_v59  ;;  %v3073_v61 = vsub.f32 1.0, %v3072_v43  ;;  %v3531_v22 = vld [vmem:[%s6973_s6 + $0x68] sm:$0xff]  ;;  %v3525_v59 = vld [vmem:[%s6973_s6 + $0x38] sm:$0xff]  ;;  %v3522_v35 = vld [vmem:[%s6973_s6 + $0x20] sm:$0xff] }
 0x352   :  { %3495 = vmatpush.msrb.mxu3 %v3387_v17  ;;  %v1767_v24 = vadd.f32 %v7225_v21, %v4569_v7  ;;  %v3189_v51 = vsel %vm6855_vm2, %v3188_v62, %v3184_v34  ;;  %v3174_v12 = vsel %vm3171_vm7, %v3173_v45, %v3169_v29  ;;  %v3383_v1 = vmul.f32 %v3204_v48, %v1772_v49  ;;  %v3527_v0 = vld [vmem:[%s6973_s6 + $0x48] sm:$0xff]  ;;  %v3520_v43 = vld [vmem:[%s6973_s6 + $0x10] sm:$0xff]  ;;  %v3429_v45 = vpop.f32.mrf.mxu3  ;;  %v3518_v62 = vld [vmem:[%s6973_s6] sm:$0xff] }
 0x353   :  { %v3089_v38 = vmul.f32 %v6770_v33, %v3088_v53  ;;  %v3382_v60 = vmul.f32 %v3189_v51, %v1769_v39  ;;  %v3074_v37 = vmul.f32 %v6797_v9, %v3073_v61  ;;  %vm3091_vm0 = vweird.f32 %v6656_v46  ;;  %v1753_v50 = vpop.f32.mrf.mxu2 }
 0x354   :  { %3496 = vmatpush.msrb.mxu3 %v3386_v30  ;;  %vm3092_vm1 = vweird.f32 %v6770_v33  ;;  %v3381_v8 = vmul.f32 %v3174_v12, %v1767_v24  ;;  %v3097_v57 = vand.u32 2147483648, %v6656_v46  ;;  %vm3076_vm6 = vweird.f32 %v6679_v5  ;;  %v3521_v30 = vld [vmem:[%s6973_s6 + $0x18] sm:$0xff] }
 0x355   :  { %vm3077_vm9 = vweird.f32 %v6797_v9  ;;  %v3090_v28 = vadd.f32 %v6770_v33, %v3089_v38  ;;  %v3095_v44 = vand.u32 2147483647, %v6656_v46  ;;  %v3082_v27 = vand.u32 2147483648, %v6679_v5  ;;  %vm6888_vm11 = vmor %vm3091_vm0, %vm3092_vm1 }
 0x356   :  { %3497 = vmatpush.msrb.mxu3 %v3385_v58  ;;  %v3075_v25 = vadd.f32 %v6797_v9, %v3074_v37  ;;  %v3080_v63 = vand.u32 2147483647, %v6679_v5  ;;  %vm6894_vm13 = vmor %vm3076_vm6, %vm3077_vm9  ;;  %v3098_v23 = vor.u32 1.1754944e-38, %v3097_v57  ;;  %v722_v18 = vperm.slane %v6624_v52, 4 }
 0x357   :  { %v3094_v46 = vsel %vm6888_vm11, %v6770_v33, %v3090_v28  ;;  %vm3096_vm4 = vcmp.eq.f32.partialorder %v3095_v44, 8.507059e+37  ;;  %v3083_v19 = vor.u32 1.1754944e-38, %v3082_v27  ;;  %v1754_v41 = vadd.f32 %v1753_v50, %v4569_v7 }
 0x358   :  { %3498 = vmatpush.msrb.mxu3 %v3384_v20  ;;  %v3079_v5 = vsel %vm6894_vm13, %v6797_v9, %v3075_v25  ;;  %vm3081_vm3 = vcmp.eq.f32.partialorder %v3080_v63, 8.507059e+37  ;;  %v3099_v54 = vsel %vm3096_vm4, %v3098_v23, %v3094_v46  ;;  %v1752_v16 = vadd.f32 %v1751_v42, %v4569_v7  ;;  %v3533_v9 = vld [vmem:[%s6973_s6 + $0x78] sm:$0xff]  ;;  %v3532_v7 = vld [vmem:[%s6973_s6 + $0x70] sm:$0xff]  ;;  %v3862_v42 = vld [vmem:[%s6974_s7] ss:$0 sm:$0xff] }
 0x359   :  { %v3395_v33 = vperm.slane %v722_v18, 0  ;;  %v3084_v40 = vsel %vm3081_vm3, %v3083_v19, %v3079_v5  ;;  %v3376_v17 = vmul.f32 %v3099_v54, %v1754_v41 }
 0x35a   :  { %3499 = vmatpush.msrb.mxu3 %v3383_v1  ;;  %v3375_v52 = vmul.f32 %v3084_v40, %v1752_v16 }
 0x35b   :  { %vm3400_vm10 = vcmp.eq.s32.totalorder %v3395_v33, %v7191_v31  ;;  %v3530_v31 = vld [vmem:[%s6973_s6 + $0x60] sm:$0xff] }
 0x35c   :  { %3500 = vmatpush.msrb.mxu3 %v3382_v60 }
 0x35e   :  { %3501 = vmatpush.msrb.mxu3 %v3381_v8 }
 0x35f   :  { %v3449_v11 = vpop.f32.mrf.mxu3 }
 0x360   :  { %3502 = vmatpush.msrb.mxu3 %v7230_v3  ;;  %v3450_v49 = vadd.f32 %v3449_v11, %v3429_v45 }
 0x362   :  { %3503 = vmatpush.msrb.mxu3 %v7231_v47 }
 0x364   :  { %3504 = vmatpush.msrb.mxu3 %v7232_v2 }
 0x366   :  { %3505 = vmatpush.msrb.mxu3 %v7233_v55 }
 0x367   :  { %v3469_v34 = vpop.f32.mrf.mxu3 }
 0x368   :  { %3506 = vmatpush.msrb.mxu3 %v3376_v17  ;;  %v3470_v58 = vadd.f32 %v3469_v34, %v3450_v49 }
 0x36a   :  { %3507 = vmatpush.msrb.mxu3 %v3375_v52 }
 0x36b   :  { %3838 = vmatmul.msk.f32.vlgmr.msrb.gmra.mxu3 %vm3400_vm10, %v7199_v36  ;;  %v3529_v36 = vld [vmem:[%s6973_s6 + $0x58] sm:$0xff]  ;;  %s3571_s6 = sshll.u32 %s6975_s8, 4  ;;  %s3572_s6 = int_to_ptr.hbm [resolvable:$true] %s3571_s6 }
 0x36c   :  { %3543 = vmatpush.msra.mxu3 %v3533_v9 }
 0x36e   :  { %3544 = vmatpush.msra.mxu3 %v3532_v7 }
 0x370   :  { %3545 = vmatpush.msra.mxu3 %v3531_v22 }
 0x372   :  { %3546 = vmatpush.msra.mxu3 %v3530_v31 }
 0x374   :  { %3547 = vmatpush.msra.mxu3 %v3529_v36 }
 0x376   :  { %3548 = vmatpush.msra.mxu3 %v3528_v4 }
 0x378   :  { %3549 = vmatpush.msra.mxu3 %v3527_v0 }
 0x37a   :  { %3550 = vmatpush.msra.mxu3 %v3526_v56 }
 0x37c   :  { %3551 = vmatpush.msra.mxu3 %v3525_v59 }
 0x37e   :  { %3552 = vmatpush.msra.mxu3 %v3524_v13 }
 0x380   :  { %3553 = vmatpush.msra.mxu3 %v3523_v26 }
 0x382   :  { %3554 = vmatpush.msra.mxu3 %v3522_v35 }
 0x384   :  { %3555 = vmatpush.msra.mxu3 %v3521_v30 }
 0x386   :  { %3556 = vmatpush.msra.mxu3 %v3520_v43 }
 0x388   :  { %3557 = vmatpush.msra.mxu3 %v3519_v32 }
 0x38a   :  { %3558 = vmatpush.msra.mxu3 %v3518_v62 }
 0x3ce   :  { %v3489_v10 = vpop.f32.mrf.mxu3 }
 0x3cf   :  { %v3490_v53 = vadd.f32 %v3489_v10, %v3470_v58 }
 0x3ee   :  { %v3509_v29 = vpop.f32.mrf.mxu3 }
 0x3ef   :  { %v3510_v48 = vadd.f32 %v3509_v29, %v3490_v53 }
 0x3f1   :  { %3559 = vmatmul.f32.vlgmr.msra.gmra.mxu3 %v3510_v48 }
 0x474   :  { %v3560_v15 = vpop.f32.mrf.mxu3 }
 0x475   :  { %v3561_v39 = vadd.f32 %v3862_v42, %v3560_v15 }
 0x477   :  { %3563 = vst [vmem:[#allocation3] sm:$0xff] %v3561_v39 }
 0x478   :  { %3574 = dma.vmem_to_hbm [thread:$0]  %s3570_s24, 128, %s3572_s6, [#allocation4]  }
 0x479   :  { %4211 = dma.done.wait [#allocation4], 128  }
 0x47a   :  { %4212 = vsyncadd [#allocation4], 4294967168 }
 0x47b   :  { %3579 = vsyncpa [#allocation4], 1 }

</bundles_post_ra>
